<compile_context>
chip_gen: v6e
topology: v6e:2x2x1
jax: 0.10.0
libtpu: 0.0.40
codegen_flags: <defaults>
</compile_context>

<pallas_src>
import functools

import jax
import jax.numpy as jnp
from jax.experimental import pallas as pl
from jax.experimental.pallas import tpu as pltpu

_LN_EPS = 1e-5
_COMPUTE_DTYPE = jnp.bfloat16   # MXU operand dtype (accumulation is always f32)


def _gelu_tanh(v):
    c = 0.7978845608028654  # sqrt(2/pi)
    return 0.5 * v * (1.0 + jnp.tanh(c * (v + 0.044715 * v * v * v)))


def _layer_norm(v, g, b):
    mu = jnp.mean(v, axis=-1, keepdims=True)
    d = v - mu
    var = jnp.mean(d * d, axis=-1, keepdims=True)
    return d * jax.lax.rsqrt(var + _LN_EPS) * g + b


def _block_kernel(
    x_ref, y_ref,
    ln0_g_ref, ln0_b_ref, qkv_w_ref, proj0_w_ref, proj0_b_ref,
    ln1_g_ref, ln1_b_ref, wq_ref, wkv_ref, proj1_w_ref, proj1_b_ref,
    ln2_g_ref, ln2_b_ref, fc1_w_ref, fc1_b_ref, fc2_w_ref, fc2_b_ref,
    o_ref,
    *, num_heads: int, scale: float, compute_dtype):
    cdt = compute_dtype
    Bb, Nx, C = x_ref.shape
    Ny = y_ref.shape[1]
    H = num_heads
    hd = C // H

    def mm(a, w_ref):
        # Full-width MXU matmul: bf16 operands, f32 accumulation.
        return jnp.dot(a.astype(cdt), w_ref[...], preferred_element_type=jnp.float32)

    def split_heads(t2, n_tok):
        # (Bb*n_tok, C) f32 -> (H*Bb, n_tok, hd) compute dtype; batch index = h*Bb + b.
        # Lane slices + leading-dim stack/reshape: done ONCE per attention (not per
        # head-matmul), everything else stays layout-friendly.
        parts = [t2[:, h * hd:(h + 1) * hd] for h in range(H)]
        t = jnp.stack(parts, axis=0)                       # (H, Bb*n_tok, hd)
        return t.reshape(H * Bb, n_tok, hd).astype(cdt)

    def merge_heads(o3, n_tok):
        # (H*Bb, n_tok, hd) f32 -> (Bb*n_tok, C) f32, head-major along lanes
        # (matches PyTorch's transpose(1,2).reshape(B,N,C) concat).
        parts = [o3[h * Bb:(h + 1) * Bb] for h in range(H)]
        return jnp.concatenate(parts, axis=-1).reshape(Bb * n_tok, C)

    def attention(q2, k2, v2, n_q, n_k):
        qh = split_heads(q2, n_q)
        kh = split_heads(k2, n_k)
        vh = split_heads(v2, n_k)
        s = jnp.einsum("bqd,bkd->bqk", qh, kh,
                       preferred_element_type=jnp.float32) * scale    # (H*Bb, n_q, n_k)
        m = jnp.max(s, axis=-1, keepdims=True)
        e = jnp.exp(s - m)
        p = e * pl.reciprocal(jnp.sum(e, axis=-1, keepdims=True), approx=True)
        o = jnp.einsum("bqk,bkd->bqd", p.astype(cdt), vh,
                       preferred_element_type=jnp.float32)            # (H*Bb, n_q, hd)
        return merge_heads(o, n_q)

    # Residual stream is kept in f32 for the whole block.
    x = x_ref[...].astype(jnp.float32).reshape(Bb * Nx, C)
    y = y_ref[...].astype(jnp.float32).reshape(Bb * Ny, C)

    # --- x = x + selfattn(norm0(x)) -----------------------------------------
    xn = _layer_norm(x, ln0_g_ref[...], ln0_b_ref[...])
    qkv = mm(xn, qkv_w_ref)                                           # (Bb*Nx, 3C)
    sa = attention(qkv[:, 0:C], qkv[:, C:2 * C], qkv[:, 2 * C:3 * C], Nx, Nx)
    x = x + mm(sa, proj0_w_ref) + proj0_b_ref[...]

    # --- x = x + crossattn(norm1(x), y) ---------------------------------------
    xn = _layer_norm(x, ln1_g_ref[...], ln1_b_ref[...])
    q = mm(xn, wq_ref)                                                # (Bb*Nx, C)
    kv = mm(y, wkv_ref)                                               # (Bb*Ny, 2C)
    ca = attention(q, kv[:, 0:C], kv[:, C:2 * C], Nx, Ny)
    x = x + mm(ca, proj1_w_ref) + proj1_b_ref[...]

    # --- x = x + mlp(norm2(x)) --------------------------------------------------
    xn = _layer_norm(x, ln2_g_ref[...], ln2_b_ref[...])
    h1 = _gelu_tanh(mm(xn, fc1_w_ref) + fc1_b_ref[...])
    x = x + mm(h1, fc2_w_ref) + fc2_b_ref[...]

    o_ref[...] = x.reshape(Bb, Nx, C).astype(o_ref.dtype)


def _pick_batch_block(B, Nx):
    """Largest Bb dividing B with Bb*Nx targeting >=128 rows, keeping >=2 grid steps."""
    target = max(1, -(-128 // max(Nx, 1)))     # ceil(128 / Nx)
    bb = min(B, target)
    while B % bb:
        bb -= 1
    if bb == B and B > 1:                      # keep >= 2 grid steps for megacore / v7x
        for cand in range(B // 2, 0, -1):
            if B % cand == 0:
                bb = cand
                break
    return max(bb, 1)


def cross_attention_block_forward(x, y, params, *, num_heads,
                                  compute_dtype=_COMPUTE_DTYPE):
    """x: (B, Nx, C); y: (B, Ny, C). Weights are stored matmul-ready as (in, out)."""
    B, Nx, C = x.shape
    Ny = y.shape[1]
    hd = C // num_heads
    Hid = params["fc1_w"].shape[1]
    scale = float(hd) ** -0.5
    f32 = jnp.float32

    # Fuse cross-attn K/V weights host-side (one (C, 2C) matmul inside the kernel).
    wkv = jnp.concatenate([params["wk_w"], params["wv_w"]], axis=1)

    weights = [
        params["ln0_g"].astype(f32), params["ln0_b"].astype(f32),
        params["qkv_w"].astype(compute_dtype),
        params["proj0_w"].astype(compute_dtype), params["proj0_b"].astype(f32),
        params["ln1_g"].astype(f32), params["ln1_b"].astype(f32),
        params["wq_w"].astype(compute_dtype), wkv.astype(compute_dtype),
        params["proj1_w"].astype(compute_dtype), params["proj1_b"].astype(f32),
        params["ln2_g"].astype(f32), params["ln2_b"].astype(f32),
        params["fc1_w"].astype(compute_dtype), params["fc1_b"].astype(f32),
        params["fc2_w"].astype(compute_dtype), params["fc2_b"].astype(f32),
    ]

    Bb = _pick_batch_block(B, Nx)
    grid = (B // Bb,)

    def weight_spec(w):
        # Constant index_map across the grid -> single-buffer to halve weight residency.
        return pl.BlockSpec(w.shape, lambda b: (0, 0), pipeline_mode=pl.Buffered(1))

    in_specs = ([pl.BlockSpec((Bb, Nx, C), lambda b: (b, 0, 0)),
                 pl.BlockSpec((Bb, Ny, C), lambda b: (b, 0, 0))]
                + [weight_spec(w) for w in weights])

    weight_bytes = sum(int(w.size) * w.dtype.itemsize for w in weights)
    block_bytes = (2 * Bb * Nx * C + Bb * Ny * C) * x.dtype.itemsize
    vmem_limit = int(min(max(3 * (weight_bytes + 2 * block_bytes) + (8 << 20), 32 << 20),
                         64 << 20))

    # Advisory scheduler hint.
    Rx, Ry = B * Nx, B * Ny
    flops = (2 * Rx * C * 3 * C + 2 * Ry * C * 2 * C + 2 * Rx * C * C     # qkv, kv, q
             + 4 * B * (Nx * Nx + Nx * Ny) * C                            # attention
             + 2 * 2 * Rx * C * C                                         # projections
             + 4 * Rx * C * Hid)                                          # mlp
    transcendentals = (B * num_heads * (Nx * Nx + Nx * Ny) + Rx * Hid + 3 * Rx)
    bytes_accessed = (2 * x.size * x.dtype.itemsize + y.size * y.dtype.itemsize
                      + weight_bytes)

    kernel = functools.partial(_block_kernel, num_heads=num_heads, scale=scale,
                               compute_dtype=compute_dtype)

    return pl.pallas_call(
        kernel,
        out_shape=jax.ShapeDtypeStruct((B, Nx, C), x.dtype),
        grid_spec=pltpu.PrefetchScalarGridSpec(
            num_scalar_prefetch=0,
            grid=grid,
            in_specs=in_specs,
            out_specs=pl.BlockSpec((Bb, Nx, C), lambda b: (b, 0, 0)),
        ),
        compiler_params=pltpu.CompilerParams(
            dimension_semantics=("parallel",),
            vmem_limit_bytes=vmem_limit),
        cost_estimate=pl.CostEstimate(
            flops=int(flops),
            transcendentals=int(transcendentals),
            bytes_accessed=int(bytes_accessed)),
    )(x, y, *weights)


def _reference(x, y, p, num_heads, matmul_dtype=jnp.float32):
    """Pure-JAX reference. matmul_dtype=bf16 emulates the kernel's MXU operand casts."""
    C = x.shape[-1]
    hd = C // num_heads
    scale = float(hd) ** -0.5
    md = matmul_dtype

    def mm(a, b):
        return jnp.dot(a.astype(md), b.astype(md), preferred_element_type=jnp.float32)

    def ln(v, g, b):
        mu = v.mean(-1, keepdims=True)
        var = ((v - mu) ** 2).mean(-1, keepdims=True)
        return (v - mu) / jnp.sqrt(var + _LN_EPS) * g + b

    def mha(q, k, v):
        B, Nq, _ = q.shape
        Nk = k.shape[1]
        qh = q.reshape(B, Nq, num_heads, hd).transpose(0, 2, 1, 3)
        kh = k.reshape(B, Nk, num_heads, hd).transpose(0, 2, 1, 3)
        vh = v.reshape(B, Nk, num_heads, hd).transpose(0, 2, 1, 3)
        s = jnp.einsum("bhqd,bhkd->bhqk", qh.astype(md), kh.astype(md),
                       preferred_element_type=jnp.float32) * scale
        a = jax.nn.softmax(s, axis=-1)
        o = jnp.einsum("bhqk,bhkd->bhqd", a.astype(md), vh.astype(md),
                       preferred_element_type=jnp.float32)
        return o.transpose(0, 2, 1, 3).reshape(B, Nq, C)

    xn = ln(x, p["ln0_g"], p["ln0_b"])
    qkv = mm(xn, p["qkv_w"])
    sa = mha(qkv[..., :C], qkv[..., C:2 * C], qkv[..., 2 * C:])
    x = x + mm(sa, p["proj0_w"]) + p["proj0_b"]

    xn = ln(x, p["ln1_g"], p["ln1_b"])
    ca = mha(mm(xn, p["wq_w"]), mm(y, p["wk_w"]), mm(y, p["wv_w"]))
    x = x + mm(ca, p["proj1_w"]) + p["proj1_b"]

    xn = ln(x, p["ln2_g"], p["ln2_b"])
    h = _gelu_tanh(mm(xn, p["fc1_w"]) + p["fc1_b"])
    x = x + mm(h, p["fc2_w"]) + p["fc2_b"]
    return x


def make_params(keys, dim, num_heads, mlp_ratio=4.0):
    hidden = int(dim * mlp_ratio)
    f32 = jnp.float32
    k = iter(list(keys))

    def nrm(shape, s):
        return s * jax.random.normal(next(k), shape, f32)

    return dict(
        ln0_g=1.0 + nrm((1, dim), 0.05),
        ln0_b=nrm((1, dim), 0.05),
        qkv_w=nrm((dim, 3 * dim), 0.08),
        proj0_w=nrm((dim, dim), 0.08),
        proj0_b=nrm((1, dim), 0.05),
        ln1_g=1.0 + nrm((1, dim), 0.05),
        ln1_b=nrm((1, dim), 0.05),
        wq_w=nrm((dim, dim), 0.08),
        wk_w=nrm((dim, dim), 0.08),
        wv_w=nrm((dim, dim), 0.08),
        proj1_w=nrm((dim, dim), 0.08),
        proj1_b=nrm((1, dim), 0.05),
        ln2_g=1.0 + nrm((1, dim), 0.05),
        ln2_b=nrm((1, dim), 0.05),
        fc1_w=nrm((dim, hidden), 0.08),
        fc1_b=nrm((1, hidden), 0.05),
        fc2_w=nrm((hidden, dim), 0.08),
        fc2_b=nrm((1, dim), 0.05),
    )


if __name__ == "__main__":
    key = jax.random.PRNGKey(0)
    keys = jax.random.split(key, 20)

    # Small but lane-friendly shapes (C multiple of 128, token counts multiples of 8).
    B, Nx, Ny, C, num_heads = 4, 16, 32, 128, 4
    x = jax.random.normal(keys[0], (B, Nx, C), dtype=jnp.float32)
    y = jax.random.normal(keys[1], (B, Ny, C), dtype=jnp.float32)
    params = make_params(keys[2:], C, num_heads)

    out = jax.block_until_ready(
        cross_attention_block_forward(x, y, params, num_heads=num_heads))
    assert out.shape == (B, Nx, C)

    # Strict check vs. a reference that emulates the kernel's bf16 MXU operands.
    ref_bf16 = _reference(x, y, params, num_heads, matmul_dtype=jnp.bfloat16)
    # Loose sanity check vs. the pure-f32 reference (bounds the bf16 cost).
    ref_f32 = _reference(x, y, params, num_heads, matmul_dtype=jnp.float32)

    err_bf16 = float(jnp.max(jnp.abs(out - ref_bf16)))
    err_f32 = float(jnp.max(jnp.abs(out - ref_f32)))
    assert jnp.allclose(out, ref_bf16, atol=2e-2, rtol=2e-2), (err_bf16, err_f32)
    assert jnp.allclose(out, ref_f32, atol=1.5e-1, rtol=1.5e-1), (err_bf16, err_f32)

    print("KERNEL_OK")
</pallas_src>

<mosaic_0001>
module attributes {stable_mosaic.version = 11 : i64} {
  func.func @_block_kernel(%arg0: i32, %arg1: memref<2x16x128xf32, #tpu.memory_space<vmem>>, %arg2: memref<2x32x128xf32, #tpu.memory_space<vmem>>, %arg3: memref<1x128xf32, #tpu.memory_space<vmem>>, %arg4: memref<1x128xf32, #tpu.memory_space<vmem>>, %arg5: memref<128x384xbf16, #tpu.memory_space<vmem>>, %arg6: memref<128x128xbf16, #tpu.memory_space<vmem>>, %arg7: memref<1x128xf32, #tpu.memory_space<vmem>>, %arg8: memref<1x128xf32, #tpu.memory_space<vmem>>, %arg9: memref<1x128xf32, #tpu.memory_space<vmem>>, %arg10: memref<128x128xbf16, #tpu.memory_space<vmem>>, %arg11: memref<128x256xbf16, #tpu.memory_space<vmem>>, %arg12: memref<128x128xbf16, #tpu.memory_space<vmem>>, %arg13: memref<1x128xf32, #tpu.memory_space<vmem>>, %arg14: memref<1x128xf32, #tpu.memory_space<vmem>>, %arg15: memref<1x128xf32, #tpu.memory_space<vmem>>, %arg16: memref<128x512xbf16, #tpu.memory_space<vmem>>, %arg17: memref<1x512xf32, #tpu.memory_space<vmem>>, %arg18: memref<512x128xbf16, #tpu.memory_space<vmem>>, %arg19: memref<1x128xf32, #tpu.memory_space<vmem>>, %arg20: memref<2x16x128xf32, #tpu.memory_space<vmem>>) attributes {dimension_semantics = [#tpu.dimension_semantics<parallel>], iteration_bounds = array<i64: 2>, scalar_prefetch = 0 : i64, scratch_operands = 0 : i64, tpu.core_type = #tpu.core_type<tc>, window_params = [{transform_indices = @transform_0, window_bounds = array<i64: 2, 16, 128>}, {transform_indices = @transform_1, window_bounds = array<i64: 2, 32, 128>}, {pipeline_mode = #tpu.pipeline_mode<synchronous>, transform_indices = @transform_2, window_bounds = array<i64: 1, 128>}, {pipeline_mode = #tpu.pipeline_mode<synchronous>, transform_indices = @transform_3, window_bounds = array<i64: 1, 128>}, {pipeline_mode = #tpu.pipeline_mode<synchronous>, transform_indices = @transform_4, window_bounds = array<i64: 128, 384>}, {pipeline_mode = #tpu.pipeline_mode<synchronous>, transform_indices = @transform_5, window_bounds = array<i64: 128, 128>}, {pipeline_mode = #tpu.pipeline_mode<synchronous>, transform_indices = @transform_6, window_bounds = array<i64: 1, 128>}, {pipeline_mode = #tpu.pipeline_mode<synchronous>, transform_indices = @transform_7, window_bounds = array<i64: 1, 128>}, {pipeline_mode = #tpu.pipeline_mode<synchronous>, transform_indices = @transform_8, window_bounds = array<i64: 1, 128>}, {pipeline_mode = #tpu.pipeline_mode<synchronous>, transform_indices = @transform_9, window_bounds = array<i64: 128, 128>}, {pipeline_mode = #tpu.pipeline_mode<synchronous>, transform_indices = @transform_10, window_bounds = array<i64: 128, 256>}, {pipeline_mode = #tpu.pipeline_mode<synchronous>, transform_indices = @transform_11, window_bounds = array<i64: 128, 128>}, {pipeline_mode = #tpu.pipeline_mode<synchronous>, transform_indices = @transform_12, window_bounds = array<i64: 1, 128>}, {pipeline_mode = #tpu.pipeline_mode<synchronous>, transform_indices = @transform_13, window_bounds = array<i64: 1, 128>}, {pipeline_mode = #tpu.pipeline_mode<synchronous>, transform_indices = @transform_14, window_bounds = array<i64: 1, 128>}, {pipeline_mode = #tpu.pipeline_mode<synchronous>, transform_indices = @transform_15, window_bounds = array<i64: 128, 512>}, {pipeline_mode = #tpu.pipeline_mode<synchronous>, transform_indices = @transform_16, window_bounds = array<i64: 1, 512>}, {pipeline_mode = #tpu.pipeline_mode<synchronous>, transform_indices = @transform_17, window_bounds = array<i64: 512, 128>}, {pipeline_mode = #tpu.pipeline_mode<synchronous>, transform_indices = @transform_18, window_bounds = array<i64: 1, 128>}, {transform_indices = @transform_19, window_bounds = array<i64: 2, 16, 128>}]} {
    %c0 = arith.constant 0 : index
    %c0_0 = arith.constant 0 : index
    %c0_1 = arith.constant 0 : index
    %0 = vector.load %arg1[%c0, %c0_0, %c0_1] : memref<2x16x128xf32, #tpu.memory_space<vmem>>, vector<2x16x128xf32>
    %1 = vector.shape_cast %0 : vector<2x16x128xf32> to vector<32x128xf32>
    %c0_2 = arith.constant 0 : index
    %c0_3 = arith.constant 0 : index
    %c0_4 = arith.constant 0 : index
    %2 = vector.load %arg2[%c0_2, %c0_3, %c0_4] : memref<2x32x128xf32, #tpu.memory_space<vmem>>, vector<2x32x128xf32>
    %3 = vector.shape_cast %2 : vector<2x32x128xf32> to vector<64x128xf32>
    %c0_5 = arith.constant 0 : index
    %c0_6 = arith.constant 0 : index
    %4 = vector.load %arg3[%c0_5, %c0_6] : memref<1x128xf32, #tpu.memory_space<vmem>>, vector<1x128xf32>
    %c0_7 = arith.constant 0 : index
    %c0_8 = arith.constant 0 : index
    %5 = vector.load %arg4[%c0_7, %c0_8] : memref<1x128xf32, #tpu.memory_space<vmem>>, vector<1x128xf32>
    %cst = arith.constant dense<0.000000e+00> : vector<32xf32>
    %6 = vector.multi_reduction <add>, %1, %cst [1] : vector<32x128xf32> to vector<32xf32>
    %7 = vector.shape_cast %6 : vector<32xf32> to vector<32x1xf32>
    %cst_9 = arith.constant 1.280000e+02 : f32
    %8 = vector.broadcast %cst_9 : f32 to vector<32x1xf32>
    %9 = arith.divf %7, %8 : vector<32x1xf32>
    %10 = vector.broadcast %9 : vector<32x1xf32> to vector<32x128xf32>
    %11 = arith.subf %1, %10 : vector<32x128xf32>
    %12 = arith.mulf %11, %11 : vector<32x128xf32>
    %cst_10 = arith.constant dense<0.000000e+00> : vector<32xf32>
    %13 = vector.multi_reduction <add>, %12, %cst_10 [1] : vector<32x128xf32> to vector<32xf32>
    %14 = vector.shape_cast %13 : vector<32xf32> to vector<32x1xf32>
    %cst_11 = arith.constant 1.280000e+02 : f32
    %15 = vector.broadcast %cst_11 : f32 to vector<32x1xf32>
    %16 = arith.divf %14, %15 : vector<32x1xf32>
    %cst_12 = arith.constant 9.99999974E-6 : f32
    %17 = vector.broadcast %cst_12 : f32 to vector<32x1xf32>
    %18 = arith.addf %16, %17 : vector<32x1xf32>
    %19 = math.rsqrt %18 : vector<32x1xf32>
    %20 = vector.broadcast %19 : vector<32x1xf32> to vector<32x128xf32>
    %21 = arith.mulf %11, %20 : vector<32x128xf32>
    %22 = vector.broadcast %4 : vector<1x128xf32> to vector<32x128xf32>
    %23 = arith.mulf %21, %22 : vector<32x128xf32>
    %24 = vector.broadcast %5 : vector<1x128xf32> to vector<32x128xf32>
    %25 = arith.addf %23, %24 : vector<32x128xf32>
    %26 = arith.truncf %25 : vector<32x128xf32> to vector<32x128xbf16>
    %c0_13 = arith.constant 0 : index
    %c0_14 = arith.constant 0 : index
    %27 = vector.load %arg5[%c0_13, %c0_14] : memref<128x384xbf16, #tpu.memory_space<vmem>>, vector<128x384xbf16>
    %cst_15 = arith.constant dense<0.000000e+00> : vector<32x384xf32>
    %28 = tpu.matmul %26, %27, %cst_15 {dimension_numbers = #tpu.dot_dimension_numbers<[1], [0], [0], [1], [0, 0, 1, 1], [], []>} : vector<32x128xbf16>, vector<128x384xbf16>, vector<32x384xf32> -> vector<32x384xf32>
    %29 = vector.extract_strided_slice %28 {offsets = [0, 0], sizes = [32, 128], strides = [1, 1]} : vector<32x384xf32> to vector<32x128xf32>
    %30 = vector.extract_strided_slice %28 {offsets = [0, 128], sizes = [32, 128], strides = [1, 1]} : vector<32x384xf32> to vector<32x128xf32>
    %31 = vector.extract_strided_slice %28 {offsets = [0, 256], sizes = [32, 128], strides = [1, 1]} : vector<32x384xf32> to vector<32x128xf32>
    %32 = vector.extract_strided_slice %29 {offsets = [0, 0], sizes = [32, 32], strides = [1, 1]} : vector<32x128xf32> to vector<32x32xf32>
    %33 = vector.extract_strided_slice %29 {offsets = [0, 32], sizes = [32, 32], strides = [1, 1]} : vector<32x128xf32> to vector<32x32xf32>
    %34 = vector.extract_strided_slice %29 {offsets = [0, 64], sizes = [32, 32], strides = [1, 1]} : vector<32x128xf32> to vector<32x32xf32>
    %35 = vector.extract_strided_slice %29 {offsets = [0, 96], sizes = [32, 32], strides = [1, 1]} : vector<32x128xf32> to vector<32x32xf32>
    %36 = vector.shape_cast %32 : vector<32x32xf32> to vector<1x32x32xf32>
    %37 = vector.shape_cast %33 : vector<32x32xf32> to vector<1x32x32xf32>
    %38 = vector.shape_cast %34 : vector<32x32xf32> to vector<1x32x32xf32>
    %39 = vector.shape_cast %35 : vector<32x32xf32> to vector<1x32x32xf32>
    %40 = tpu.concatenate %36, %37, %38, %39 in 0 : vector<1x32x32xf32>, vector<1x32x32xf32>, vector<1x32x32xf32>, vector<1x32x32xf32> -> vector<4x32x32xf32>
    %41 = vector.shape_cast %40 : vector<4x32x32xf32> to vector<8x16x32xf32>
    %42 = arith.truncf %41 : vector<8x16x32xf32> to vector<8x16x32xbf16>
    %43 = vector.extract_strided_slice %30 {offsets = [0, 0], sizes = [32, 32], strides = [1, 1]} : vector<32x128xf32> to vector<32x32xf32>
    %44 = vector.extract_strided_slice %30 {offsets = [0, 32], sizes = [32, 32], strides = [1, 1]} : vector<32x128xf32> to vector<32x32xf32>
    %45 = vector.extract_strided_slice %30 {offsets = [0, 64], sizes = [32, 32], strides = [1, 1]} : vector<32x128xf32> to vector<32x32xf32>
    %46 = vector.extract_strided_slice %30 {offsets = [0, 96], sizes = [32, 32], strides = [1, 1]} : vector<32x128xf32> to vector<32x32xf32>
    %47 = vector.shape_cast %43 : vector<32x32xf32> to vector<1x32x32xf32>
    %48 = vector.shape_cast %44 : vector<32x32xf32> to vector<1x32x32xf32>
    %49 = vector.shape_cast %45 : vector<32x32xf32> to vector<1x32x32xf32>
    %50 = vector.shape_cast %46 : vector<32x32xf32> to vector<1x32x32xf32>
    %51 = tpu.concatenate %47, %48, %49, %50 in 0 : vector<1x32x32xf32>, vector<1x32x32xf32>, vector<1x32x32xf32>, vector<1x32x32xf32> -> vector<4x32x32xf32>
    %52 = vector.shape_cast %51 : vector<4x32x32xf32> to vector<8x16x32xf32>
    %53 = arith.truncf %52 : vector<8x16x32xf32> to vector<8x16x32xbf16>
    %54 = vector.extract_strided_slice %31 {offsets = [0, 0], sizes = [32, 32], strides = [1, 1]} : vector<32x128xf32> to vector<32x32xf32>
    %55 = vector.extract_strided_slice %31 {offsets = [0, 32], sizes = [32, 32], strides = [1, 1]} : vector<32x128xf32> to vector<32x32xf32>
    %56 = vector.extract_strided_slice %31 {offsets = [0, 64], sizes = [32, 32], strides = [1, 1]} : vector<32x128xf32> to vector<32x32xf32>
    %57 = vector.extract_strided_slice %31 {offsets = [0, 96], sizes = [32, 32], strides = [1, 1]} : vector<32x128xf32> to vector<32x32xf32>
    %58 = vector.shape_cast %54 : vector<32x32xf32> to vector<1x32x32xf32>
    %59 = vector.shape_cast %55 : vector<32x32xf32> to vector<1x32x32xf32>
    %60 = vector.shape_cast %56 : vector<32x32xf32> to vector<1x32x32xf32>
    %61 = vector.shape_cast %57 : vector<32x32xf32> to vector<1x32x32xf32>
    %62 = tpu.concatenate %58, %59, %60, %61 in 0 : vector<1x32x32xf32>, vector<1x32x32xf32>, vector<1x32x32xf32>, vector<1x32x32xf32> -> vector<4x32x32xf32>
    %63 = vector.shape_cast %62 : vector<4x32x32xf32> to vector<8x16x32xf32>
    %64 = arith.truncf %63 : vector<8x16x32xf32> to vector<8x16x32xbf16>
    "tpu.trace_start"() <{level = 10 : i32, message = "bqd,bkd->bqk"}> : () -> ()
    %cst_16 = arith.constant dense<0.000000e+00> : vector<8x16x16xf32>
    %65 = tpu.matmul %42, %53, %cst_16 {dimension_numbers = #tpu.dot_dimension_numbers<[2], [2], [1], [1], [0, 0, 0, 1, 1, 1], [0], [0]>} : vector<8x16x32xbf16>, vector<8x16x32xbf16>, vector<8x16x16xf32> -> vector<8x16x16xf32>
    "tpu.trace_stop"() : () -> ()
    %cst_17 = arith.constant 0.176776692 : f32
    %66 = vector.broadcast %cst_17 : f32 to vector<8x16x16xf32>
    %67 = arith.mulf %65, %66 : vector<8x16x16xf32>
    %cst_18 = arith.constant dense<0xFF800000> : vector<8x16xf32>
    %68 = vector.multi_reduction <maximumf>, %67, %cst_18 [2] : vector<8x16x16xf32> to vector<8x16xf32>
    %69 = vector.shape_cast %68 : vector<8x16xf32> to vector<8x16x1xf32>
    %70 = vector.broadcast %69 : vector<8x16x1xf32> to vector<8x16x16xf32>
    %71 = arith.subf %67, %70 : vector<8x16x16xf32>
    %72 = math.exp %71 : vector<8x16x16xf32>
    %cst_19 = arith.constant dense<0.000000e+00> : vector<8x16xf32>
    %73 = vector.multi_reduction <add>, %72, %cst_19 [2] : vector<8x16x16xf32> to vector<8x16xf32>
    %74 = vector.shape_cast %73 : vector<8x16xf32> to vector<8x16x1xf32>
    %75 = tpu.reciprocal %74 {approx = true} : vector<8x16x1xf32> -> vector<8x16x1xf32>
    %76 = vector.broadcast %75 : vector<8x16x1xf32> to vector<8x16x16xf32>
    %77 = arith.mulf %72, %76 : vector<8x16x16xf32>
    %78 = arith.truncf %77 : vector<8x16x16xf32> to vector<8x16x16xbf16>
    "tpu.trace_start"() <{level = 10 : i32, message = "bqk,bkd->bqd"}> : () -> ()
    %cst_20 = arith.constant dense<0.000000e+00> : vector<8x16x32xf32>
    %79 = tpu.matmul %78, %64, %cst_20 {dimension_numbers = #tpu.dot_dimension_numbers<[2], [1], [1], [2], [0, 0, 0, 1, 1, 2], [0], [0]>} : vector<8x16x16xbf16>, vector<8x16x32xbf16>, vector<8x16x32xf32> -> vector<8x16x32xf32>
    "tpu.trace_stop"() : () -> ()
    %80 = vector.extract_strided_slice %79 {offsets = [0, 0, 0], sizes = [2, 16, 32], strides = [1, 1, 1]} : vector<8x16x32xf32> to vector<2x16x32xf32>
    %81 = vector.extract_strided_slice %79 {offsets = [2, 0, 0], sizes = [2, 16, 32], strides = [1, 1, 1]} : vector<8x16x32xf32> to vector<2x16x32xf32>
    %82 = vector.extract_strided_slice %79 {offsets = [4, 0, 0], sizes = [2, 16, 32], strides = [1, 1, 1]} : vector<8x16x32xf32> to vector<2x16x32xf32>
    %83 = vector.extract_strided_slice %79 {offsets = [6, 0, 0], sizes = [2, 16, 32], strides = [1, 1, 1]} : vector<8x16x32xf32> to vector<2x16x32xf32>
    %84 = tpu.concatenate %80, %81, %82, %83 in 2 : vector<2x16x32xf32>, vector<2x16x32xf32>, vector<2x16x32xf32>, vector<2x16x32xf32> -> vector<2x16x128xf32>
    %85 = vector.shape_cast %84 : vector<2x16x128xf32> to vector<32x128xf32>
    %86 = arith.truncf %85 : vector<32x128xf32> to vector<32x128xbf16>
    %c0_21 = arith.constant 0 : index
    %c0_22 = arith.constant 0 : index
    %87 = vector.load %arg6[%c0_21, %c0_22] : memref<128x128xbf16, #tpu.memory_space<vmem>>, vector<128x128xbf16>
    %cst_23 = arith.constant dense<0.000000e+00> : vector<32x128xf32>
    %88 = tpu.matmul %86, %87, %cst_23 {dimension_numbers = #tpu.dot_dimension_numbers<[1], [0], [0], [1], [0, 0, 1, 1], [], []>} : vector<32x128xbf16>, vector<128x128xbf16>, vector<32x128xf32> -> vector<32x128xf32>
    %89 = arith.addf %1, %88 : vector<32x128xf32>
    %c0_24 = arith.constant 0 : index
    %c0_25 = arith.constant 0 : index
    %90 = vector.load %arg7[%c0_24, %c0_25] : memref<1x128xf32, #tpu.memory_space<vmem>>, vector<1x128xf32>
    %91 = vector.broadcast %90 : vector<1x128xf32> to vector<32x128xf32>
    %92 = arith.addf %89, %91 : vector<32x128xf32>
    %c0_26 = arith.constant 0 : index
    %c0_27 = arith.constant 0 : index
    %93 = vector.load %arg8[%c0_26, %c0_27] : memref<1x128xf32, #tpu.memory_space<vmem>>, vector<1x128xf32>
    %c0_28 = arith.constant 0 : index
    %c0_29 = arith.constant 0 : index
    %94 = vector.load %arg9[%c0_28, %c0_29] : memref<1x128xf32, #tpu.memory_space<vmem>>, vector<1x128xf32>
    %cst_30 = arith.constant dense<0.000000e+00> : vector<32xf32>
    %95 = vector.multi_reduction <add>, %92, %cst_30 [1] : vector<32x128xf32> to vector<32xf32>
    %96 = vector.shape_cast %95 : vector<32xf32> to vector<32x1xf32>
    %cst_31 = arith.constant 1.280000e+02 : f32
    %97 = vector.broadcast %cst_31 : f32 to vector<32x1xf32>
    %98 = arith.divf %96, %97 : vector<32x1xf32>
    %99 = vector.broadcast %98 : vector<32x1xf32> to vector<32x128xf32>
    %100 = arith.subf %92, %99 : vector<32x128xf32>
    %101 = arith.mulf %100, %100 : vector<32x128xf32>
    %cst_32 = arith.constant dense<0.000000e+00> : vector<32xf32>
    %102 = vector.multi_reduction <add>, %101, %cst_32 [1] : vector<32x128xf32> to vector<32xf32>
    %103 = vector.shape_cast %102 : vector<32xf32> to vector<32x1xf32>
    %cst_33 = arith.constant 1.280000e+02 : f32
    %104 = vector.broadcast %cst_33 : f32 to vector<32x1xf32>
    %105 = arith.divf %103, %104 : vector<32x1xf32>
    %cst_34 = arith.constant 9.99999974E-6 : f32
    %106 = vector.broadcast %cst_34 : f32 to vector<32x1xf32>
    %107 = arith.addf %105, %106 : vector<32x1xf32>
    %108 = math.rsqrt %107 : vector<32x1xf32>
    %109 = vector.broadcast %108 : vector<32x1xf32> to vector<32x128xf32>
    %110 = arith.mulf %100, %109 : vector<32x128xf32>
    %111 = vector.broadcast %93 : vector<1x128xf32> to vector<32x128xf32>
    %112 = arith.mulf %110, %111 : vector<32x128xf32>
    %113 = vector.broadcast %94 : vector<1x128xf32> to vector<32x128xf32>
    %114 = arith.addf %112, %113 : vector<32x128xf32>
    %115 = arith.truncf %114 : vector<32x128xf32> to vector<32x128xbf16>
    %c0_35 = arith.constant 0 : index
    %c0_36 = arith.constant 0 : index
    %116 = vector.load %arg10[%c0_35, %c0_36] : memref<128x128xbf16, #tpu.memory_space<vmem>>, vector<128x128xbf16>
    %cst_37 = arith.constant dense<0.000000e+00> : vector<32x128xf32>
    %117 = tpu.matmul %115, %116, %cst_37 {dimension_numbers = #tpu.dot_dimension_numbers<[1], [0], [0], [1], [0, 0, 1, 1], [], []>} : vector<32x128xbf16>, vector<128x128xbf16>, vector<32x128xf32> -> vector<32x128xf32>
    %118 = arith.truncf %3 : vector<64x128xf32> to vector<64x128xbf16>
    %c0_38 = arith.constant 0 : index
    %c0_39 = arith.constant 0 : index
    %119 = vector.load %arg11[%c0_38, %c0_39] : memref<128x256xbf16, #tpu.memory_space<vmem>>, vector<128x256xbf16>
    %cst_40 = arith.constant dense<0.000000e+00> : vector<64x256xf32>
    %120 = tpu.matmul %118, %119, %cst_40 {dimension_numbers = #tpu.dot_dimension_numbers<[1], [0], [0], [1], [0, 0, 1, 1], [], []>} : vector<64x128xbf16>, vector<128x256xbf16>, vector<64x256xf32> -> vector<64x256xf32>
    %121 = vector.extract_strided_slice %120 {offsets = [0, 0], sizes = [64, 128], strides = [1, 1]} : vector<64x256xf32> to vector<64x128xf32>
    %122 = vector.extract_strided_slice %120 {offsets = [0, 128], sizes = [64, 128], strides = [1, 1]} : vector<64x256xf32> to vector<64x128xf32>
    %123 = vector.extract_strided_slice %117 {offsets = [0, 0], sizes = [32, 32], strides = [1, 1]} : vector<32x128xf32> to vector<32x32xf32>
    %124 = vector.extract_strided_slice %117 {offsets = [0, 32], sizes = [32, 32], strides = [1, 1]} : vector<32x128xf32> to vector<32x32xf32>
    %125 = vector.extract_strided_slice %117 {offsets = [0, 64], sizes = [32, 32], strides = [1, 1]} : vector<32x128xf32> to vector<32x32xf32>
    %126 = vector.extract_strided_slice %117 {offsets = [0, 96], sizes = [32, 32], strides = [1, 1]} : vector<32x128xf32> to vector<32x32xf32>
    %127 = vector.shape_cast %123 : vector<32x32xf32> to vector<1x32x32xf32>
    %128 = vector.shape_cast %124 : vector<32x32xf32> to vector<1x32x32xf32>
    %129 = vector.shape_cast %125 : vector<32x32xf32> to vector<1x32x32xf32>
    %130 = vector.shape_cast %126 : vector<32x32xf32> to vector<1x32x32xf32>
    %131 = tpu.concatenate %127, %128, %129, %130 in 0 : vector<1x32x32xf32>, vector<1x32x32xf32>, vector<1x32x32xf32>, vector<1x32x32xf32> -> vector<4x32x32xf32>
    %132 = vector.shape_cast %131 : vector<4x32x32xf32> to vector<8x16x32xf32>
    %133 = arith.truncf %132 : vector<8x16x32xf32> to vector<8x16x32xbf16>
    %134 = vector.extract_strided_slice %121 {offsets = [0, 0], sizes = [64, 32], strides = [1, 1]} : vector<64x128xf32> to vector<64x32xf32>
    %135 = vector.extract_strided_slice %121 {offsets = [0, 32], sizes = [64, 32], strides = [1, 1]} : vector<64x128xf32> to vector<64x32xf32>
    %136 = vector.extract_strided_slice %121 {offsets = [0, 64], sizes = [64, 32], strides = [1, 1]} : vector<64x128xf32> to vector<64x32xf32>
    %137 = vector.extract_strided_slice %121 {offsets = [0, 96], sizes = [64, 32], strides = [1, 1]} : vector<64x128xf32> to vector<64x32xf32>
    %138 = vector.shape_cast %134 : vector<64x32xf32> to vector<1x64x32xf32>
    %139 = vector.shape_cast %135 : vector<64x32xf32> to vector<1x64x32xf32>
    %140 = vector.shape_cast %136 : vector<64x32xf32> to vector<1x64x32xf32>
    %141 = vector.shape_cast %137 : vector<64x32xf32> to vector<1x64x32xf32>
    %142 = tpu.concatenate %138, %139, %140, %141 in 0 : vector<1x64x32xf32>, vector<1x64x32xf32>, vector<1x64x32xf32>, vector<1x64x32xf32> -> vector<4x64x32xf32>
    %143 = vector.shape_cast %142 : vector<4x64x32xf32> to vector<8x32x32xf32>
    %144 = arith.truncf %143 : vector<8x32x32xf32> to vector<8x32x32xbf16>
    %145 = vector.extract_strided_slice %122 {offsets = [0, 0], sizes = [64, 32], strides = [1, 1]} : vector<64x128xf32> to vector<64x32xf32>
    %146 = vector.extract_strided_slice %122 {offsets = [0, 32], sizes = [64, 32], strides = [1, 1]} : vector<64x128xf32> to vector<64x32xf32>
    %147 = vector.extract_strided_slice %122 {offsets = [0, 64], sizes = [64, 32], strides = [1, 1]} : vector<64x128xf32> to vector<64x32xf32>
    %148 = vector.extract_strided_slice %122 {offsets = [0, 96], sizes = [64, 32], strides = [1, 1]} : vector<64x128xf32> to vector<64x32xf32>
    %149 = vector.shape_cast %145 : vector<64x32xf32> to vector<1x64x32xf32>
    %150 = vector.shape_cast %146 : vector<64x32xf32> to vector<1x64x32xf32>
    %151 = vector.shape_cast %147 : vector<64x32xf32> to vector<1x64x32xf32>
    %152 = vector.shape_cast %148 : vector<64x32xf32> to vector<1x64x32xf32>
    %153 = tpu.concatenate %149, %150, %151, %152 in 0 : vector<1x64x32xf32>, vector<1x64x32xf32>, vector<1x64x32xf32>, vector<1x64x32xf32> -> vector<4x64x32xf32>
    %154 = vector.shape_cast %153 : vector<4x64x32xf32> to vector<8x32x32xf32>
    %155 = arith.truncf %154 : vector<8x32x32xf32> to vector<8x32x32xbf16>
    "tpu.trace_start"() <{level = 10 : i32, message = "bqd,bkd->bqk"}> : () -> ()
    %cst_41 = arith.constant dense<0.000000e+00> : vector<8x16x32xf32>
    %156 = tpu.matmul %133, %144, %cst_41 {dimension_numbers = #tpu.dot_dimension_numbers<[2], [2], [1], [1], [0, 0, 0, 1, 1, 1], [0], [0]>} : vector<8x16x32xbf16>, vector<8x32x32xbf16>, vector<8x16x32xf32> -> vector<8x16x32xf32>
    "tpu.trace_stop"() : () -> ()
    %cst_42 = arith.constant 0.176776692 : f32
    %157 = vector.broadcast %cst_42 : f32 to vector<8x16x32xf32>
    %158 = arith.mulf %156, %157 : vector<8x16x32xf32>
    %cst_43 = arith.constant dense<0xFF800000> : vector<8x16xf32>
    %159 = vector.multi_reduction <maximumf>, %158, %cst_43 [2] : vector<8x16x32xf32> to vector<8x16xf32>
    %160 = vector.shape_cast %159 : vector<8x16xf32> to vector<8x16x1xf32>
    %161 = vector.broadcast %160 : vector<8x16x1xf32> to vector<8x16x32xf32>
    %162 = arith.subf %158, %161 : vector<8x16x32xf32>
    %163 = math.exp %162 : vector<8x16x32xf32>
    %cst_44 = arith.constant dense<0.000000e+00> : vector<8x16xf32>
    %164 = vector.multi_reduction <add>, %163, %cst_44 [2] : vector<8x16x32xf32> to vector<8x16xf32>
    %165 = vector.shape_cast %164 : vector<8x16xf32> to vector<8x16x1xf32>
    %166 = tpu.reciprocal %165 {approx = true} : vector<8x16x1xf32> -> vector<8x16x1xf32>
    %167 = vector.broadcast %166 : vector<8x16x1xf32> to vector<8x16x32xf32>
    %168 = arith.mulf %163, %167 : vector<8x16x32xf32>
    %169 = arith.truncf %168 : vector<8x16x32xf32> to vector<8x16x32xbf16>
    "tpu.trace_start"() <{level = 10 : i32, message = "bqk,bkd->bqd"}> : () -> ()
    %cst_45 = arith.constant dense<0.000000e+00> : vector<8x16x32xf32>
    %170 = tpu.matmul %169, %155, %cst_45 {dimension_numbers = #tpu.dot_dimension_numbers<[2], [1], [1], [2], [0, 0, 0, 1, 1, 2], [0], [0]>} : vector<8x16x32xbf16>, vector<8x32x32xbf16>, vector<8x16x32xf32> -> vector<8x16x32xf32>
    "tpu.trace_stop"() : () -> ()
    %171 = vector.extract_strided_slice %170 {offsets = [0, 0, 0], sizes = [2, 16, 32], strides = [1, 1, 1]} : vector<8x16x32xf32> to vector<2x16x32xf32>
    %172 = vector.extract_strided_slice %170 {offsets = [2, 0, 0], sizes = [2, 16, 32], strides = [1, 1, 1]} : vector<8x16x32xf32> to vector<2x16x32xf32>
    %173 = vector.extract_strided_slice %170 {offsets = [4, 0, 0], sizes = [2, 16, 32], strides = [1, 1, 1]} : vector<8x16x32xf32> to vector<2x16x32xf32>
    %174 = vector.extract_strided_slice %170 {offsets = [6, 0, 0], sizes = [2, 16, 32], strides = [1, 1, 1]} : vector<8x16x32xf32> to vector<2x16x32xf32>
    %175 = tpu.concatenate %171, %172, %173, %174 in 2 : vector<2x16x32xf32>, vector<2x16x32xf32>, vector<2x16x32xf32>, vector<2x16x32xf32> -> vector<2x16x128xf32>
    %176 = vector.shape_cast %175 : vector<2x16x128xf32> to vector<32x128xf32>
    %177 = arith.truncf %176 : vector<32x128xf32> to vector<32x128xbf16>
    %c0_46 = arith.constant 0 : index
    %c0_47 = arith.constant 0 : index
    %178 = vector.load %arg12[%c0_46, %c0_47] : memref<128x128xbf16, #tpu.memory_space<vmem>>, vector<128x128xbf16>
    %cst_48 = arith.constant dense<0.000000e+00> : vector<32x128xf32>
    %179 = tpu.matmul %177, %178, %cst_48 {dimension_numbers = #tpu.dot_dimension_numbers<[1], [0], [0], [1], [0, 0, 1, 1], [], []>} : vector<32x128xbf16>, vector<128x128xbf16>, vector<32x128xf32> -> vector<32x128xf32>
    %180 = arith.addf %92, %179 : vector<32x128xf32>
    %c0_49 = arith.constant 0 : index
    %c0_50 = arith.constant 0 : index
    %181 = vector.load %arg13[%c0_49, %c0_50] : memref<1x128xf32, #tpu.memory_space<vmem>>, vector<1x128xf32>
    %182 = vector.broadcast %181 : vector<1x128xf32> to vector<32x128xf32>
    %183 = arith.addf %180, %182 : vector<32x128xf32>
    %c0_51 = arith.constant 0 : index
    %c0_52 = arith.constant 0 : index
    %184 = vector.load %arg14[%c0_51, %c0_52] : memref<1x128xf32, #tpu.memory_space<vmem>>, vector<1x128xf32>
    %c0_53 = arith.constant 0 : index
    %c0_54 = arith.constant 0 : index
    %185 = vector.load %arg15[%c0_53, %c0_54] : memref<1x128xf32, #tpu.memory_space<vmem>>, vector<1x128xf32>
    %cst_55 = arith.constant dense<0.000000e+00> : vector<32xf32>
    %186 = vector.multi_reduction <add>, %183, %cst_55 [1] : vector<32x128xf32> to vector<32xf32>
    %187 = vector.shape_cast %186 : vector<32xf32> to vector<32x1xf32>
    %cst_56 = arith.constant 1.280000e+02 : f32
    %188 = vector.broadcast %cst_56 : f32 to vector<32x1xf32>
    %189 = arith.divf %187, %188 : vector<32x1xf32>
    %190 = vector.broadcast %189 : vector<32x1xf32> to vector<32x128xf32>
    %191 = arith.subf %183, %190 : vector<32x128xf32>
    %192 = arith.mulf %191, %191 : vector<32x128xf32>
    %cst_57 = arith.constant dense<0.000000e+00> : vector<32xf32>
    %193 = vector.multi_reduction <add>, %192, %cst_57 [1] : vector<32x128xf32> to vector<32xf32>
    %194 = vector.shape_cast %193 : vector<32xf32> to vector<32x1xf32>
    %cst_58 = arith.constant 1.280000e+02 : f32
    %195 = vector.broadcast %cst_58 : f32 to vector<32x1xf32>
    %196 = arith.divf %194, %195 : vector<32x1xf32>
    %cst_59 = arith.constant 9.99999974E-6 : f32
    %197 = vector.broadcast %cst_59 : f32 to vector<32x1xf32>
    %198 = arith.addf %196, %197 : vector<32x1xf32>
    %199 = math.rsqrt %198 : vector<32x1xf32>
    %200 = vector.broadcast %199 : vector<32x1xf32> to vector<32x128xf32>
    %201 = arith.mulf %191, %200 : vector<32x128xf32>
    %202 = vector.broadcast %184 : vector<1x128xf32> to vector<32x128xf32>
    %203 = arith.mulf %201, %202 : vector<32x128xf32>
    %204 = vector.broadcast %185 : vector<1x128xf32> to vector<32x128xf32>
    %205 = arith.addf %203, %204 : vector<32x128xf32>
    %206 = arith.truncf %205 : vector<32x128xf32> to vector<32x128xbf16>
    %c0_60 = arith.constant 0 : index
    %c0_61 = arith.constant 0 : index
    %207 = vector.load %arg16[%c0_60, %c0_61] : memref<128x512xbf16, #tpu.memory_space<vmem>>, vector<128x512xbf16>
    %cst_62 = arith.constant dense<0.000000e+00> : vector<32x512xf32>
    %208 = tpu.matmul %206, %207, %cst_62 {dimension_numbers = #tpu.dot_dimension_numbers<[1], [0], [0], [1], [0, 0, 1, 1], [], []>} : vector<32x128xbf16>, vector<128x512xbf16>, vector<32x512xf32> -> vector<32x512xf32>
    %c0_63 = arith.constant 0 : index
    %c0_64 = arith.constant 0 : index
    %209 = vector.load %arg17[%c0_63, %c0_64] : memref<1x512xf32, #tpu.memory_space<vmem>>, vector<1x512xf32>
    %210 = vector.broadcast %209 : vector<1x512xf32> to vector<32x512xf32>
    %211 = arith.addf %208, %210 : vector<32x512xf32>
    %cst_65 = arith.constant 5.000000e-01 : f32
    %212 = vector.broadcast %cst_65 : f32 to vector<32x512xf32>
    %213 = arith.mulf %212, %211 : vector<32x512xf32>
    %cst_66 = arith.constant 4.471500e-02 : f32
    %214 = vector.broadcast %cst_66 : f32 to vector<32x512xf32>
    %215 = arith.mulf %214, %211 : vector<32x512xf32>
    %216 = arith.mulf %215, %211 : vector<32x512xf32>
    %217 = arith.mulf %216, %211 : vector<32x512xf32>
    %218 = arith.addf %211, %217 : vector<32x512xf32>
    %cst_67 = arith.constant 0.797884583 : f32
    %219 = vector.broadcast %cst_67 : f32 to vector<32x512xf32>
    %220 = arith.mulf %219, %218 : vector<32x512xf32>
    %221 = math.tanh %220 : vector<32x512xf32>
    %cst_68 = arith.constant 1.000000e+00 : f32
    %222 = vector.broadcast %cst_68 : f32 to vector<32x512xf32>
    %223 = arith.addf %222, %221 : vector<32x512xf32>
    %224 = arith.mulf %213, %223 : vector<32x512xf32>
    %225 = arith.truncf %224 : vector<32x512xf32> to vector<32x512xbf16>
    %c0_69 = arith.constant 0 : index
    %c0_70 = arith.constant 0 : index
    %226 = vector.load %arg18[%c0_69, %c0_70] : memref<512x128xbf16, #tpu.memory_space<vmem>>, vector<512x128xbf16>
    %cst_71 = arith.constant dense<0.000000e+00> : vector<32x128xf32>
    %227 = tpu.matmul %225, %226, %cst_71 {dimension_numbers = #tpu.dot_dimension_numbers<[1], [0], [0], [1], [0, 0, 1, 1], [], []>} : vector<32x512xbf16>, vector<512x128xbf16>, vector<32x128xf32> -> vector<32x128xf32>
    %228 = arith.addf %183, %227 : vector<32x128xf32>
    %c0_72 = arith.constant 0 : index
    %c0_73 = arith.constant 0 : index
    %229 = vector.load %arg19[%c0_72, %c0_73] : memref<1x128xf32, #tpu.memory_space<vmem>>, vector<1x128xf32>
    %230 = vector.broadcast %229 : vector<1x128xf32> to vector<32x128xf32>
    %231 = arith.addf %228, %230 : vector<32x128xf32>
    %232 = vector.shape_cast %231 : vector<32x128xf32> to vector<2x16x128xf32>
    %c0_74 = arith.constant 0 : index
    %c0_75 = arith.constant 0 : index
    %c0_76 = arith.constant 0 : index
    %233 = vector.load %arg20[%c0_74, %c0_75, %c0_76] : memref<2x16x128xf32, #tpu.memory_space<vmem>>, vector<2x16x128xf32>
    tpu.vector_store %arg20[%c0_74, %c0_75, %c0_76], %232 {strides = array<i32>} : memref<2x16x128xf32, #tpu.memory_space<vmem>>, vector<2x16x128xf32>,
    return
  }
  func.func @transform_0(%arg0: i32) -> (i32, i32, i32) {
    %c0_i32 = arith.constant 0 : i32
    %c0_i32_0 = arith.constant 0 : i32
    %c0_i32_1 = arith.constant 0 : i32
    return %arg0, %c0_i32, %c0_i32_0 : i32, i32, i32
  }
  func.func @transform_1(%arg0: i32) -> (i32, i32, i32) {
    %c0_i32 = arith.constant 0 : i32
    %c0_i32_0 = arith.constant 0 : i32
    %c0_i32_1 = arith.constant 0 : i32
    return %arg0, %c0_i32, %c0_i32_0 : i32, i32, i32
  }
  func.func @transform_2(%arg0: i32) -> (i32, i32) {
    %c0_i32 = arith.constant 0 : i32
    %c0_i32_0 = arith.constant 0 : i32
    %c0_i32_1 = arith.constant 0 : i32
    return %c0_i32, %c0_i32_0 : i32, i32
  }
  func.func @transform_3(%arg0: i32) -> (i32, i32) {
    %c0_i32 = arith.constant 0 : i32
    %c0_i32_0 = arith.constant 0 : i32
    %c0_i32_1 = arith.constant 0 : i32
    return %c0_i32, %c0_i32_0 : i32, i32
  }
  func.func @transform_4(%arg0: i32) -> (i32, i32) {
    %c0_i32 = arith.constant 0 : i32
    %c0_i32_0 = arith.constant 0 : i32
    %c0_i32_1 = arith.constant 0 : i32
    return %c0_i32, %c0_i32_0 : i32, i32
  }
  func.func @transform_5(%arg0: i32) -> (i32, i32) {
    %c0_i32 = arith.constant 0 : i32
    %c0_i32_0 = arith.constant 0 : i32
    %c0_i32_1 = arith.constant 0 : i32
    return %c0_i32, %c0_i32_0 : i32, i32
  }
  func.func @transform_6(%arg0: i32) -> (i32, i32) {
    %c0_i32 = arith.constant 0 : i32
    %c0_i32_0 = arith.constant 0 : i32
    %c0_i32_1 = arith.constant 0 : i32
    return %c0_i32, %c0_i32_0 : i32, i32
  }
  func.func @transform_7(%arg0: i32) -> (i32, i32) {
    %c0_i32 = arith.constant 0 : i32
    %c0_i32_0 = arith.constant 0 : i32
    %c0_i32_1 = arith.constant 0 : i32
    return %c0_i32, %c0_i32_0 : i32, i32
  }
  func.func @transform_8(%arg0: i32) -> (i32, i32) {
    %c0_i32 = arith.constant 0 : i32
    %c0_i32_0 = arith.constant 0 : i32
    %c0_i32_1 = arith.constant 0 : i32
    return %c0_i32, %c0_i32_0 : i32, i32
  }
  func.func @transform_9(%arg0: i32) -> (i32, i32) {
    %c0_i32 = arith.constant 0 : i32
    %c0_i32_0 = arith.constant 0 : i32
    %c0_i32_1 = arith.constant 0 : i32
    return %c0_i32, %c0_i32_0 : i32, i32
  }
  func.func @transform_10(%arg0: i32) -> (i32, i32) {
    %c0_i32 = arith.constant 0 : i32
    %c0_i32_0 = arith.constant 0 : i32
    %c0_i32_1 = arith.constant 0 : i32
    return %c0_i32, %c0_i32_0 : i32, i32
  }
  func.func @transform_11(%arg0: i32) -> (i32, i32) {
    %c0_i32 = arith.constant 0 : i32
    %c0_i32_0 = arith.constant 0 : i32
    %c0_i32_1 = arith.constant 0 : i32
    return %c0_i32, %c0_i32_0 : i32, i32
  }
  func.func @transform_12(%arg0: i32) -> (i32, i32) {
    %c0_i32 = arith.constant 0 : i32
    %c0_i32_0 = arith.constant 0 : i32
    %c0_i32_1 = arith.constant 0 : i32
    return %c0_i32, %c0_i32_0 : i32, i32
  }
  func.func @transform_13(%arg0: i32) -> (i32, i32) {
    %c0_i32 = arith.constant 0 : i32
    %c0_i32_0 = arith.constant 0 : i32
    %c0_i32_1 = arith.constant 0 : i32
    return %c0_i32, %c0_i32_0 : i32, i32
  }
  func.func @transform_14(%arg0: i32) -> (i32, i32) {
    %c0_i32 = arith.constant 0 : i32
    %c0_i32_0 = arith.constant 0 : i32
    %c0_i32_1 = arith.constant 0 : i32
    return %c0_i32, %c0_i32_0 : i32, i32
  }
  func.func @transform_15(%arg0: i32) -> (i32, i32) {
    %c0_i32 = arith.constant 0 : i32
    %c0_i32_0 = arith.constant 0 : i32
    %c0_i32_1 = arith.constant 0 : i32
    return %c0_i32, %c0_i32_0 : i32, i32
  }
  func.func @transform_16(%arg0: i32) -> (i32, i32) {
    %c0_i32 = arith.constant 0 : i32
    %c0_i32_0 = arith.constant 0 : i32
    %c0_i32_1 = arith.constant 0 : i32
    return %c0_i32, %c0_i32_0 : i32, i32
  }
  func.func @transform_17(%arg0: i32) -> (i32, i32) {
    %c0_i32 = arith.constant 0 : i32
    %c0_i32_0 = arith.constant 0 : i32
    %c0_i32_1 = arith.constant 0 : i32
    return %c0_i32, %c0_i32_0 : i32, i32
  }
  func.func @transform_18(%arg0: i32) -> (i32, i32) {
    %c0_i32 = arith.constant 0 : i32
    %c0_i32_0 = arith.constant 0 : i32
    %c0_i32_1 = arith.constant 0 : i32
    return %c0_i32, %c0_i32_0 : i32, i32
  }
  func.func @transform_19(%arg0: i32) -> (i32, i32, i32) {
    %c0_i32 = arith.constant 0 : i32
    %c0_i32_0 = arith.constant 0 : i32
    %c0_i32_1 = arith.constant 0 : i32
    return %arg0, %c0_i32, %c0_i32_0 : i32, i32, i32
  }
}

</mosaic_0001>

<bundles_post_ra>
// kernel: tpu_custom_call.1
= control target key start
LH: loop header
LB: loop body
LE: loop exit
PB: predicated region body
PF: predicated region fallthrough
CT: control target
= control target key end

     0   :  { %s8494_s0 = inlined_call_operand.hbm [shape: f32[4,16,128], index: 0, kind: input, shape index: {}]   ;;  %s8495_s1 = inlined_call_operand.hbm [shape: f32[4,32,128], index: 1, kind: input, shape index: {}]   ;;  %s8496_s2 = inlined_call_operand.vmem [shape: f32[1,128], index: 2, kind: input, shape index: {}]   ;;  %s8497_s3 = inlined_call_operand.vmem [shape: f32[1,128], index: 3, kind: input, shape index: {}]   ;;  %s8498_s4 = inlined_call_operand.hbm [shape: bf16[128,384], index: 4, kind: input, shape index: {}]   ;;  %s8499_s5 = inlined_call_operand.hbm [shape: bf16[128,128], index: 5, kind: input, shape index: {}]   ;;  %s8500_s6 = inlined_call_operand.vmem [shape: f32[1,128], index: 6, kind: input, shape index: {}]   ;;  %s8501_s7 = inlined_call_operand.vmem [shape: f32[1,128], index: 7, kind: input, shape index: {}]   ;;  %s8502_s8 = inlined_call_operand.vmem [shape: f32[1,128], index: 8, kind: input, shape index: {}]   ;;  %s8503_s9 = inlined_call_operand.hbm [shape: bf16[128,128], index: 9, kind: input, shape index: {}]   ;;  %s8504_s10 = inlined_call_operand.hbm [shape: bf16[128,256], index: 10, kind: input, shape index: {}]   ;;  %s8505_s11 = inlined_call_operand.hbm [shape: bf16[128,128], index: 11, kind: input, shape index: {}]   ;;  %s8506_s12 = inlined_call_operand.vmem [shape: f32[1,128], index: 12, kind: input, shape index: {}]   ;;  %s8507_s13 = inlined_call_operand.vmem [shape: f32[1,128], index: 13, kind: input, shape index: {}]   ;;  %s8508_s14 = inlined_call_operand.vmem [shape: f32[1,128], index: 14, kind: input, shape index: {}]   ;;  %s8509_s15 = inlined_call_operand.hbm [shape: bf16[128,512], index: 15, kind: input, shape index: {}]   ;;  %s8510_s16 = inlined_call_operand.vmem [shape: f32[1,512], index: 16, kind: input, shape index: {}]   ;;  %s8511_s17 = inlined_call_operand.hbm [shape: bf16[512,128], index: 17, kind: input, shape index: {}]   ;;  %s8512_s18 = inlined_call_operand.vmem [shape: f32[1,128], index: 18, kind: input, shape index: {}]   ;;  %s8513_s19 = inlined_call_operand.hbm [shape: f32[4,16,128], index: 19, kind: output, shape index: {}]  }
   0x1   :  { %8533 = sst [smem:[#allocation29_spill]] %s8494_s0 }
   0x2   :  { %8534 = sst [smem:[#allocation30_spill]] %s8495_s1 }
   0x3   :  { %8535 = sst [smem:[#allocation31_spill]] %s8496_s2 }
   0x4   :  { %8536 = sst [smem:[#allocation32_spill]] %s8497_s3 }
   0x5   :  { %8537 = sst [smem:[#allocation33_spill]] %s8498_s4 }
   0x6   :  { %8538 = sst [smem:[#allocation34_spill]] %s8499_s5 }
   0x7   :  { %8539 = sst [smem:[#allocation35_spill]] %s8503_s9 }
   0x8   :  { %8540 = sst [smem:[#allocation36_spill]] %s8504_s10 }
   0x9   :  { %8541 = sst [smem:[#allocation37_spill]] %s8505_s11 }
   0xa   :  { %8542 = sst [smem:[#allocation38_spill]] %s8509_s15 }
   0xb   :  { %8543 = sst [smem:[#allocation39_spill]] %s8510_s16 }
   0xc   :  { %8544 = sst [smem:[#allocation40_spill]] %s8511_s17 }
   0xd   :  { %8545 = sst [smem:[#allocation41_spill]] %s8512_s18 }
   0xe   :  { %8546 = sst [smem:[#allocation42_spill]] %s8513_s19 }
   0xf   :  { %24 = vsyncpa [#allocation3], 0 }
  0x10   :  { %26 = vsyncpa [#allocation3 + $0x1], 0 }
  0x11   :  { %27 = vsyncpa [#allocation6], 0 }
  0x12   :  { %29 = vsyncpa [#allocation6 + $0x1], 0 }
  0x13   :  { %30 = vsyncpa [#allocation9], 0 }
  0x14   :  { %31 = vsyncpa [#allocation12], 0 }
  0x15   :  { %32 = vsyncpa [#allocation15], 0 }
  0x16   :  { %33 = vsyncpa [#allocation4], 0 }
  0x17   :  { %35 = vsyncpa [#allocation4 + $0x1], 0  ;;  %s7129_s0 = smov 0   ;;  %s7131_s30 = smov 0  }
  0x18   :  { %s7133_s20 = smov 0   ;;  %s7135_s21 = smov 0  }
  0x19 LB: > { %8547 = sst [smem:[#allocation25_spill]] %s6997_s20  ;;  %s7003_s1 = smov [#allocation7]   ;;  %s7001_s21 = sphi %s7135_s21, %s8591_s21   ;;  %s6997_s20 = sphi %s7133_s20, %s8593_s20   ;;  %s6993_s30 = sphi %s7131_s30, %s8595_s30   ;;  %s6989_s0 = sphi %s7129_s0, %s8594_s0  }
  0x1a   : > { %s499_s22 = sshll.u32 %s7003_s1, 4  ;;  %s7150_s2 = sadd.s32 4294967295, %s7001_s21   ;;  %s500_s22 = int_to_ptr.vmem [resolvable:$true] %s499_s22 }
  0x1b   : > { %p5204_p0 = scmp.ge.s32.totalorder %s7001_s21, 1  ;;  %p8525_p1 = scmp.eq.s32.totalorder %s7150_s2, 0 }
  0x1c   : > { %p481_p2 = scmp.lt.s32.totalorder %s7001_s21, 3  ;;  %s7004_s24 = smov [#allocation8]  }
  0x1d   : > { %s512_s25 = sshll.u32 %s7004_s24, 4  ;;  %s7005_s26 = smov [#allocation11]   ;;  %s7168_s25 = int_to_ptr.vmem [resolvable:$true] %s512_s25 }
  0x1e   : > { %p7155_p3 = pnand %p5204_p0, %p481_p2  ;;  %s7170_s27 = sshll.u32 %s7005_s26, 4  ;;  %s548_s27 = int_to_ptr.vmem [resolvable:$true] %s7170_s27 }
  0x1f   : > { %s6690_s29 = scalar_lea.vmem %s500_s22, 3072  ;;  %p6698_p11 = scmp.lt.s32.totalorder %s500_s22, %s500_s22 }
  0x20   : > { %p5927_p5 = pneg %p7155_p3  ;;  %p6691_p8 = scmp.ne.s32.totalorder %s500_s22, %s6690_s29 }
  0x21   : > { %p6699_p12 = scmp.lt.s32.totalorder %s6690_s29, %s6690_s29 }
  0x22   : > { %p7164_p6 = pnand %p5927_p5, %p8525_p1 }
  0x23   : > { %p6700_p13 = por %p6699_p12, %p6698_p11 }
  0x24   : > { %p7174_p7 = pneg %p7164_p6 }
  0x26   : > { %p6693_p9 = pnand %p6691_p8, %p7174_p7 }
  0x28   : > { %p6694_p10 = pneg %p6693_p9 }
  0x2a   : > { %p6701_p0 = pnand %p6700_p13, %p6694_p10 }
  0x2c   : > { %6704 = shalt.err (!%p6701_p0)
}
  0x2d   : > { %s7006_s1 = smov 192   ;;  %s7007_s24 = smov 12  }
  0x2e   : > { %s8551_s4 = sld [smem:[#allocation33_spill]]  ;;  %s6716_s18 = scalar_lea.vmem %s7168_s25, 1024 }
  0x2f   : > { %p6717_p2 = scmp.ne.s32.totalorder %s7168_s25, %s6716_s18  ;;  %p6724_p9 = scmp.lt.s32.totalorder %s7168_s25, %s7168_s25 }
  0x30   : > { %p6725_p10 = scmp.lt.s32.totalorder %s6716_s18, %s6716_s18 }
  0x31   : > { %p6719_p5 = pnand %p6717_p2, %p7174_p7 }
  0x32   : > { %p6726_p11 = por %p6725_p10, %p6724_p9 }
  0x33   : > { %p6720_p8 = pneg %p6719_p5 }
  0x34   : > { %5930 = dma.hbm_to_vmem [thread:$0]  (!%p7164_p6), %s8551_s4, 3072, %s500_s22, [#allocation6], %s7006_s1, %s7006_s1, %s7007_s24  }
  0x35   : > { %p6727_p12 = pnand %p6726_p11, %p6720_p8 }
  0x37   : > { %6730 = shalt.err (!%p6727_p12)
}
  0x38   : > { %s8517_s29 = smov 64   ;;  %s8519_s16 = smov 4  }
  0x39   : > { %s8552_s5 = sld [smem:[#allocation34_spill]]  ;;  %s6742_s1 = scalar_lea.vmem %s548_s27, 2048 }
  0x3a   : > { %p6743_p13 = scmp.ne.s32.totalorder %s548_s27, %s6742_s1  ;;  %p6750_p5 = scmp.lt.s32.totalorder %s548_s27, %s548_s27 }
  0x3b   : > { %p6751_p8 = scmp.lt.s32.totalorder %s6742_s1, %s6742_s1 }
  0x3c   : > { %p6745_p0 = pnand %p6743_p13, %p7174_p7 }
  0x3d   : > { %p6752_p9 = por %p6751_p8, %p6750_p5 }
  0x3e   : > { %p6746_p2 = pneg %p6745_p0 }
  0x3f   : > { %5933 = dma.hbm_to_vmem [thread:$0]  (!%p7164_p6), %s8552_s5, 1024, %s7168_s25, [#allocation9], %s8517_s29, %s8517_s29, %s8519_s16  }
  0x40   : > { %p6753_p10 = pnand %p6752_p9, %p6746_p2 }
  0x42   : > { %6756 = shalt.err (!%p6753_p10)
}
  0x43   : > { %s8521_s18 = smov 128   ;;  %s8523_s24 = smov 8  }
  0x44   : > { %s8553_s10 = sld [smem:[#allocation36_spill]]  ;;  %s7012_s19 = smov [#allocation14]  }
  0x45   : > { %s582_s22 = sshll.u32 %s7012_s19, 4  ;;  %s583_s22 = int_to_ptr.vmem [resolvable:$true] %s582_s22 }
  0x46   : > { %s6768_s29 = scalar_lea.vmem %s583_s22, 4096  ;;  %p6776_p0 = scmp.lt.s32.totalorder %s583_s22, %s583_s22 }
  0x47   : > { %p6769_p11 = scmp.ne.s32.totalorder %s583_s22, %s6768_s29  ;;  %p6777_p2 = scmp.lt.s32.totalorder %s6768_s29, %s6768_s29 }
  0x49   : > { %p6771_p12 = pnand %p6769_p11, %p7174_p7  ;;  %p6778_p5 = por %p6777_p2, %p6776_p0 }
  0x4a   : > { %5939 = dma.hbm_to_vmem [thread:$0]  (!%p7164_p6), %s8553_s10, 2048, %s548_s27, [#allocation12], %s8521_s18, %s8521_s18, %s8523_s24  }
  0x4b   : > { %p6772_p13 = pneg %p6771_p12 }
  0x4d   : > { %p6779_p8 = pnand %p6778_p5, %p6772_p13 }
  0x4f   : > { %6782 = shalt.err (!%p6779_p8)
}
  0x50   : > { %s7013_s1 = smov 256   ;;  %s7014_s16 = smov 16  }
  0x51   : > { %s8554_s15 = sld [smem:[#allocation38_spill]]  ;;  %s7015_s26 = smov [#allocation10]  }
  0x52   : > { %s534_s19 = sshll.u32 %s7015_s26, 4  ;;  %s7016_s18 = smov [#allocation13]   ;;  %s535_s19 = int_to_ptr.vmem [resolvable:$true] %s534_s19 }
  0x53   : > { %s560_s24 = sshll.u32 %s7016_s18, 4  ;;  %s6794_s4 = scalar_lea.vmem %s535_s19, 1024  ;;  %s561_s24 = int_to_ptr.vmem [resolvable:$true] %s560_s24 }
  0x54   : > { %p6795_p9 = scmp.ne.s32.totalorder %s535_s19, %s6794_s4  ;;  %p6802_p12 = scmp.lt.s32.totalorder %s535_s19, %s535_s19 }
  0x55   : > { %p6803_p13 = scmp.lt.s32.totalorder %s6794_s4, %s6794_s4 }
  0x56   : > { %p6797_p10 = pnand %p6795_p9, %p7174_p7 }
  0x57   : > { %5945 = dma.hbm_to_vmem [thread:$0]  (!%p7164_p6), %s8554_s15, 4096, %s583_s22, [#allocation15], %s7013_s1, %s7013_s1, %s7014_s16  }
  0x58   : > { %p6798_p11 = pneg %p6797_p10  ;;  %p6804_p0 = por %p6803_p13, %p6802_p12 }
  0x5a   : > { %p6805_p2 = pnand %p6804_p0, %p6798_p11 }
  0x5c   : > { %6808 = shalt.err (!%p6805_p2)
}
  0x5d   : > { %s8555_s29 = smov 4   ;;  %s8556_s16 = smov 64  }
  0x5e   : > { %s8557_s9 = sld [smem:[#allocation35_spill]]  ;;  %s6820_s18 = scalar_lea.vmem %s561_s24, 1024 }
  0x5f   : > { %p6821_p5 = scmp.ne.s32.totalorder %s561_s24, %s6820_s18  ;;  %p6828_p10 = scmp.lt.s32.totalorder %s561_s24, %s561_s24 }
  0x60   : > { %p6829_p4 = scmp.lt.s32.totalorder %s6820_s18, %s6820_s18 }
  0x61   : > { %p6823_p8 = pnand %p6821_p5, %p7174_p7 }
  0x62   : > { %p6830_p12 = por %p6829_p4, %p6828_p10 }
  0x63   : > { %p6824_p9 = pneg %p6823_p8 }
  0x64   : > { %5936 = dma.hbm_to_vmem [thread:$0]  (!%p7164_p6), %s8557_s9, 1024, %s535_s19, [#allocation9], %s8556_s16, %s8556_s16, %s8555_s29  }
  0x65   : > { %p6831_p11 = pnand %p6830_p12, %p6824_p9 }
  0x67   : > { %6834 = shalt.err (!%p6831_p11)
}
  0x68   : > { %s8558_s11 = sld [smem:[#allocation37_spill]]  ;;  %s7017_s27 = smov [#allocation16]  }
  0x69   : > { %s598_s26 = sshll.u32 %s7017_s27, 4  ;;  %s599_s26 = int_to_ptr.vmem [resolvable:$true] %s598_s26 }
  0x6a   : > { %s6846_s19 = scalar_lea.vmem %s599_s26, 4096  ;;  %p6854_p2 = scmp.lt.s32.totalorder %s599_s26, %s599_s26 }
  0x6b   : > { %p6847_p13 = scmp.ne.s32.totalorder %s599_s26, %s6846_s19  ;;  %p6855_p5 = scmp.lt.s32.totalorder %s6846_s19, %s6846_s19 }
  0x6d   : > { %p6849_p0 = pnand %p6847_p13, %p7174_p7  ;;  %p6856_p8 = por %p6855_p5, %p6854_p2 }
  0x6e   : > { %5942 = dma.hbm_to_vmem [thread:$0]  (!%p7164_p6), %s8558_s11, 1024, %s561_s24, [#allocation12], %s8556_s16, %s8556_s16, %s8555_s29  }
  0x6f   : > { %p6850_p4 = pneg %p6849_p0 }
  0x71   : > { %p6857_p9 = pnand %p6856_p8, %p6850_p4 }
  0x73   : > { %6860 = shalt.err (!%p6857_p9)
}
  0x74   : > { %s8559_s17 = sld [smem:[#allocation40_spill]]  ;;  %s5203_s3 = sadd.s32 4294967294, %s7001_s21  }
  0x75   : > { %s7250_s28 = sadd.s32 1, %s7001_s21   ;;  %s48_s1 = sadd.s32 1, %s6997_s20 }
  0x76   : > { %8560 = sst [smem:[#allocation26_spill]] %s7250_s28  ;;  %s45_s18 = ssub.s32 %s7001_s21, %s7250_s28 }
  0x77   : > { %p55_p7 = scmp.ne.s32.totalorder %s6997_s20, %s6993_s30  ;;  %p46_p10 = scmp.eq.s32.totalorder %s45_s18, 0 }
  0x78   : > { %p56_p12 = scmp.eq.s32.totalorder %s7001_s21, 0  ;;  %p61_p11 = scmp.ne.s32.totalorder %s6993_s30, %s6989_s0 }
  0x79   : > { %p468_p13 = scmp.eq.s32.totalorder %s7150_s2, 1  ;;  %p474_p2 = scmp.eq.s32.totalorder %s5203_s3, 1 }
  0x7a   : > { %5948 = dma.hbm_to_vmem [thread:$0]  (!%p7164_p6), %s8559_s17, 4096, %s599_s26, [#allocation15], %s8556_s16, %s8556_s16, %s8555_s29  }
  0x7b   : > { %s7262_s4 = scalar_select %p46_p10, %s6997_s20, %s48_s1  }
  0x7c   : > { %p57_p0 = por %p56_p12, %p55_p7  ;;  %p7266_p4 = por %p8525_p1, %p61_p11 }
  0x7d   : > { %8561 = sst [smem:[#allocation27_spill]] %s7262_s4  ;;  %p7270_p6 = por %p468_p13, %p55_p7 }
  0x7e   : > { %s8562_s29 = scalar_select %p7266_p4, 1, 0 }
  0x7f   : > { %s8563_s16 = scalar_select %p7270_p6, 1, 0 }
  0x80   : > { %p5967_p5 = scmp.lt.s32.totalorder %s7001_s21, 2  ;;  %s7276_s25 = sand.u32 1, %s6997_s20  }
  0x81   : > { %p7278_p8 = por %p474_p2, %p61_p11  ;;  %s5213_s26 = sshll.u32 %s7276_s25, 5 }
  0x82   : > { %s5408_s19 = sshll.u32 %s7001_s21, 9  ;;  %s8566_s1 = sld [smem:[#allocation29_spill]] }
  0x83   : > { %s8564_s27 = scalar_select %p7278_p8, 1, 0 }
  0x84   : > { %s619_s3 = scalar_lea.vmem [#allocation2], %s5213_s26  ;;  %p7289_p9 = pnand %p5967_p5, %p57_p0 }
  0x85   : > { %8565 = sst [smem:[#allocation28_spill]] %s8564_s27  ;;  %s627_s5 = sshll.u32 %s619_s3, 4  ;;  %s7293_s5 = int_to_ptr.vmem [resolvable:$true] %s627_s5 }
  0x86   : > { %p6863_p10 = pneg %p7289_p9 }
  0x88   : > { %s7287_s18 = scalar_lea.hbm %s8566_s1, %s5408_s19  ;;  %s6866_s22 = scalar_lea.hbm %s8566_s1, 1024 }
  0x89   : > { %s6861_s15 = scalar_lea.hbm %s7287_s18, 512  ;;  %p6867_p13 = scmp.lt.s32.totalorder %s7287_s18, %s8566_s1 }
  0x8a   : > { %p6862_p7 = scmp.ne.s32.totalorder %s7287_s18, %s6861_s15  ;;  %p6868_p0 = scmp.lt.s32.totalorder %s6866_s22, %s6861_s15 }
  0x8c   : > { %p6864_p12 = pnand %p6863_p10, %p6862_p7  ;;  %p6869_p2 = por %p6868_p0, %p6867_p13 }
  0x8e   : > { %p6865_p11 = pneg %p6864_p12 }
  0x90   : > { %p6870_p5 = pnand %p6869_p2, %p6865_p11 }
  0x92   : > { %6873 = shalt.err (!%p6870_p5)
}
  0x93   : > { %s6874_s10 = scalar_lea.vmem %s7293_s5, 512  ;;  %s7018_s26 = smov [#allocation2]  }
  0x94   : > { %p6875_p1 = scmp.ne.s32.totalorder %s7293_s5, %s6874_s10  ;;  %s6879_s19 = sshll.u32 %s7018_s26, 4  ;;  %s6880_s19 = int_to_ptr.vmem [resolvable:$false] %s6879_s19 }
  0x95   : > { %s6881_s11 = scalar_lea.vmem %s6880_s19, 1024  ;;  %p6882_p8 = scmp.lt.s32.totalorder %s7293_s5, %s6880_s19 }
  0x96   : > { %p6877_p7 = pnand %p6875_p1, %p6863_p10  ;;  %p6883_p6 = scmp.lt.s32.totalorder %s6881_s11, %s6874_s10 }
  0x98   : > { %p6878_p12 = pneg %p6877_p7  ;;  %p6884_p4 = por %p6883_p6, %p6882_p8 }
  0x9a   : > { %p6885_p13 = pnand %p6884_p4, %p6878_p12 }
  0x9c   : > { %6888 = shalt.err (!%p6885_p13)
}
  0x9d   : > { %s8568_s15 = smov 8   ;;  %s8569_s22 = smov 128  }
  0x9e   : > { %s8570_s24 = scalar_lea.sflag [#allocation3], %s7276_s25  ;;  %s5217_s3 = sshll.u32 %s7276_s25, 6 }
  0x9f   : > { %5952 = dma.hbm_to_vmem [thread:$0]  (!%p7289_p9), %s7287_s18, 512, %s7293_s5, %s8570_s24, %s8569_s22, %s8569_s22, %s8568_s15  }
  0xa0   : > { %s5410_s26 = sshll.u32 %s7001_s21, 10  ;;  %s8571_s19 = sld [smem:[#allocation30_spill]] }
  0xa1   : > { %s641_s17 = scalar_lea.vmem [#allocation5], %s5217_s3  ;;  %s8572_s20 = sand.u32 1, %s7001_s21  }
  0xa2   : > { %s649_s4 = sshll.u32 %s641_s17, 4  ;;  %s638_s28 = scalar_lea.sflag [#allocation6], %s8572_s20  ;;  %s7333_s4 = int_to_ptr.vmem [resolvable:$true] %s649_s4 }
  0xa6   : > { %s7331_s1 = scalar_lea.hbm %s8571_s19, %s5410_s26  ;;  %s6894_s18 = scalar_lea.hbm %s8571_s19, 2048 }
  0xa7   : > { %s6889_s27 = scalar_lea.hbm %s7331_s1, 1024  ;;  %p6895_p8 = scmp.lt.s32.totalorder %s7331_s1, %s8571_s19 }
  0xa8   : > { %p6890_p1 = scmp.ne.s32.totalorder %s7331_s1, %s6889_s27  ;;  %p6896_p11 = scmp.lt.s32.totalorder %s6894_s18, %s6889_s27 }
  0xaa   : > { %p6892_p4 = pnand %p6890_p1, %p6863_p10  ;;  %p6897_p0 = por %p6896_p11, %p6895_p8 }
  0xac   : > { %p6893_p6 = pneg %p6892_p4 }
  0xae   : > { %p6898_p2 = pnand %p6897_p0, %p6893_p6 }
  0xb0   : > { %6901 = shalt.err (!%p6898_p2)
}
  0xb1   : > { %s6902_s17 = scalar_lea.vmem %s7333_s4, 1024  ;;  %s7019_s20 = smov [#allocation5]  }
  0xb2   : > { %p6903_p5 = scmp.ne.s32.totalorder %s7333_s4, %s6902_s17  ;;  %s6907_s3 = sshll.u32 %s7019_s20, 4  ;;  %s6908_s3 = int_to_ptr.vmem [resolvable:$false] %s6907_s3 }
  0xb3   : > { %s6909_s10 = scalar_lea.vmem %s6908_s3, 2048  ;;  %p6910_p13 = scmp.lt.s32.totalorder %s7333_s4, %s6908_s3 }
  0xb4   : > { %p6905_p7 = pnand %p6903_p5, %p6863_p10  ;;  %p6911_p1 = scmp.lt.s32.totalorder %s6909_s10, %s6902_s17 }
  0xb6   : > { %p6906_p12 = pneg %p6905_p7  ;;  %p6912_p4 = por %p6911_p1, %p6910_p13 }
  0xb8   : > { %p6913_p8 = pnand %p6912_p4, %p6906_p12 }
  0xba   : > { %6916 = shalt.err (!%p6913_p8)
}
  0xbb   : > { %5955 = dma.hbm_to_vmem [thread:$0]  (!%p7289_p9), %s7331_s1, 1024, %s7333_s4, %s638_s28, %s8569_s22, %s8569_s22, %s8568_s15  }
  0xbc   : > { %661 = sbr.rel (%p7155_p3) target bundleno = 4487 (0x1187), region = 96  ;;  %s7365_s27 = sand.u32 (!%p7155_p3), 1, %s6993_s30  }
  0xbd   : > { %s5222_s11 = sshll.u32 (!%p7155_p3), %s7365_s27, 5  ;;  %s664_s5 = scalar_lea.sflag (!%p7155_p3), [#allocation3], %s7365_s27 }
  0xbe   : > { %s7371_s9 = scalar_lea.vmem (!%p7155_p3), [#allocation2], %s5222_s11  ;;  %p8573_p10 = scmp.ne.s32.totalorder (!%p7155_p3), %s8562_s29, 0 }
  0xc1   : > { %6960 = dma.done.wait (%p8573_p10), %s664_s5, 512  }
  0xc2   : > { %6962 = vsyncadd (%p8573_p10), %s664_s5, 4294966784  ;;  %s672_s23 = sand.u32 1, %s7150_s2   ;;  %s5223_s28 = sshll.u32 %s7365_s27, 6 }
  0xc3   : > { %s673_s4 = scalar_lea.sflag [#allocation6], %s672_s23  ;;  %s7379_s1 = scalar_lea.vmem [#allocation5], %s5223_s28 }
  0xc4   : > { %6964 = dma.done.wait (%p8573_p10), %s673_s4, 1024  }
  0xc5   : > { %6966 = vsyncadd (%p8573_p10), %s673_s4, 4294966272  ;;  %p8574_p3 = scmp.eq.s32.totalorder %s7150_s2, 0 }
  0xc7   : > { %6968 = dma.done.wait (%p8574_p3), [#allocation6], 3072   ;;  %p8575_p9 = pmov %p8574_p3 }
  0xc8   : > { %p8576_p6 = pmov %p8574_p3 }
  0xc9   : > { %6970 = vsyncadd (%p8575_p9), [#allocation6], 4294964224 }
  0xca   : > { %6972 = dma.done.wait (%p8576_p6), [#allocation9], 2048   ;;  %p8577_p11 = pmov %p8574_p3 }
  0xcb   : > { %p8578_p0 = pmov %p8574_p3 }
  0xcc   : > { %6974 = vsyncadd (%p8577_p11), [#allocation9], 4294965248 }
  0xcd   : > { %6976 = dma.done.wait (%p8578_p0), [#allocation12], 3072   ;;  %p8579_p2 = pmov %p8578_p0 }
  0xce   : > { %p8580_p5 = pmov %p8578_p0 }
  0xcf   : > { %6978 = vsyncadd (%p8579_p2), [#allocation12], 4294964224 }
  0xd0   : > { %6980 = dma.done.wait (%p8580_p5), [#allocation15], 8192   ;;  %p8581_p7 = pmov %p8578_p0 }
  0xd1   : > { %v768_v0 = vld [vmem:[%s7371_s9] sm:$0xff]  ;;  %v770_v1 = vld [vmem:[%s7371_s9 + $0x10] sm:$0xff]  ;;  %v769_v2 = vld [vmem:[%s7371_s9 + $0x8] sm:$0xff]  ;;  %v7020_v39 = vmov 0   ;;  %s8582_s22 = sld [smem:[#allocation31_spill]]  ;;  %vm7022_vm0 = vmmov 0  }
  0xd2   : > { %6982 = vsyncadd (%p8581_p7), [#allocation15], 4294959104  ;;  %782 = vadd.xlane.f32.xlu0 %v768_v0  ;;  %786 = vadd.xlane.f32.xlu1 %v770_v1  ;;  %v771_v3 = vld [vmem:[%s7371_s9 + $0x18] sm:$0xff]  ;;  %v6333_v5 = vld [vmem:[#allocation7 + $0xa8] ss:$12 sps:$4 sm:$0xff]   ;;  %s8583_s24 = sld [smem:[#allocation32_spill]] }
  0xd3   : > { %v6331_v4 = vld [vmem:[#allocation7 + $0xac] ss:$12 sps:$4 sm:$0xff]   ;;  %v6334_v22 = vld [vmem:[#allocation7 + $0x94] ss:$12 sps:$4 sm:$0xff]   ;;  %v6336_v23 = vld [vmem:[#allocation7 + $0xb0] ss:$12 sps:$4 sm:$0xff]   ;;  %1041 = vmatprep.mubr.bf16.mxu0 %v7020_v39 }
  0xd4   : > { %1009 = vmatprep.subr.bf16.mxu0 %v6331_v4  ;;  %v6337_v24 = vld [vmem:[#allocation7 + $0x90] ss:$12 sps:$4 sm:$0xff]   ;;  %5589 = vmatprep.subr.bf16.mxu1 %v6336_v23  ;;  %v6340_v26 = vld [vmem:[#allocation7 + $0x98] ss:$12 sps:$4 sm:$0xff]   ;;  %v6344_v29 = vld [vmem:[#allocation7 + $0x80] ss:$12 sps:$4 sm:$0xff]  }
  0xd5   : > { %1010 = vmatpush1.bf16.msra.mxu0 %v6333_v5  ;;  %5590 = vmatpush3.bf16.msra.mxu1 %v6336_v23  ;;  %v6338_v25 = vld [vmem:[#allocation7 + $0x7c] ss:$12 sps:$4 sm:$0xff]   ;;  %v6341_v27 = vld [vmem:[#allocation7 + $0x78] ss:$12 sps:$4 sm:$0xff]   ;;  %v6345_v30 = vld [vmem:[#allocation7 + $0x60] ss:$12 sps:$4 sm:$0xff]  }
  0xd6   : > { %784 = vadd.xlane.f32.xlu0 %v769_v2  ;;  %788 = vadd.xlane.f32.xlu1 %v771_v3  ;;  %v6342_v28 = vld [vmem:[#allocation7 + $0x64] ss:$12 sps:$4 sm:$0xff]   ;;  %v6346_v31 = vld [vmem:[#allocation7 + $0x4c] ss:$12 sps:$4 sm:$0xff]   ;;  %v6348_v32 = vld [vmem:[#allocation7 + $0x68] ss:$12 sps:$4 sm:$0xff]  }
  0xd7   : > { %1011 = vmatprep.subr.bf16.mxu0 %v6334_v22  ;;  %5591 = vmatprep.subr.bf16.mxu1 %v6340_v26  ;;  %v6349_v33 = vld [vmem:[#allocation7 + $0x48] ss:$12 sps:$4 sm:$0xff]   ;;  %v6352_v35 = vld [vmem:[#allocation7 + $0x50] ss:$12 sps:$4 sm:$0xff]   ;;  %v6356_v38 = vld [vmem:[#allocation7 + $0x38] ss:$12 sps:$4 sm:$0xff]  }
  0xd8   : > { %v6350_v34 = vld [vmem:[#allocation7 + $0x34] ss:$12 sps:$4 sm:$0xff]   ;;  %v6353_v36 = vld [vmem:[#allocation7 + $0x30] ss:$12 sps:$4 sm:$0xff]   ;;  %v6357_v40 = vld [vmem:[#allocation7 + $0x18] ss:$12 sps:$4 sm:$0xff]  }
  0xd9   : > { %1012 = vmatpush1.bf16.msra.mxu0 %v6337_v24  ;;  %5592 = vmatpush3.bf16.msra.mxu1 %v6340_v26  ;;  %v6354_v37 = vld [vmem:[#allocation7 + $0x1c] ss:$12 sps:$4 sm:$0xff]   ;;  %v6358_v41 = vld [vmem:[#allocation7 + $0x4] ss:$12 sps:$4 sm:$0xff]   ;;  %v6360_v42 = vld [vmem:[#allocation7 + $0x20] ss:$12 sps:$4 sm:$0xff]  }
  0xda   : > { %1013 = vmatprep.subr.bf16.mxu0 %v6338_v25  ;;  %5593 = vmatprep.subr.bf16.mxu1 %v6344_v29  ;;  %v6361_v43 = vld [vmem:[#allocation7] ss:$12 sps:$4 sm:$0xff]   ;;  %v6362_v44 = vld [vmem:[#allocation7 + $0x8] ss:$12 sps:$4 sm:$0xff]   ;;  %vm1255_vm1 = vcmask 261120   ;;  %s7023_s26 = smov 96  }
  0xdb   : > { %v5232_v59 = vld [vmem:[%s8582_s22] ss:$0 sm:$0xff]  ;;  %s7024_s17 = smov 64   ;;  %s7025_s20 = smov 32   ;;  %vm1648_vm2 = vcmask 130048   ;;  %vm2237_vm3 = vcmask 523264  }
  0xdc   : > { %vm2242_vm4 = vcmask 785408   ;;  %s8585_s3 = sld [smem:[#allocation41_spill]]  ;;  %s763_s10 = scalar_lea.vmem [#allocation17], %s5222_s11 }
  0xdd   : > { %1014 = vmatpush1.bf16.msra.mxu0 %v6341_v27  ;;  %5594 = vmatpush3.bf16.msra.mxu1 %v6344_v29  ;;  %s5041_s11 = sshll.u32 %s763_s10, 4  ;;  %s5412_s5 = sshll.u32 %s7150_s2, 9  ;;  %s8445_s11 = int_to_ptr.vmem [resolvable:$true] %s5041_s11 }
  0xde   : > { %1015 = vmatprep.subr.bf16.mxu0 %v6342_v28  ;;  %5595 = vmatprep.subr.bf16.mxu1 %v6348_v32  ;;  %s8586_s28 = sld [smem:[#allocation42_spill]]  ;;  %s6917_s29 = scalar_lea.vmem %s8445_s11, 512 }
  0xdf   : > { %p6918_p12 = scmp.ne.s32.totalorder %s8445_s11, %s6917_s29  ;;  %p8587_p13 = scmp.ne.s32.totalorder %s8563_s16, 0 }
  0xe0   : > { %s7026_s2 = smov [#allocation17]  }
  0xe1   : > { %1016 = vmatpush1.bf16.msra.mxu0 %v6345_v30  ;;  %5596 = vmatpush3.bf16.msra.mxu1 %v6348_v32  ;;  %p6919_p1 = pnand %p6918_p12, %p8587_p13  ;;  %s6921_s15 = sshll.u32 %s7026_s2, 4  ;;  %s6922_s15 = int_to_ptr.vmem [resolvable:$false] %s6921_s15 }
  0xe2   : > { %1017 = vmatprep.subr.bf16.mxu0 %v6346_v31  ;;  %5597 = vmatprep.subr.bf16.mxu1 %v6352_v35  ;;  %s6923_s22 = scalar_lea.vmem %s6922_s15, 1024  ;;  %p6924_p8 = scmp.lt.s32.totalorder %s8445_s11, %s6922_s15 }
  0xe3   : > { %p6920_p4 = pneg %p6919_p1  ;;  %p6925_p10 = scmp.lt.s32.totalorder %s6923_s22, %s6917_s29 }
  0xe4   : > { %s8451_s4 = scalar_lea.hbm %s8586_s28, %s5412_s5 }
  0xe5   : > { %1018 = vmatpush1.bf16.msra.mxu0 %v6349_v33  ;;  %5598 = vmatpush3.bf16.msra.mxu1 %v6352_v35  ;;  %p6926_p3 = por %p6925_p10, %p6924_p8 }
  0xe6   : > { %1019 = vmatprep.subr.bf16.mxu0 %v6350_v34  ;;  %5599 = vmatprep.subr.bf16.mxu1 %v6356_v38 }
  0xe7   : > { %p6927_p9 = pnand %p6926_p3, %p6920_p4 }
  0xe9   : > { %1020 = vmatpush1.bf16.msra.mxu0 %v6353_v36  ;;  %5600 = vmatpush3.bf16.msra.mxu1 %v6356_v38 }
  0xea   : > { %1021 = vmatprep.subr.bf16.mxu0 %v6354_v37  ;;  %5601 = vmatprep.subr.bf16.mxu1 %v6360_v42 }
  0xed   : > { %1022 = vmatpush1.bf16.msra.mxu0 %v6357_v40  ;;  %5602 = vmatpush3.bf16.msra.mxu1 %v6360_v42 }
  0xee   : > { %1023 = vmatprep.subr.bf16.mxu0 %v6358_v41  ;;  %5603 = vmatprep.subr.bf16.mxu1 %v6362_v44 }
  0xf1   : > { %1024 = vmatpush1.bf16.msra.mxu0 %v6361_v43  ;;  %5604 = vmatpush3.bf16.msra.mxu1 %v6362_v44 }
 0x15b   : > { %v783_v6 = vpop.xlane.xlu0 %782  ;;  %v787_v7 = vpop.xlane.xlu1 %786 }
 0x15c   : > { %v791_v8 = vmul.f32 0.0078125, %v783_v6  ;;  %v793_v9 = vmul.f32 0.0078125, %v787_v7 }
 0x15e   : > { %v7405_v10 = vsub.f32 %v768_v0, %v791_v8  ;;  %v7407_v11 = vsub.f32 %v770_v1, %v793_v9  ;;  %v5233_v0 = vld [vmem:[%s8583_s24] ss:$0 sm:$0xff] }
 0x15f   : > { %v785_v12 = vpop.xlane.xlu0 %784  ;;  %v789_v13 = vpop.xlane.xlu1 %788 }
 0x160   : > { %v792_v14 = vmul.f32 0.0078125, %v785_v12  ;;  %v799_v15 = vmul.f32 %v7405_v10, %v7405_v10  ;;  %v794_v16 = vmul.f32 0.0078125, %v789_v13  ;;  %v801_v17 = vmul.f32 %v7407_v11, %v7407_v11 }
 0x162   : > { %803 = vadd.xlane.f32.xlu0 %v799_v15  ;;  %v7413_v18 = vsub.f32 %v769_v2, %v792_v14  ;;  %v7415_v19 = vsub.f32 %v771_v3, %v794_v16  ;;  %v7021_v14 = vmov 0.0  }
 0x163   : > { %5609 = vmatprep.subr.bf16.mxu0 %v7021_v14  ;;  %5621 = vmatprep.subr.bf16.mxu1 %v7021_v14 }
 0x164   : > { %v800_v20 = vmul.f32 %v7413_v18, %v7413_v18  ;;  %v802_v21 = vmul.f32 %v7415_v19, %v7415_v19 }
 0x166   : > { %807 = vadd.xlane.f32.xlu0 %v801_v17  ;;  %805 = vadd.xlane.f32.xlu1 %v800_v20 }
 0x16a   : > { %809 = vadd.xlane.f32.xlu1 %v802_v21 }
 0x1eb   : > { %v804_v45 = vpop.xlane.xlu0 %803 }
 0x1ec   : > { %v811_v46 = vmul.f32 0.0078125, %v804_v45 }
 0x1ee   : > { %v815_v47 = vadd.f32 1e-05, %v811_v46 }
 0x1ef   : > { %v806_v48 = vpop.xlane.xlu1 %805  ;;  %v808_v49 = vpop.xlane.xlu0 %807 }
 0x1f0   : > { %6491 = vrsqrt.f32 %v815_v47  ;;  %v812_v50 = vmul.f32 0.0078125, %v806_v48  ;;  %v813_v51 = vmul.f32 0.0078125, %v808_v49 }
 0x1f2   : > { %v816_v52 = vadd.f32 1e-05, %v812_v50  ;;  %v817_v53 = vadd.f32 1e-05, %v813_v51 }
 0x1f3   : > { %v810_v54 = vpop.xlane.xlu1 %809 }
 0x1f4   : > { %6493 = vrsqrt.f32 %v816_v52  ;;  %v814_v55 = vmul.f32 0.0078125, %v810_v54 }
 0x1f5   : > { %6495 = vrsqrt.f32 %v817_v53 }
 0x1f6   : > { %v818_v56 = vadd.f32 1e-05, %v814_v55 }
 0x1f8   : > { %6497 = vrsqrt.f32 %v818_v56 }
 0x1fd   : > { %v6492_v57 = vpop.eup %6491 }
 0x1fe   : > { %v823_v58 = vmul.f32 %v6492_v57, %v7405_v10 }
 0x200   : > { %v833_v63 = vmul.f32 %v5232_v59, %v823_v58 }
 0x201   : > { %v6494_v60 = vpop.eup %6493 }
 0x202   : > { %v6496_v61 = vpop.eup %6495  ;;  %v824_v62 = vmul.f32 %v6494_v60, %v7413_v18  ;;  %v843_v4 = vadd.f32 %v5233_v0, %v833_v63 }
 0x203   : > { %v825_v1 = vmul.f32 %v6496_v61, %v7407_v11 }
 0x204   : > { %v834_v2 = vmul.f32 %v5232_v59, %v824_v62 }
 0x205   : > { %v6498_v3 = vpop.eup %6497  ;;  %v835_v7 = vmul.f32 %v5232_v59, %v825_v1 }
 0x206   : > { %v844_v5 = vadd.f32 %v5233_v0, %v834_v2  ;;  %v826_v6 = vmul.f32 %v6498_v3, %v7415_v19 }
 0x207   : > { %v845_v10 = vadd.f32 %v5233_v0, %v835_v7 }
 0x208   : > { %v847_v8 = vpack.c.bf16 %v844_v5, %v843_v4  ;;  %v836_v9 = vmul.f32 %v5232_v59, %v826_v6 }
 0x20a   : > { %1042 = vmatmul.mubr.bf16.vlgmr.msra.gmra.mxu0 %v847_v8  ;;  %5605 = vmatprep.mubr.bf16.mxu1 %v847_v8  ;;  %v846_v12 = vadd.f32 %v5233_v0, %v836_v9 }
 0x20b   : > { %1051 = vmatprep.mubr.bf16.mxu0 %v7020_v39 }
 0x20c   : > { %v848_v13 = vpack.c.bf16 %v846_v12, %v845_v10 }
 0x20e   : > { %5606 = vmatmul.mubr.bf16.vlgmr.msra.gmra.mxu1 %v848_v13 }
 0x20f   : > { %5623 = vmatprep.mubr.msk.bf16.mxu1 %vm7022_vm0, %v7021_v14 }
 0x212   : > { %1052 = vmatmul.mubr.bf16.gmra.mxu0 %v848_v13 }
 0x213   : > { %5611 = vmatprep.mubr.msk.bf16.mxu0 %vm7022_vm0, %v7021_v14 }
 0x2ca   : > { %v1043_v11 = vpop.f32.mrf.mxu0 }
 0x2cc   : > { %v1045_v15 = vpop.f32.mrf.mxu0 }
 0x2ce   : > { %v1047_v16 = vpop.f32.mrf.mxu0  ;;  %v7439_v17 = vpop.f32.mrf.mxu1 }
 0x2cf   : > { %v6036_v18 = vpack.i.bf16 %v1047_v16, %v1043_v11  ;;  %v1151_v31 = vpack.c.bf16 %v1047_v16, %v1043_v11 }
 0x2d0   : > { %v1049_v19 = vpop.f32.mrf.mxu0  ;;  %v7441_v20 = vpop.f32.mrf.mxu1 }
 0x2d1   : > { %6037 = vrot.lane.b32.xlu1 %v6036_v18, %s7023_s26  ;;  %v6031_v21 = vpack.i.bf16 %v1049_v19, %v1045_v15  ;;  %v1199_v22 = vpack.c.bf16 %v1049_v19, %v1045_v15 }
 0x2d2   : > { %v1053_v23 = vpop.f32.mrf.mxu0  ;;  %v7444_v24 = vpop.f32.mrf.mxu1 }
 0x2d3   : > { %6032 = vrot.lane.b32.xlu0 %v6031_v21, %s7023_s26  ;;  %v1260_v25 = vsel %vm1255_vm1, %v1199_v22, 0  ;;  %v7450_v26 = vpack.i.bf16 %v7444_v24, %v7439_v17 }
 0x2d4   : > { %v1055_v27 = vpop.f32.mrf.mxu0  ;;  %5610 = vmatpush3.bf16.xpose.msra.mxu0 %v1260_v25 }
 0x2d5   : > { %5615 = vmatprep.subr.bf16.mxu0 %v7021_v14 }
 0x2d6   : > { %v1057_v28 = vpop.f32.mrf.mxu0 }
 0x2d7   : > { %v6051_v29 = vpack.i.bf16 %v1057_v28, %v1053_v23  ;;  %v1152_v35 = vpack.c.bf16 %v1057_v28, %v1053_v23 }
 0x2d8   : > { %v1059_v30 = vpop.f32.mrf.mxu0 }
 0x2d9   : > { %6052 = vrot.lane.b32.xlu0 %v6051_v29, %s7023_s26  ;;  %v6041_v32 = vpack.i.bf16 %v1059_v30, %v1055_v27  ;;  %v1200_v33 = vpack.c.bf16 %v1059_v30, %v1055_v27  ;;  %v7490_v27 = vpop.f32.mrf.mxu1 }
 0x2db   : > { %5612 = vmatmul.mubr.msk.bf16.vlgmr.msra.gmra.mxu0 %vm1255_vm1, %v1151_v31  ;;  %6042 = vrot.lane.b32.xlu1 %v6041_v32, %s7023_s26  ;;  %v1307_v34 = vsel %vm1255_vm1, %v1200_v33, 0 }
 0x2dc   : > { %5616 = vmatpush3.bf16.xpose.msra.mxu0 %v1307_v34  ;;  %5617 = vmatprep.mubr.msk.bf16.mxu0 %vm7022_vm0, %v7021_v14  ;;  %v1248_v34 = vpack.c.bf16 %v7444_v24, %v7439_v17 }
 0x2dd   : > { %6057 = vrot.lane.b32.xlu0 %v6036_v18, %s7024_s17  ;;  %5627 = vmatprep.subr.bf16.mxu0 %v7021_v14 }
 0x2df   : > { %6047 = vrot.lane.b32.xlu1 %v6031_v21, %s7024_s17 }
 0x2e1   : > { %6072 = vrot.lane.b32.xlu0 %v6051_v29, %s7024_s17 }
 0x2e3   : > { %6062 = vrot.lane.b32.xlu1 %v6041_v32, %s7024_s17  ;;  %5618 = vmatmul.mubr.msk.bf16.vlgmr.msra.gmra.mxu0 %vm1255_vm1, %v1152_v35 }
 0x2e4   : > { %5629 = vmatprep.mubr.msk.bf16.mxu0 %vm7022_vm0, %v7021_v14 }
 0x2e5   : > { %6082 = vrot.lane.b32.xlu0 %v6036_v18, %s7025_s20 }
 0x2e7   : > { %6067 = vrot.lane.b32.xlu1 %v6031_v21, %s7025_s20 }
 0x2eb   : > { %6077 = vrot.lane.b32.xlu1 %v6041_v32, %s7025_s20  ;;  %v1247_v32 = vpack.c.bf16 %v7490_v27, %v7441_v20 }
 0x2ef   : > { %6087 = vrot.lane.b32.xlu1 %v6051_v29, %s7025_s20 }
 0x343   : > { %v6038_v41 = vpop.permute.xlu1 %6037 }
 0x344   : > { %v6040_v44 = vunpack.i.h.bf16 %v6038_v41  ;;  %v6039_v45 = vunpack.i.l.bf16 %v6038_v41 }
 0x345   : > { %v6033_v36 = vpop.permute.xlu0 %6032 }
 0x346   : > { %v6035_v37 = vunpack.i.h.bf16 %v6033_v36  ;;  %v6034_v38 = vunpack.i.l.bf16 %v6033_v36  ;;  %v1153_v49 = vpack.c.bf16 %v6040_v44, %v6039_v45 }
 0x348   : > { %v1201_v40 = vpack.c.bf16 %v6035_v37, %v6034_v38 }
 0x34a   : > { %v1354_v42 = vsel %vm1255_vm1, %v1201_v40, 0 }
 0x34b   : > { %v6053_v43 = vpop.permute.xlu0 %6052  ;;  %5622 = vmatpush3.bf16.xpose.msra.mxu1 %v1354_v42 }
 0x34c   : > { %5633 = vmatprep.subr.bf16.mxu1 %v7021_v14  ;;  %v6055_v56 = vunpack.i.h.bf16 %v6053_v43  ;;  %v6054_v57 = vunpack.i.l.bf16 %v6053_v43 }
 0x34d   : > { %v6043_v46 = vpop.permute.xlu1 %6042 }
 0x34e   : > { %v6045_v47 = vunpack.i.h.bf16 %v6043_v46  ;;  %v6044_v48 = vunpack.i.l.bf16 %v6043_v46  ;;  %v1154_v0 = vpack.c.bf16 %v6055_v56, %v6054_v57 }
 0x34f   : > { %v6058_v51 = vpop.permute.xlu0 %6057 }
 0x350   : > { %v1202_v50 = vpack.c.bf16 %v6045_v47, %v6044_v48  ;;  %v6060_v1 = vunpack.i.h.bf16 %v6058_v51  ;;  %v6059_v2 = vunpack.i.l.bf16 %v6058_v51 }
 0x351   : > { %v6048_v52 = vpop.permute.xlu1 %6047 }
 0x352   : > { %v6050_v53 = vunpack.i.h.bf16 %v6048_v52  ;;  %v6049_v54 = vunpack.i.l.bf16 %v6048_v52  ;;  %5624 = vmatmul.mubr.msk.bf16.vlgmr.msra.gmra.mxu1 %vm1255_vm1, %v1153_v49  ;;  %v1401_v55 = vsel %vm1255_vm1, %v1202_v50, 0  ;;  %v1155_v8 = vpack.c.bf16 %v6060_v1, %v6059_v2 }
 0x353   : > { %5628 = vmatpush3.bf16.xpose.msra.mxu0 %v1401_v55  ;;  %5635 = vmatprep.mubr.msk.bf16.mxu1 %vm7022_vm0, %v7021_v14  ;;  %v6073_v63 = vpop.permute.xlu0 %6072 }
 0x354   : > { %v1203_v58 = vpack.c.bf16 %v6050_v53, %v6049_v54  ;;  %5639 = vmatprep.subr.bf16.mxu0 %v7021_v14  ;;  %v6075_v9 = vunpack.i.h.bf16 %v6073_v63  ;;  %v6074_v10 = vunpack.i.l.bf16 %v6073_v63 }
 0x355   : > { %v6063_v59 = vpop.permute.xlu1 %6062 }
 0x356   : > { %v6065_v60 = vunpack.i.h.bf16 %v6063_v59  ;;  %v6064_v61 = vunpack.i.l.bf16 %v6063_v59  ;;  %v1448_v62 = vsel %vm1255_vm1, %v1203_v58, 0  ;;  %v1156_v19 = vpack.c.bf16 %v6075_v9, %v6074_v10 }
 0x357   : > { %5634 = vmatpush3.bf16.xpose.msra.mxu1 %v1448_v62  ;;  %v6083_v13 = vpop.permute.xlu0 %6082 }
 0x358   : > { %v1204_v3 = vpack.c.bf16 %v6065_v60, %v6064_v61  ;;  %5645 = vmatprep.subr.bf16.mxu1 %v7021_v14  ;;  %v6085_v21 = vunpack.i.h.bf16 %v6083_v13  ;;  %v6084_v22 = vunpack.i.l.bf16 %v6083_v13 }
 0x359   : > { %v6068_v4 = vpop.permute.xlu1 %6067 }
 0x35a   : > { %v6070_v5 = vunpack.i.h.bf16 %v6068_v4  ;;  %v6069_v6 = vunpack.i.l.bf16 %v6068_v4  ;;  %5630 = vmatmul.mubr.msk.bf16.vlgmr.msra.gmra.mxu0 %vm1255_vm1, %v1154_v0  ;;  %v1495_v7 = vsel %vm1255_vm1, %v1204_v3, 0  ;;  %v1157_v29 = vpack.c.bf16 %v6085_v21, %v6084_v22 }
 0x35b   : > { %5640 = vmatpush3.bf16.xpose.msra.mxu0 %v1495_v7  ;;  %5641 = vmatprep.mubr.msk.bf16.mxu0 %vm7022_vm0, %v7021_v14 }
 0x35c   : > { %v1205_v12 = vpack.c.bf16 %v6070_v5, %v6069_v6  ;;  %5651 = vmatprep.subr.bf16.mxu0 %v7021_v14 }
 0x35d   : > { %v6078_v11 = vpop.permute.xlu1 %6077 }
 0x35e   : > { %v6080_v15 = vunpack.i.h.bf16 %v6078_v11  ;;  %v6079_v16 = vunpack.i.l.bf16 %v6078_v11  ;;  %5636 = vmatmul.mubr.msk.bf16.vlgmr.msra.gmra.mxu1 %vm1255_vm1, %v1155_v8  ;;  %v1542_v18 = vsel %vm1255_vm1, %v1205_v12, 0 }
 0x35f   : > { %5646 = vmatpush3.bf16.xpose.msra.mxu1 %v1542_v18  ;;  %5647 = vmatprep.mubr.msk.bf16.mxu1 %vm7022_vm0, %v7021_v14 }
 0x360   : > { %v1206_v23 = vpack.c.bf16 %v6080_v15, %v6079_v16  ;;  %5657 = vmatprep.subr.bf16.mxu1 %v7021_v14 }
 0x361   : > { %v6088_v25 = vpop.permute.xlu1 %6087 }
 0x362   : > { %5642 = vmatmul.mubr.msk.bf16.vlgmr.msra.gmra.mxu0 %vm1255_vm1, %v1156_v19  ;;  %v1589_v28 = vsel %vm1255_vm1, %v1206_v23, 0  ;;  %v6090_v30 = vunpack.i.h.bf16 %v6088_v25  ;;  %v6089_v31 = vunpack.i.l.bf16 %v6088_v25 }
 0x363   : > { %5652 = vmatpush3.bf16.xpose.msra.mxu0 %v1589_v28  ;;  %5653 = vmatprep.mubr.msk.bf16.mxu0 %vm7022_vm0, %v7021_v14 }
 0x364   : > { %5663 = vmatprep.subr.bf16.mxu0 %v7021_v14  ;;  %v1158_v33 = vpack.c.bf16 %v6090_v30, %v6089_v31 }
 0x366   : > { %5648 = vmatmul.mubr.msk.bf16.vlgmr.msra.gmra.mxu1 %vm1255_vm1, %v1157_v29 }
 0x367   : > { %5658 = vmatpush3.bf16.msra.mxu1 %v1247_v32  ;;  %5659 = vmatprep.mubr.msk.bf16.mxu1 %vm7022_vm0, %v7021_v14 }
 0x368   : > { %5669 = vmatprep.subr.bf16.mxu1 %v7021_v14 }
 0x36a   : > { %5654 = vmatmul.mubr.msk.bf16.vlgmr.msra.gmra.mxu0 %vm1255_vm1, %v1158_v33 }
 0x36b   : > { %5664 = vmatpush3.bf16.msra.mxu0 %v1248_v34  ;;  %5665 = vmatprep.mubr.msk.bf16.mxu0 %vm7022_vm0, %v7021_v14 }
 0x36c   : > { %5675 = vmatprep.subr.bf16.mxu0 %v7021_v14 }
 0x39b   : > { %v1296_v35 = vpop.f32.mrf.mxu0 }
 0x39c   : > { %v7509_v36 = vmul.f32 0.17677669, %v1296_v35 }
 0x39d   : > { %v5613_v37 = vpop.f32.mrf.mxu0 }
 0x39e   : > { %v1649_v38 = vsel %vm1648_vm2, %v7509_v36, -inf }
 0x39f   : > { %1650 = vmax.xlane.f32.xlu0 %v1649_v38  ;;  %v1299_v40 = vpop.f32.mrf.mxu0 }
 0x3a0   : > { %v7513_v41 = vmul.f32 0.17677669, %v1299_v40  ;;  %v7573_v40 = vpack.i.bf16 %v7490_v27, %v7441_v20 }
 0x3a1   : > { %v5614_v17 = vpop.f32.mrf.mxu0 }
 0x3a2   : > { %v1652_v24 = vsel %vm1648_vm2, %v7513_v41, -inf }
 0x3a3   : > { %1653 = vmax.xlane.f32.xlu1 %v1652_v24  ;;  %v1343_v42 = vpop.f32.mrf.mxu0 }
 0x3a4   : > { %v7517_v43 = vmul.f32 0.17677669, %v1343_v42 }
 0x3a5   : > { %v5619_v44 = vpop.f32.mrf.mxu0 }
 0x3a6   : > { %v1655_v45 = vsel %vm1648_vm2, %v7517_v43, -inf }
 0x3a7   : > { %1656 = vmax.xlane.f32.xlu0 %v1655_v45  ;;  %v1346_v46 = vpop.f32.mrf.mxu0 }
 0x3a8   : > { %v7521_v47 = vmul.f32 0.17677669, %v1346_v46 }
 0x3a9   : > { %v5620_v48 = vpop.f32.mrf.mxu0 }
 0x3aa   : > { %v1658_v49 = vsel %vm1648_vm2, %v7521_v47, -inf }
 0x3ab   : > { %1659 = vmax.xlane.f32.xlu0 %v1658_v49 }
 0x412   : > { %v1390_v50 = vpop.f32.mrf.mxu1 }
 0x413   : > { %v7525_v51 = vmul.f32 0.17677669, %v1390_v50 }
 0x414   : > { %v5625_v52 = vpop.f32.mrf.mxu1 }
 0x415   : > { %v1661_v53 = vsel %vm1648_vm2, %v7525_v51, -inf }
 0x416   : > { %1662 = vmax.xlane.f32.xlu0 %v1661_v53  ;;  %v1393_v54 = vpop.f32.mrf.mxu1 }
 0x417   : > { %v7529_v55 = vmul.f32 0.17677669, %v1393_v54 }
 0x418   : > { %v5626_v56 = vpop.f32.mrf.mxu1 }
 0x419   : > { %v1664_v57 = vsel %vm1648_vm2, %v7529_v55, -inf }
 0x41a   : > { %v1437_v58 = vpop.f32.mrf.mxu0  ;;  %1665 = vmax.xlane.f32.xlu1 %v1664_v57 }
 0x41b   : > { %v7533_v59 = vmul.f32 0.17677669, %v1437_v58 }
 0x41c   : > { %v5631_v60 = vpop.f32.mrf.mxu0 }
 0x41d   : > { %v1667_v61 = vsel %vm1648_vm2, %v7533_v59, -inf }
 0x41e   : > { %v1440_v62 = vpop.f32.mrf.mxu0  ;;  %1668 = vmax.xlane.f32.xlu0 %v1667_v61  ;;  %v1484_v63 = vpop.f32.mrf.mxu1 }
 0x41f   : > { %v7537_v0 = vmul.f32 0.17677669, %v1440_v62  ;;  %v7539_v1 = vmul.f32 0.17677669, %v1484_v63 }
 0x420   : > { %v5632_v2 = vpop.f32.mrf.mxu0  ;;  %v5637_v3 = vpop.f32.mrf.mxu1 }
 0x421   : > { %v1670_v4 = vsel %vm1648_vm2, %v7537_v0, -inf  ;;  %v1673_v5 = vsel %vm1648_vm2, %v7539_v1, -inf }
 0x422   : > { %v1531_v6 = vpop.f32.mrf.mxu0  ;;  %1671 = vmax.xlane.f32.xlu1 %v1670_v4  ;;  %1674 = vmax.xlane.f32.xlu0 %v1673_v5  ;;  %v1487_v7 = vpop.f32.mrf.mxu1 }
 0x423   : > { %v7545_v8 = vmul.f32 0.17677669, %v1531_v6  ;;  %v7547_v9 = vmul.f32 0.17677669, %v1487_v7 }
 0x424   : > { %v5638_v10 = vpop.f32.mrf.mxu1  ;;  %v5643_v12 = vpop.f32.mrf.mxu0 }
 0x425   : > { %v1679_v13 = vsel %vm1648_vm2, %v7545_v8, -inf  ;;  %v1676_v11 = vsel %vm1648_vm2, %v7547_v9, -inf }
 0x426   : > { %v1534_v15 = vpop.f32.mrf.mxu0  ;;  %1680 = vmax.xlane.f32.xlu0 %v1679_v13  ;;  %1677 = vmax.xlane.f32.xlu1 %v1676_v11  ;;  %v1578_v16 = vpop.f32.mrf.mxu1 }
 0x427   : > { %v7553_v18 = vmul.f32 0.17677669, %v1534_v15  ;;  %v7555_v19 = vmul.f32 0.17677669, %v1578_v16 }
 0x428   : > { %v5644_v21 = vpop.f32.mrf.mxu0  ;;  %v5649_v22 = vpop.f32.mrf.mxu1 }
 0x429   : > { %v1682_v23 = vsel %vm1648_vm2, %v7553_v18, -inf  ;;  %v1685_v25 = vsel %vm1648_vm2, %v7555_v19, -inf  ;;  %v1651_v17 = vpop.xlane.xlu0 %1650 }
 0x42a   : > { %v1625_v28 = vpop.f32.mrf.mxu0  ;;  %1683 = vmax.xlane.f32.xlu1 %v1682_v23  ;;  %1686 = vmax.xlane.f32.xlu0 %v1685_v25  ;;  %v1581_v30 = vpop.f32.mrf.mxu1  ;;  %v1697_v24 = vsub.f32 %v7509_v36, %v1651_v17 }
 0x42b   : > { %v7561_v29 = vmul.f32 0.17677669, %v1625_v28  ;;  %v7563_v31 = vmul.f32 0.17677669, %v1581_v30 }
 0x42c   : > { %v5655_v32 = vpop.f32.mrf.mxu0  ;;  %v5650_v33 = vpop.f32.mrf.mxu1  ;;  %v1713_v44 = vmul.f32 1.442695, %v1697_v24 }
 0x42d   : > { %v1691_v34 = vsel %vm1648_vm2, %v7561_v29, -inf  ;;  %v1688_v37 = vsel %vm1648_vm2, %v7563_v31, -inf  ;;  %v1654_v50 = vpop.xlane.xlu1 %1653 }
 0x42e   : > { %v1628_v35 = vpop.f32.mrf.mxu0  ;;  %1692 = vmax.xlane.f32.xlu0 %v1691_v34  ;;  %1689 = vmax.xlane.f32.xlu1 %v1688_v37  ;;  %6499 = vpow2.f32 %v1713_v44  ;;  %v1698_v52 = vsub.f32 %v7513_v41, %v1654_v50 }
 0x42f   : > { %v7587_v49 = vmul.f32 0.17677669, %v1628_v35 }
 0x430   : > { %v5656_v38 = vpop.f32.mrf.mxu0  ;;  %v1657_v42 = vpop.xlane.xlu0 %1656  ;;  %v1715_v54 = vmul.f32 1.442695, %v1698_v52 }
 0x431   : > { %v1699_v45 = vsub.f32 %v7517_v43, %v1657_v42  ;;  %v1694_v43 = vsel %vm1648_vm2, %v7587_v49, -inf }
 0x433   : > { %v1717_v46 = vmul.f32 1.442695, %v1699_v45 }
 0x434   : > { %v1660_v53 = vpop.xlane.xlu0 %1659 }
 0x435   : > { %6501 = vpow2.f32 %v1717_v46  ;;  %v1700_v56 = vsub.f32 %v7521_v47, %v1660_v53 }
 0x436   : > { %6503 = vpow2.f32 %v1715_v54 }
 0x437   : > { %v1719_v57 = vmul.f32 1.442695, %v1700_v56 }
 0x439   : > { %6505 = vpow2.f32 %v1719_v57 }
 0x43b   : > { %v7581_v48 = vpop.eup %6499 }
 0x43c   : > { %v1745_v20 = vsel %vm1648_vm2, %v7581_v48, 0.0 }
 0x43f   : > { %6097 = vrot.lane.b32.xlu1 %v7450_v26, %s7023_s26 }
 0x442   : > { %v7585_v27 = vpop.eup %6501 }
 0x443   : > { %6102 = vrot.lane.b32.xlu1 %v7573_v40, %s7024_s17  ;;  %v1751_v36 = vsel %vm1648_vm2, %v7585_v27, 0.0  ;;  %v7597_v58 = vpop.eup %6503 }
 0x444   : > { %6092 = vrot.lane.b32.xlu0 %v7573_v40, %s7023_s26  ;;  %v1748_v60 = vsel %vm1648_vm2, %v7597_v58, 0.0 }
 0x446   : > { %v7601_v61 = vpop.eup %6505 }
 0x447   : > { %v1754_v41 = vsel %vm1648_vm2, %v7601_v61, 0.0 }
 0x463   : > { %1746 = vadd.xlane.f32.xlu0 %v1745_v20 }
 0x467   : > { %1752 = vadd.xlane.f32.xlu0 %v1751_v36  ;;  %1695 = vmax.xlane.f32.xlu1 %v1694_v43 }
 0x478   : > { %6107 = vrot.lane.b32.xlu1 %v7450_v26, %s7024_s17 }
 0x49c   : > { %1749 = vadd.xlane.f32.xlu1 %v1748_v60 }
 0x49f   : > { %v1663_v62 = vpop.xlane.xlu0 %1662 }
 0x4a0   : > { %v1701_v63 = vsub.f32 %v7525_v51, %v1663_v62  ;;  %1755 = vadd.xlane.f32.xlu1 %v1754_v41 }
 0x4a2   : > { %v1721_v2 = vmul.f32 1.442695, %v1701_v63 }
 0x4a3   : > { %v1666_v47 = vpop.xlane.xlu1 %1665 }
 0x4a4   : > { %6507 = vpow2.f32 %v1721_v2  ;;  %v1702_v3 = vsub.f32 %v7529_v55, %v1666_v47 }
 0x4a6   : > { %v1723_v4 = vmul.f32 1.442695, %v1702_v3 }
 0x4a7   : > { %v1669_v5 = vpop.xlane.xlu0 %1668 }
 0x4a8   : > { %6509 = vpow2.f32 %v1723_v4  ;;  %v1703_v6 = vsub.f32 %v7533_v59, %v1669_v5 }
 0x4aa   : > { %v1725_v7 = vmul.f32 1.442695, %v1703_v6 }
 0x4ab   : > { %v1672_v10 = vpop.xlane.xlu1 %1671  ;;  %v1675_v12 = vpop.xlane.xlu0 %1674 }
 0x4ac   : > { %6511 = vpow2.f32 %v1725_v7  ;;  %v1704_v51 = vsub.f32 %v7537_v0, %v1672_v10  ;;  %v1705_v13 = vsub.f32 %v7539_v1, %v1675_v12 }
 0x4ae   : > { %v1727_v11 = vmul.f32 1.442695, %v1704_v51  ;;  %v1729_v15 = vmul.f32 1.442695, %v1705_v13 }
 0x4af   : > { %v1681_v16 = vpop.xlane.xlu0 %1680  ;;  %v1678_v21 = vpop.xlane.xlu1 %1677 }
 0x4b0   : > { %6513 = vpow2.f32 %v1727_v11  ;;  %v1707_v55 = vsub.f32 %v7545_v8, %v1681_v16  ;;  %v1706_v22 = vsub.f32 %v7547_v9, %v1678_v21 }
 0x4b1   : > { %v7612_v23 = vpop.eup %6507  ;;  %6515 = vpow2.f32 %v1729_v15 }
 0x4b2   : > { %v1733_v59 = vmul.f32 1.442695, %v1707_v55  ;;  %v1731_v25 = vmul.f32 1.442695, %v1706_v22  ;;  %v1757_v28 = vsel %vm1648_vm2, %v7612_v23, 0.0 }
 0x4b3   : > { %v1684_v0 = vpop.xlane.xlu1 %1683  ;;  %1758 = vadd.xlane.f32.xlu0 %v1757_v28  ;;  %v1687_v1 = vpop.xlane.xlu0 %1686 }
 0x4b4   : > { %6517 = vpow2.f32 %v1733_v59  ;;  %v1708_v30 = vsub.f32 %v7553_v18, %v1684_v0  ;;  %v1709_v32 = vsub.f32 %v7555_v19, %v1687_v1 }
 0x4b5   : > { %v7618_v33 = vpop.eup %6509  ;;  %6519 = vpow2.f32 %v1731_v25 }
 0x4b6   : > { %v1735_v8 = vmul.f32 1.442695, %v1708_v30  ;;  %v1737_v9 = vmul.f32 1.442695, %v1709_v32  ;;  %v1760_v34 = vsel %vm1648_vm2, %v7618_v33, 0.0 }
 0x4b7   : > { %v1693_v35 = vpop.xlane.xlu0 %1692  ;;  %1761 = vadd.xlane.f32.xlu1 %v1760_v34  ;;  %v1690_v38 = vpop.xlane.xlu1 %1689 }
 0x4b8   : > { %6521 = vpow2.f32 %v1735_v8  ;;  %v1711_v37 = vsub.f32 %v7561_v29, %v1693_v35  ;;  %v1710_v18 = vsub.f32 %v7563_v31, %v1690_v38 }
 0x4b9   : > { %v7623_v17 = vpop.eup %6511  ;;  %6523 = vpow2.f32 %v1737_v9 }
 0x4ba   : > { %v1741_v19 = vmul.f32 1.442695, %v1711_v37  ;;  %v1763_v24 = vsel %vm1648_vm2, %v7623_v17, 0.0  ;;  %v1739_v42 = vmul.f32 1.442695, %v1710_v18 }
 0x4bb   : > { %1764 = vadd.xlane.f32.xlu0 %v1763_v24  ;;  %v6098_v63 = vpop.permute.xlu1 %6097  ;;  %v6093_v6 = vpop.permute.xlu0 %6092 }
 0x4bc   : > { %6525 = vpow2.f32 %v1741_v19  ;;  %v6095_v11 = vunpack.i.h.bf16 %v6093_v6  ;;  %v6094_v15 = vunpack.i.l.bf16 %v6093_v6  ;;  %v6100_v25 = vunpack.i.h.bf16 %v6098_v63 }
 0x4bd   : > { %v7628_v44 = vpop.eup %6513  ;;  %6527 = vpow2.f32 %v1739_v42  ;;  %v6099_v28 = vunpack.i.l.bf16 %v6098_v63 }
 0x4be   : > { %v7630_v45 = vpop.eup %6515  ;;  %v1766_v29 = vsel %vm1648_vm2, %v7628_v44, 0.0  ;;  %v1249_v59 = vpack.c.bf16 %v6095_v11, %v6094_v15 }
 0x4bf   : > { %v1769_v46 = vsel %vm1648_vm2, %v7630_v45, 0.0  ;;  %1767 = vadd.xlane.f32.xlu1 %v1766_v29  ;;  %v7662_v41 = vpop.permute.xlu1 %6102 }
 0x4c0   : > { %1770 = vadd.xlane.f32.xlu0 %v1769_v46  ;;  %v6105_v38 = vunpack.i.h.bf16 %v7662_v41  ;;  %v6104_v18 = vunpack.i.l.bf16 %v7662_v41 }
 0x4c1   : > { %v7636_v31 = vpop.eup %6517 }
 0x4c2   : > { %v7638_v20 = vpop.eup %6519  ;;  %v1775_v36 = vsel %vm1648_vm2, %v7636_v31, 0.0 }
 0x4c3   : > { %v1772_v43 = vsel %vm1648_vm2, %v7638_v20, 0.0 }
 0x4c4   : > { %1776 = vadd.xlane.f32.xlu0 %v1775_v36  ;;  %1773 = vadd.xlane.f32.xlu1 %v1772_v43  ;;  %v1251_v36 = vpack.c.bf16 %v6105_v38, %v6104_v18 }
 0x4c5   : > { %v7644_v50 = vpop.eup %6521 }
 0x4c6   : > { %v7646_v52 = vpop.eup %6523  ;;  %v1778_v53 = vsel %vm1648_vm2, %v7644_v50, 0.0 }
 0x4c7   : > { %v1781_v54 = vsel %vm1648_vm2, %v7646_v52, 0.0 }
 0x4c8   : > { %1782 = vadd.xlane.f32.xlu0 %v1781_v54  ;;  %1779 = vadd.xlane.f32.xlu1 %v1778_v53 }
 0x4c9   : > { %v7652_v56 = vpop.eup %6525 }
 0x4ca   : > { %v7654_v57 = vpop.eup %6527  ;;  %v1787_v60 = vsel %vm1648_vm2, %v7652_v56, 0.0 }
 0x4cb   : > { %v1784_v62 = vsel %vm1648_vm2, %v7654_v57, 0.0 }
 0x4cc   : > { %1788 = vadd.xlane.f32.xlu0 %v1787_v60  ;;  %1785 = vadd.xlane.f32.xlu1 %v1784_v62 }
 0x4e2   : > { %6112 = vrot.lane.b32.xlu0 %v7573_v40, %s7025_s20 }
 0x4ec   : > { %v1747_v7 = vpop.xlane.xlu0 %1746 }
 0x4f0   : > { %v1696_v2 = vpop.xlane.xlu1 %1695  ;;  %v1753_v10 = vpop.xlane.xlu0 %1752 }
 0x4f1   : > { %v1712_v47 = vsub.f32 %v7587_v49, %v1696_v2 }
 0x4f3   : > { %v1743_v3 = vmul.f32 1.442695, %v1712_v47 }
 0x4f4   : > { %v7671_v40 = vpop.permute.xlu1 %6107 }
 0x4f5   : > { %6529 = vpow2.f32 %v1743_v3  ;;  %v6109_v60 = vunpack.i.l.bf16 %v7671_v40 }
 0x4f6   : > { %6531 = vrcp.f32 %v1747_v7 }
 0x502   : > { %v7665_v4 = vpop.eup %6529 }
 0x503   : > { %v1790_v5 = vsel %vm1648_vm2, %v7665_v4, 0.0  ;;  %v6532_v51 = vpop.eup %6531 }
 0x504   : > { %1791 = vadd.xlane.f32.xlu1 %v1790_v5  ;;  %v1809_v16 = vmul.f32 %v6532_v51, %v7581_v48  ;;  %v1250_v48 = vpack.c.bf16 %v6100_v25, %v6099_v28 }
 0x515   : > { %6117 = vrot.lane.b32.xlu1 %v7450_v26, %s7025_s20 }
 0x525   : > { %v1750_v12 = vpop.xlane.xlu1 %1749 }
 0x526   : > { %6533 = vrcp.f32 %v1750_v12 }
 0x527   : > { %6535 = vrcp.f32 %v1753_v10 }
 0x529   : > { %v1756_v49 = vpop.xlane.xlu1 %1755 }
 0x52a   : > { %6537 = vrcp.f32 %v1756_v49 }
 0x533   : > { %v6534_v13 = vpop.eup %6533 }
 0x534   : > { %v1810_v21 = vmul.f32 %v6534_v13, %v7597_v58  ;;  %v6536_v26 = vpop.eup %6535 }
 0x535   : > { %v1811_v0 = vmul.f32 %v6536_v26, %v7585_v27 }
 0x536   : > { %v1825_v55 = vpack.c.bf16 %v1810_v21, %v1809_v16 }
 0x537   : > { %v6538_v22 = vpop.eup %6537 }
 0x538   : > { %5660 = vmatmul.mubr.msk.bf16.vlgmr.msra.gmra.mxu1 %vm1648_vm2, %v1825_v55  ;;  %v1812_v1 = vmul.f32 %v6538_v22, %v7601_v61 }
 0x539   : > { %5670 = vmatpush3.bf16.msra.mxu1 %v1249_v59  ;;  %5671 = vmatprep.mubr.msk.bf16.mxu1 %vm7022_vm0, %v7021_v14 }
 0x53a   : > { %v1826_v30 = vpack.c.bf16 %v1812_v1, %v1811_v0  ;;  %5681 = vmatprep.subr.bf16.mxu1 %v7021_v14 }
 0x53c   : > { %v1759_v58 = vpop.xlane.xlu0 %1758  ;;  %5666 = vmatmul.mubr.msk.bf16.vlgmr.msra.gmra.mxu0 %vm1648_vm2, %v1826_v30 }
 0x53d   : > { %5676 = vmatpush3.bf16.msra.mxu0 %v1250_v48  ;;  %5677 = vmatprep.mubr.msk.bf16.mxu0 %vm7022_vm0, %v7021_v14  ;;  %6539 = vrcp.f32 %v1759_v58 }
 0x53e   : > { %5687 = vmatprep.subr.bf16.mxu0 %v7021_v14 }
 0x540   : > { %v1762_v27 = vpop.xlane.xlu1 %1761 }
 0x541   : > { %6541 = vrcp.f32 %v1762_v27 }
 0x544   : > { %v1765_v61 = vpop.xlane.xlu0 %1764 }
 0x545   : > { %6543 = vrcp.f32 %v1765_v61 }
 0x548   : > { %v1768_v32 = vpop.xlane.xlu1 %1767 }
 0x549   : > { %v1771_v8 = vpop.xlane.xlu0 %1770  ;;  %6545 = vrcp.f32 %v1768_v32 }
 0x54a   : > { %v6540_v9 = vpop.eup %6539  ;;  %6547 = vrcp.f32 %v1771_v8 }
 0x54b   : > { %v1813_v19 = vmul.f32 %v6540_v9, %v7612_v23 }
 0x54d   : > { %v1777_v34 = vpop.xlane.xlu0 %1776  ;;  %v1774_v35 = vpop.xlane.xlu1 %1773 }
 0x54e   : > { %v6542_v37 = vpop.eup %6541  ;;  %6549 = vrcp.f32 %v1774_v35 }
 0x54f   : > { %v1814_v24 = vmul.f32 %v6542_v37, %v7618_v33  ;;  %6551 = vrcp.f32 %v1777_v34  ;;  %v6110_v33 = vunpack.i.h.bf16 %v7671_v40 }
 0x551   : > { %v1783_v42 = vpop.xlane.xlu0 %1782  ;;  %v1780_v29 = vpop.xlane.xlu1 %1779  ;;  %v1827_v46 = vpack.c.bf16 %v1814_v24, %v1813_v19  ;;  %v1252_v3 = vpack.c.bf16 %v6110_v33, %v6109_v60 }
 0x552   : > { %6553 = vrcp.f32 %v1780_v29  ;;  %v6544_v43 = vpop.eup %6543 }
 0x553   : > { %5672 = vmatmul.mubr.msk.bf16.vlgmr.msra.gmra.mxu1 %vm1648_vm2, %v1827_v46  ;;  %6555 = vrcp.f32 %v1783_v42  ;;  %v1815_v62 = vmul.f32 %v6544_v43, %v7623_v17 }
 0x554   : > { %5682 = vmatpush3.bf16.msra.mxu1 %v1251_v36  ;;  %5683 = vmatprep.mubr.msk.bf16.mxu1 %vm7022_vm0, %v7021_v14 }
 0x555   : > { %v1789_v53 = vpop.xlane.xlu0 %1788  ;;  %v1786_v54 = vpop.xlane.xlu1 %1785  ;;  %5693 = vmatprep.subr.bf16.mxu1 %v7021_v14 }
 0x556   : > { %v6546_v23 = vpop.eup %6545  ;;  %6557 = vrcp.f32 %v1786_v54  ;;  %v6363_v54 = vld [vmem:[#allocation8 + $0x38] sm:$0xff]  }
 0x557   : > { %v1816_v63 = vmul.f32 %v6546_v23, %v7628_v44  ;;  %v6548_v47 = vpop.eup %6547  ;;  %6559 = vrcp.f32 %v1789_v53  ;;  %v6364_v23 = vld [vmem:[#allocation8 + $0x30] sm:$0xff]  }
 0x558   : > { %v1817_v40 = vmul.f32 %v6548_v47, %v7630_v45 }
 0x559   : > { %v6113_v41 = vpop.permute.xlu0 %6112  ;;  %v1828_v2 = vpack.c.bf16 %v1816_v63, %v1815_v62 }
 0x55a   : > { %v6115_v6 = vunpack.i.h.bf16 %v6113_v41  ;;  %v6114_v7 = vunpack.i.l.bf16 %v6113_v41 }
 0x55b   : > { %5678 = vmatmul.mubr.msk.bf16.vlgmr.msra.gmra.mxu0 %vm1648_vm2, %v1828_v2  ;;  %v6550_v5 = vpop.eup %6549  ;;  %v6365_v2 = vld [vmem:[#allocation8 + $0x28] sm:$0xff]  }
 0x55c   : > { %5688 = vmatpush3.bf16.msra.mxu0 %v1252_v3  ;;  %5689 = vmatprep.mubr.msk.bf16.mxu0 %vm7022_vm0, %v7021_v14  ;;  %v1818_v10 = vmul.f32 %v6550_v5, %v7638_v20  ;;  %v6552_v17 = vpop.eup %6551  ;;  %v1253_v49 = vpack.c.bf16 %v6115_v6, %v6114_v7  ;;  %v6366_v6 = vld [vmem:[#allocation8 + $0x20] sm:$0xff]   ;;  %v6367_v7 = vld [vmem:[#allocation8 + $0x18] sm:$0xff]  }
 0x55d   : > { %5699 = vmatprep.subr.bf16.mxu0 %v7021_v14  ;;  %v1819_v51 = vmul.f32 %v6552_v17, %v7636_v31  ;;  %v6370_v17 = vld [vmem:[#allocation8] sm:$0xff]  }
 0x55e   : > { %v1829_v44 = vpack.c.bf16 %v1818_v10, %v1817_v40  ;;  %v6368_v40 = vld [vmem:[#allocation8 + $0x10] sm:$0xff]   ;;  %v6369_v10 = vld [vmem:[#allocation8 + $0x8] sm:$0xff]  }
 0x55f   : > { %v6554_v12 = vpop.eup %6553 }
 0x560   : > { %5684 = vmatmul.mubr.msk.bf16.vlgmr.msra.gmra.mxu1 %vm1648_vm2, %v1829_v44  ;;  %v1820_v13 = vmul.f32 %v6554_v12, %v7644_v50  ;;  %v6556_v11 = vpop.eup %6555 }
 0x561   : > { %5694 = vmatpush3.bf16.msra.mxu1 %v1253_v49  ;;  %5695 = vmatprep.mubr.msk.bf16.mxu1 %vm7022_vm0, %v7021_v14  ;;  %v1821_v20 = vmul.f32 %v6556_v11, %v7646_v52 }
 0x562   : > { %v1830_v45 = vpack.c.bf16 %v1820_v13, %v1819_v51  ;;  %5705 = vmatprep.subr.bf16.mxu1 %v6363_v54 }
 0x563   : > { %v6558_v15 = vpop.eup %6557 }
 0x564   : > { %5690 = vmatmul.mubr.msk.bf16.vlgmr.msra.gmra.mxu0 %vm1648_vm2, %v1830_v45  ;;  %v1822_v16 = vmul.f32 %v6558_v15, %v7654_v57  ;;  %v6560_v59 = vpop.eup %6559 }
 0x565   : > { %5701 = vmatprep.mubr.msk.bf16.mxu0 %vm7022_vm0, %v7021_v14  ;;  %v1823_v52 = vmul.f32 %v6560_v59, %v7652_v56 }
 0x566   : > { %v1831_v21 = vpack.c.bf16 %v1822_v16, %v1821_v20 }
 0x568   : > { %5696 = vmatmul.mubr.msk.bf16.vlgmr.msra.gmra.mxu1 %vm1648_vm2, %v1831_v21 }
 0x569   : > { %5706 = vmatpush3.bf16.msra.mxu1 %v6363_v54 }
 0x56a   : > { %5707 = vmatprep.subr.bf16.mxu1 %v6364_v23 }
 0x56d   : > { %5708 = vmatpush3.bf16.msra.mxu1 %v6364_v23  ;;  %v6677_v23 = vld [vmem:[%s7371_s9 + $0x8] sm:$0xff] }
 0x56e   : > { %5709 = vmatprep.subr.bf16.mxu1 %v6365_v2 }
 0x571   : > { %5710 = vmatpush3.bf16.msra.mxu1 %v6365_v2 }
 0x572   : > { %5711 = vmatprep.subr.bf16.mxu1 %v6366_v6 }
 0x575   : > { %5712 = vmatpush3.bf16.msra.mxu1 %v6366_v6  ;;  %v6374_v6 = vld [vmem:[#allocation11 + $0x60] ss:$8 sps:$4 sm:$0xff]  }
 0x576   : > { %5713 = vmatprep.subr.bf16.mxu1 %v6367_v7 }
 0x579   : > { %5714 = vmatpush3.bf16.msra.mxu1 %v6367_v7  ;;  %v6379_v7 = vld [vmem:[#allocation11 + $0x54] ss:$8 sps:$4 sm:$0xff]  }
 0x57a   : > { %5715 = vmatprep.subr.bf16.mxu1 %v6368_v40 }
 0x57d   : > { %5716 = vmatpush3.bf16.msra.mxu1 %v6368_v40  ;;  %v6377_v40 = vld [vmem:[#allocation11 + $0x50] ss:$8 sps:$4 sm:$0xff]  }
 0x57e   : > { %5717 = vmatprep.subr.bf16.mxu1 %v6369_v10 }
 0x581   : > { %5718 = vmatpush3.bf16.msra.mxu1 %v6369_v10  ;;  %v6382_v10 = vld [vmem:[#allocation11 + $0x44] ss:$8 sps:$4 sm:$0xff]  }
 0x582   : > { %5719 = vmatprep.subr.bf16.mxu1 %v6370_v17 }
 0x585   : > { %5720 = vmatpush3.bf16.msra.mxu1 %v6370_v17  ;;  %v6380_v17 = vld [vmem:[#allocation11 + $0x40] ss:$8 sps:$4 sm:$0xff]  }
 0x58d   : > { %v1792_v31 = vpop.xlane.xlu1 %1791 }
 0x58e   : > { %6561 = vrcp.f32 %v1792_v31 }
 0x591   : > { %v6118_v50 = vpop.permute.xlu1 %6117 }
 0x592   : > { %v6120_v26 = vunpack.i.h.bf16 %v6118_v50  ;;  %v6119_v55 = vunpack.i.l.bf16 %v6118_v50 }
 0x594   : > { %v1254_v22 = vpack.c.bf16 %v6120_v26, %v6119_v55 }
 0x596   : > { %5700 = vmatpush3.bf16.msra.mxu0 %v1254_v22 }
 0x59b   : > { %v6562_v25 = vpop.eup %6561 }
 0x59c   : > { %v1824_v57 = vmul.f32 %v6562_v25, %v7665_v4 }
 0x59e   : > { %v1832_v28 = vpack.c.bf16 %v1824_v57, %v1823_v52 }
 0x5a0   : > { %5702 = vmatmul.mubr.msk.bf16.vlgmr.msra.gmra.mxu0 %vm1648_vm2, %v1832_v28 }
 0x5f8   : > { %v7717_v0 = vpop.f32.mrf.mxu1 }
 0x5fa   : > { %v5661_v1 = vpop.f32.mrf.mxu1 }
 0x5fc   : > { %v7719_v30 = vpop.f32.mrf.mxu1  ;;  %v7721_v48 = vpop.f32.mrf.mxu0 }
 0x5fe   : > { %v5662_v58 = vpop.f32.mrf.mxu1  ;;  %v5667_v27 = vpop.f32.mrf.mxu0 }
 0x600   : > { %v7723_v61 = vpop.f32.mrf.mxu0 }
 0x602   : > { %v5668_v32 = vpop.f32.mrf.mxu0 }
 0x613   : > { %v1958_v8 = vpop.f32.mrf.mxu1 }
 0x615   : > { %v5673_v9 = vpop.f32.mrf.mxu1 }
 0x617   : > { %v1961_v56 = vpop.f32.mrf.mxu1 }
 0x618   : > { %v6121_v34 = vpack.i.bf16 %v1961_v56, %v1958_v8 }
 0x619   : > { %v5674_v4 = vpop.f32.mrf.mxu1 }
 0x61a   : > { %6122 = vrot.lane.b32.xlu0 %v6121_v34, %s7025_s20 }
 0x61b   : > { %v2002_v35 = vpop.f32.mrf.mxu0 }
 0x61d   : > { %v5679_v37 = vpop.f32.mrf.mxu0 }
 0x61f   : > { %v2005_v38 = vpop.f32.mrf.mxu0 }
 0x620   : > { %v6126_v18 = vpack.i.bf16 %v2005_v38, %v2002_v35  ;;  %v2046_v19 = vpop.f32.mrf.mxu1 }
 0x621   : > { %v5680_v24 = vpop.f32.mrf.mxu0 }
 0x622   : > { %6127 = vrot.lane.b32.xlu1 %v6126_v18, %s7025_s20  ;;  %v5685_v42 = vpop.f32.mrf.mxu1 }
 0x624   : > { %v2049_v29 = vpop.f32.mrf.mxu1  ;;  %v2090_v46 = vpop.f32.mrf.mxu0 }
 0x625   : > { %v6131_v36 = vpack.i.bf16 %v2049_v29, %v2046_v19  ;;  %v5282_v29 = vld [vmem:[%s8500_s6] ss:$0 sm:$0xff] }
 0x626   : > { %v5686_v43 = vpop.f32.mrf.mxu1  ;;  %v5691_v53 = vpop.f32.mrf.mxu0 }
 0x627   : > { %6132 = vrot.lane.b32.xlu0 %v6131_v36, %s7024_s17  ;;  %v6676_v36 = vld [vmem:[%s7371_s9 + $0x10] sm:$0xff] }
 0x628   : > { %v2093_v33 = vpop.f32.mrf.mxu0  ;;  %v2134_v60 = vpop.f32.mrf.mxu1 }
 0x629   : > { %v6136_v62 = vpack.i.bf16 %v2093_v33, %v2090_v46 }
 0x62a   : > { %v5692_v63 = vpop.f32.mrf.mxu0  ;;  %v5697_v41 = vpop.f32.mrf.mxu1 }
 0x62b   : > { %6137 = vrot.lane.b32.xlu1 %v6136_v62, %s7024_s17  ;;  %v6678_v62 = vld [vmem:[%s7371_s9 + $0x18] sm:$0xff] }
 0x62c   : > { %v2137_v47 = vpop.f32.mrf.mxu1 }
 0x62d   : > { %v6141_v3 = vpack.i.bf16 %v2137_v47, %v2134_v60  ;;  %v6371_v47 = vld [vmem:[#allocation11 + $0x70] ss:$8 sps:$4 sm:$0xff]  }
 0x62e   : > { %v5698_v5 = vpop.f32.mrf.mxu1 }
 0x62f   : > { %6142 = vrot.lane.b32.xlu0 %v6141_v3, %s7023_s26  ;;  %v6373_v3 = vld [vmem:[#allocation11 + $0x74] ss:$8 sps:$4 sm:$0xff]   ;;  %v6376_v5 = vld [vmem:[#allocation11 + $0x64] ss:$8 sps:$4 sm:$0xff]  }
 0x630   : > { %2658 = vmatprep.subr.bf16.mxu1 %v6373_v3 }
 0x660   : > { %v2178_v44 = vpop.f32.mrf.mxu0 }
 0x662   : > { %v5703_v12 = vpop.f32.mrf.mxu0 }
 0x663   : > { %v6383_v12 = vld [vmem:[#allocation11 + $0x30] ss:$8 sps:$4 sm:$0xff]  }
 0x664   : > { %v2181_v49 = vpop.f32.mrf.mxu0 }
 0x665   : > { %v6146_v51 = vpack.i.bf16 %v2181_v49, %v2178_v44  ;;  %v6385_v44 = vld [vmem:[#allocation11 + $0x34] ss:$8 sps:$4 sm:$0xff]   ;;  %v6388_v49 = vld [vmem:[#allocation11 + $0x24] ss:$8 sps:$4 sm:$0xff]  }
 0x666   : > { %v5704_v13 = vpop.f32.mrf.mxu0 }
 0x667   : > { %6147 = vrot.lane.b32.xlu1 %v6146_v51, %s7023_s26  ;;  %v6386_v51 = vld [vmem:[#allocation11 + $0x20] ss:$8 sps:$4 sm:$0xff]   ;;  %v6391_v13 = vld [vmem:[#allocation11 + $0x14] ss:$8 sps:$4 sm:$0xff]  }
 0x68c   : > { %v6123_v11 = vpop.permute.xlu0 %6122 }
 0x68d   : > { %v6125_v15 = vunpack.i.h.bf16 %v6123_v11  ;;  %v6124_v20 = vunpack.i.l.bf16 %v6123_v11  ;;  %v6389_v11 = vld [vmem:[#allocation11 + $0x10] ss:$8 sps:$4 sm:$0xff]  }
 0x68f   : > { %v2234_v50 = vsel %vm1255_vm1, %v7719_v30, %v6125_v15  ;;  %v2233_v26 = vsel %vm1255_vm1, %v7717_v0, %v6124_v20  ;;  %v6392_v15 = vld [vmem:[#allocation11] ss:$8 sps:$4 sm:$0xff]  }
 0x690   : > { %v772_v20 = vld [vmem:[%s7379_s1] sm:$0xff] }
 0x694   : > { %v6128_v1 = vpop.permute.xlu1 %6127 }
 0x695   : > { %v6130_v27 = vunpack.i.h.bf16 %v6128_v1  ;;  %v6129_v32 = vunpack.i.l.bf16 %v6128_v1 }
 0x697   : > { %v2236_v9 = vsel %vm1255_vm1, %v7723_v61, %v6130_v27  ;;  %v2235_v56 = vsel %vm1255_vm1, %v7721_v48, %v6129_v32  ;;  %v6675_v48 = vld [vmem:[%s7371_s9] sm:$0xff] }
 0x699   : > { %v6133_v45 = vpop.permute.xlu0 %6132 }
 0x69a   : > { %v6135_v16 = vunpack.i.h.bf16 %v6133_v45  ;;  %v6134_v21 = vunpack.i.l.bf16 %v6133_v45  ;;  %v6394_v45 = vld [vmem:[#allocation11 + $0x4] ss:$8 sps:$4 sm:$0xff]  }
 0x69c   : > { %v2239_v59 = vsel %vm2237_vm3, %v2234_v50, %v6135_v16  ;;  %v2238_v25 = vsel %vm2237_vm3, %v2233_v26, %v6134_v21  ;;  %v773_v16 = vld [vmem:[%s7379_s1 + $0x8] sm:$0xff]  ;;  %v775_v50 = vld [vmem:[%s7379_s1 + $0x18] sm:$0xff] }
 0x69d   : > { %v6138_v58 = vpop.permute.xlu1 %6137  ;;  %v2558_v21 = vpack.c.bf16 %v773_v16, %v772_v20 }
 0x69e   : > { %v6140_v30 = vunpack.i.h.bf16 %v6138_v58  ;;  %v6139_v8 = vunpack.i.l.bf16 %v6138_v58 }
 0x6a0   : > { %v2241_v35 = vsel %vm2237_vm3, %v2236_v9, %v6140_v30  ;;  %v2240_v37 = vsel %vm2237_vm3, %v2235_v56, %v6139_v8 }
 0x6a1   : > { %v6143_v31 = vpop.permute.xlu0 %6142 }
 0x6a2   : > { %v6145_v55 = vunpack.i.h.bf16 %v6143_v31  ;;  %v6144_v22 = vunpack.i.l.bf16 %v6143_v31  ;;  %v774_v31 = vld [vmem:[%s7379_s1 + $0x10] sm:$0xff] }
 0x6a3   : > { %v2559_v26 = vpack.c.bf16 %v775_v50, %v774_v31 }
 0x6a4   : > { %v2243_v52 = vsel %vm2242_vm4, %v2238_v25, %v6144_v22  ;;  %v2244_v57 = vsel %vm2242_vm4, %v2239_v59, %v6145_v55  ;;  %v776_v55 = vld [vmem:[%s7379_s1 + $0x20] sm:$0xff]  ;;  %v777_v22 = vld [vmem:[%s7379_s1 + $0x28] sm:$0xff]  ;;  %v778_v25 = vld [vmem:[%s7379_s1 + $0x30] sm:$0xff] }
 0x6a5   : > { %v2247_v28 = vpack.c.bf16 %v2244_v57, %v2243_v52  ;;  %v2560_v59 = vpack.c.bf16 %v777_v22, %v776_v55  ;;  %v779_v52 = vld [vmem:[%s7379_s1 + $0x38] sm:$0xff]  ;;  %s5027_s1 = scalar_lea.sflag [#allocation4], %s7365_s27 }
 0x6a6   : > { %v2561_v57 = vpack.c.bf16 %v779_v52, %v778_v25 }
 0x6a7   : > { %5721 = vmatprep.mubr.bf16.mxu1 %v2247_v28 }
 0x6d9   : > { %v6148_v0 = vpop.permute.xlu1 %6147 }
 0x6da   : > { %v6150_v34 = vunpack.i.h.bf16 %v6148_v0  ;;  %v6149_v4 = vunpack.i.l.bf16 %v6148_v0 }
 0x6dc   : > { %v2246_v38 = vsel %vm2242_vm4, %v2241_v35, %v6150_v34  ;;  %v2245_v18 = vsel %vm2242_vm4, %v2240_v37, %v6149_v4 }
 0x6dd   : > { %v2248_v19 = vpack.c.bf16 %v2246_v38, %v2245_v18 }
 0x6df   : > { %5722 = vmatmul.mubr.bf16.vlgmr.msra.gmra.mxu1 %v2248_v19  ;;  %v6395_v19 = vld [vmem:[#allocation10 + $0x38] sm:$0xff]  }
 0x6e0   : > { %2690 = vmatprep.mubr.bf16.mxu1 %v7020_v39  ;;  %2659 = vmatpush1.bf16.msra.mxu1 %v6371_v47 }
 0x6e1   : > { %2660 = vmatprep.subr.bf16.mxu1 %v6376_v5  ;;  %5725 = vmatprep.subr.bf16.mxu0 %v6395_v19 }
 0x6e2   : > { %5726 = vmatpush3.bf16.msra.mxu0 %v6395_v19 }
 0x6e4   : > { %2661 = vmatpush1.bf16.msra.mxu1 %v6374_v6 }
 0x6e5   : > { %2662 = vmatprep.subr.bf16.mxu1 %v6379_v7 }
 0x6e8   : > { %2663 = vmatpush1.bf16.msra.mxu1 %v6377_v40 }
 0x6e9   : > { %2664 = vmatprep.subr.bf16.mxu1 %v6382_v10 }
 0x6ec   : > { %2665 = vmatpush1.bf16.msra.mxu1 %v6380_v17 }
 0x6ed   : > { %2666 = vmatprep.subr.bf16.mxu1 %v6385_v44 }
 0x6f0   : > { %2667 = vmatpush1.bf16.msra.mxu1 %v6383_v12 }
 0x6f1   : > { %2668 = vmatprep.subr.bf16.mxu1 %v6388_v49 }
 0x6f4   : > { %2669 = vmatpush1.bf16.msra.mxu1 %v6386_v51 }
 0x6f5   : > { %2670 = vmatprep.subr.bf16.mxu1 %v6391_v13 }
 0x6f8   : > { %2671 = vmatpush1.bf16.msra.mxu1 %v6389_v11 }
 0x6f9   : > { %2672 = vmatprep.subr.bf16.mxu1 %v6394_v45 }
 0x6fc   : > { %2673 = vmatpush1.bf16.msra.mxu1 %v6392_v15 }
 0x6fd   : > { %5769 = vmatprep.subr.bf16.mxu1 %v7021_v14 }
 0x6ff   : > { %2691 = vmatmul.mubr.bf16.vlgmr.msra.gmra.mxu1 %v2558_v21 }
 0x700   : > { %2700 = vmatprep.mubr.bf16.mxu1 %v7020_v39 }
 0x707   : > { %2701 = vmatmul.mubr.bf16.gmra.mxu1 %v2559_v26 }
 0x708   : > { %2710 = vmatprep.mubr.bf16.mxu1 %v7020_v39 }
 0x70f   : > { %2711 = vmatmul.mubr.bf16.gmra.mxu1 %v2560_v59 }
 0x710   : > { %2720 = vmatprep.mubr.bf16.mxu1 %v7020_v39 }
 0x717   : > { %2721 = vmatmul.mubr.bf16.gmra.mxu1 %v2561_v57 }
 0x718   : > { %5773 = vmatprep.mubr.msk.bf16.mxu1 %vm7022_vm0, %v7021_v14 }
 0x79f   : > { %v5723_v61 = vpop.f32.mrf.mxu1 }
 0x7a0   : > { %v2364_v43 = vadd.f32 %v6676_v36, %v5723_v61  ;;  %v6396_v61 = vld [vmem:[#allocation10 + $0x30] sm:$0xff]   ;;  %v6402_v36 = vld [vmem:[#allocation10] sm:$0xff]  }
 0x7a1   : > { %v2347_v24 = vpop.f32.mrf.mxu1  ;;  %5727 = vmatprep.subr.bf16.mxu0 %v6396_v61 }
 0x7a2   : > { %v2362_v42 = vadd.f32 %v6675_v48, %v2347_v24  ;;  %v7757_v60 = vadd.f32 %v5282_v29, %v2364_v43  ;;  %5728 = vmatpush3.bf16.msra.mxu0 %v6396_v61  ;;  %v6397_v24 = vld [vmem:[#allocation10 + $0x28] sm:$0xff]   ;;  %v6398_v48 = vld [vmem:[#allocation10 + $0x20] sm:$0xff]  }
 0x7a3   : > { %v5724_v46 = vpop.f32.mrf.mxu1  ;;  %5729 = vmatprep.subr.bf16.mxu0 %v6397_v24 }
 0x7a4   : > { %v7753_v53 = vadd.f32 %v5282_v29, %v2362_v42  ;;  %v2365_v63 = vadd.f32 %v6678_v62, %v5724_v46  ;;  %v6399_v42 = vld [vmem:[#allocation10 + $0x18] sm:$0xff]   ;;  %v6401_v46 = vld [vmem:[#allocation10 + $0x8] sm:$0xff]  }
 0x7a5   : > { %v2350_v54 = vpop.f32.mrf.mxu1 }
 0x7a6   : > { %v2363_v33 = vadd.f32 %v6677_v23, %v2350_v54  ;;  %2379 = vadd.xlane.f32.xlu0 %v7753_v53  ;;  %v7764_v2 = vadd.f32 %v5282_v29, %v2365_v63  ;;  %5730 = vmatpush3.bf16.msra.mxu0 %v6397_v24 }
 0x7a7   : > { %5731 = vmatprep.subr.bf16.mxu0 %v6398_v48 }
 0x7a8   : > { %v7760_v41 = vadd.f32 %v5282_v29, %v2363_v33  ;;  %v6400_v29 = vld [vmem:[#allocation10 + $0x10] sm:$0xff]  }
 0x7aa   : > { %2383 = vadd.xlane.f32.xlu0 %v7757_v60  ;;  %2381 = vadd.xlane.f32.xlu1 %v7760_v41 }
 0x7ab   : > { %5732 = vmatpush3.bf16.msra.mxu0 %v6398_v48 }
 0x7ac   : > { %5733 = vmatprep.subr.bf16.mxu0 %v6399_v42 }
 0x7ae   : > { %2385 = vadd.xlane.f32.xlu0 %v7764_v2 }
 0x7af   : > { %5734 = vmatpush3.bf16.msra.mxu0 %v6399_v42 }
 0x7b0   : > { %5735 = vmatprep.subr.bf16.mxu0 %v6400_v29 }
 0x7b3   : > { %5736 = vmatpush3.bf16.msra.mxu0 %v6400_v29 }
 0x7b4   : > { %5737 = vmatprep.subr.bf16.mxu0 %v6401_v46 }
 0x7b7   : > { %5738 = vmatpush3.bf16.msra.mxu0 %v6401_v46 }
 0x7b8   : > { %5739 = vmatprep.subr.bf16.mxu0 %v6402_v36 }
 0x7bb   : > { %5740 = vmatpush3.bf16.msra.mxu0 %v6402_v36 }
 0x7bc   : > { %5745 = vmatprep.subr.bf16.mxu0 %v7021_v14 }
 0x7bf   : > { %v7802_v43 = vpop.f32.mrf.mxu1 }
 0x7c1   : > { %v7804_v54 = vpop.f32.mrf.mxu1 }
 0x7c3   : > { %v7806_v23 = vpop.f32.mrf.mxu1 }
 0x7c4   : > { %v2859_v33 = vpack.c.bf16 %v7806_v23, %v7802_v43  ;;  %v6191_v11 = vpack.i.bf16 %v7806_v23, %v7802_v43 }
 0x7c5   : > { %v7810_v62 = vpop.f32.mrf.mxu1 }
 0x7c7   : > { %v7812_v63 = vpop.f32.mrf.mxu1 }
 0x7c9   : > { %v7814_v47 = vpop.f32.mrf.mxu1 }
 0x7cb   : > { %v2706_v3 = vpop.f32.mrf.mxu1 }
 0x7cc   : > { %v6151_v5 = vpack.i.bf16 %v2706_v3, %v7812_v63  ;;  %v2860_v61 = vpack.c.bf16 %v2706_v3, %v7812_v63 }
 0x7cd   : > { %v7817_v6 = vpop.f32.mrf.mxu1 }
 0x7ce   : > { %v2978_v42 = vsel %vm1255_vm1, %v2860_v61, 0 }
 0x7cf   : > { %v7820_v7 = vpop.f32.mrf.mxu1 }
 0x7d1   : > { %v7822_v40 = vpop.f32.mrf.mxu1 }
 0x7d3   : > { %v7825_v10 = vpop.f32.mrf.mxu1 }
 0x7d4   : > { %v7845_v21 = vpack.i.bf16 %v7825_v10, %v7820_v7 }
 0x7d5   : > { %v7827_v17 = vpop.f32.mrf.mxu1 }
 0x7d7   : > { %v7829_v44 = vpop.f32.mrf.mxu1 }
 0x7d9   : > { %v7831_v12 = vpop.f32.mrf.mxu1 }
 0x7db   : > { %v7833_v49 = vpop.f32.mrf.mxu1 }
 0x7dc   : > { %v6176_v51 = vpack.i.bf16 %v7833_v49, %v7829_v44 }
 0x82f   : > { %v2380_v28 = vpop.xlane.xlu0 %2379 }
 0x830   : > { %v2387_v1 = vmul.f32 0.0078125, %v2380_v28  ;;  %v5283_v28 = vld [vmem:[%s8501_s7] ss:$0 sm:$0xff] }
 0x832   : > { %v7782_v58 = vsub.f32 %v7753_v53, %v2387_v1 }
 0x833   : > { %v2384_v27 = vpop.xlane.xlu0 %2383  ;;  %v2382_v32 = vpop.xlane.xlu1 %2381 }
 0x834   : > { %v2389_v30 = vmul.f32 0.0078125, %v2384_v27  ;;  %v2388_v8 = vmul.f32 0.0078125, %v2382_v32  ;;  %v2395_v0 = vmul.f32 %v7782_v58, %v7782_v58 }
 0x836   : > { %v7787_v9 = vsub.f32 %v7757_v60, %v2389_v30  ;;  %v7790_v56 = vsub.f32 %v7760_v41, %v2388_v8  ;;  %2399 = vadd.xlane.f32.xlu0 %v2395_v0  ;;  %v5284_v0 = vld [vmem:[%s8502_s8] ss:$0 sm:$0xff] }
 0x837   : > { %v2386_v34 = vpop.xlane.xlu0 %2385 }
 0x838   : > { %v2390_v4 = vmul.f32 0.0078125, %v2386_v34  ;;  %v2397_v35 = vmul.f32 %v7787_v9, %v7787_v9  ;;  %v2396_v37 = vmul.f32 %v7790_v56, %v7790_v56 }
 0x83a   : > { %v7797_v38 = vsub.f32 %v7764_v2, %v2390_v4  ;;  %2403 = vadd.xlane.f32.xlu0 %v2397_v35  ;;  %2401 = vadd.xlane.f32.xlu1 %v2396_v37 }
 0x83c   : > { %v2398_v18 = vmul.f32 %v7797_v38, %v7797_v38 }
 0x83e   : > { %2405 = vadd.xlane.f32.xlu1 %v2398_v18 }
 0x84f   : > { %6157 = vrot.lane.b32.xlu1 %v6176_v51, %s7023_s26 }
 0x850   : > { %6152 = vrot.lane.b32.xlu0 %v6151_v5, %s7023_s26 }
 0x853   : > { %6162 = vrot.lane.b32.xlu1 %v6191_v11, %s7023_s26 }
 0x854   : > { %6172 = vrot.lane.b32.xlu0 %v6151_v5, %s7024_s17 }
 0x857   : > { %6167 = vrot.lane.b32.xlu1 %v7845_v21, %s7023_s26 }
 0x858   : > { %6177 = vrot.lane.b32.xlu0 %v6176_v51, %s7024_s17 }
 0x85c   : > { %6192 = vrot.lane.b32.xlu0 %v6191_v11, %s7024_s17 }
 0x860   : > { %6202 = vrot.lane.b32.xlu0 %v6151_v5, %s7025_s20 }
 0x864   : > { %6207 = vrot.lane.b32.xlu0 %v6176_v51, %s7025_s20 }
 0x868   : > { %6222 = vrot.lane.b32.xlu0 %v6191_v11, %s7025_s20 }
 0x8bf   : > { %v2400_v13 = vpop.xlane.xlu0 %2399 }
 0x8c0   : > { %v2407_v45 = vmul.f32 0.0078125, %v2400_v13 }
 0x8c2   : > { %v2411_v15 = vadd.f32 1e-05, %v2407_v45 }
 0x8c3   : > { %v2404_v20 = vpop.xlane.xlu0 %2403  ;;  %v2402_v16 = vpop.xlane.xlu1 %2401 }
 0x8c4   : > { %6563 = vrsqrt.f32 %v2411_v15  ;;  %v2409_v31 = vmul.f32 0.0078125, %v2404_v20  ;;  %v2408_v50 = vmul.f32 0.0078125, %v2402_v16  ;;  %v2862_v16 = vpack.c.bf16 %v7833_v49, %v7829_v44 }
 0x8c5   : > { %v2861_v44 = vpack.c.bf16 %v7825_v10, %v7820_v7 }
 0x8c6   : > { %v2413_v26 = vadd.f32 1e-05, %v2409_v31  ;;  %v2412_v55 = vadd.f32 1e-05, %v2408_v50 }
 0x8c7   : > { %v2406_v22 = vpop.xlane.xlu1 %2405  ;;  %v6153_v49 = vpop.permute.xlu0 %6152 }
 0x8c8   : > { %6565 = vrsqrt.f32 %v2413_v26  ;;  %v2410_v59 = vmul.f32 0.0078125, %v2406_v22  ;;  %v3028_v26 = vsel %vm1255_vm1, %v2862_v16, 0 }
 0x8c9   : > { %6567 = vrsqrt.f32 %v2412_v55  ;;  %v7884_v55 = vpack.i.bf16 %v7817_v6, %v7814_v47 }
 0x8ca   : > { %v2414_v25 = vadd.f32 1e-05, %v2410_v59  ;;  %v6155_v59 = vunpack.i.h.bf16 %v6153_v49 }
 0x8cb   : > { %v6158_v29 = vpop.permute.xlu1 %6157 }
 0x8cc   : > { %6569 = vrsqrt.f32 %v2414_v25  ;;  %v6160_v46 = vunpack.i.h.bf16 %v6158_v29  ;;  %v6159_v36 = vunpack.i.l.bf16 %v6158_v29  ;;  %v6154_v25 = vunpack.i.l.bf16 %v6153_v49 }
 0x8ce   : > { %v2866_v63 = vpack.c.bf16 %v6160_v46, %v6159_v36 }
 0x8cf   : > { %v6163_v3 = vpop.permute.xlu1 %6162 }
 0x8d0   : > { %v3128_v5 = vsel %vm1255_vm1, %v2866_v63, 0  ;;  %v6165_v10 = vunpack.i.h.bf16 %v6163_v3 }
 0x8d1   : > { %v6564_v52 = vpop.eup %6563  ;;  %5770 = vmatpush3.bf16.xpose.msra.mxu1 %v3128_v5 }
 0x8d2   : > { %v2419_v57 = vmul.f32 %v6564_v52, %v7782_v58  ;;  %5771 = vmatprep.subr.bf16.mxu1 %v7021_v14  ;;  %v3025_v52 = vsel %vm1255_vm1, %v2861_v44, 0 }
 0x8d3   : > { %v6168_v51 = vpop.permute.xlu1 %6167 }
 0x8d4   : > { %v2429_v8 = vmul.f32 %v5283_v28, %v2419_v57  ;;  %v6170_v13 = vunpack.i.h.bf16 %v6168_v51  ;;  %v6169_v11 = vunpack.i.l.bf16 %v6168_v51  ;;  %v2864_v57 = vpack.c.bf16 %v6155_v59, %v6154_v25 }
 0x8d5   : > { %v6566_v1 = vpop.eup %6565 }
 0x8d6   : > { %v6568_v27 = vpop.eup %6567  ;;  %v2421_v32 = vmul.f32 %v6566_v1, %v7787_v9  ;;  %v2439_v37 = vadd.f32 %v5284_v0, %v2429_v8  ;;  %v2865_v45 = vpack.c.bf16 %v6170_v13, %v6169_v11  ;;  %v3078_v7 = vsel %vm1255_vm1, %v2864_v57, 0 }
 0x8d7   : > { %v2420_v30 = vmul.f32 %v6568_v27, %v7790_v56  ;;  %v6164_v1 = vunpack.i.l.bf16 %v6163_v3 }
 0x8d8   : > { %v2431_v58 = vmul.f32 %v5283_v28, %v2421_v32  ;;  %v3125_v43 = vsel %vm1255_vm1, %v2865_v45, 0  ;;  %v7909_v32 = vpop.f32.mrf.mxu1 }
 0x8d9   : > { %v6570_v34 = vpop.eup %6569  ;;  %v2430_v4 = vmul.f32 %v5283_v28, %v2420_v30  ;;  %5772 = vmatpush3.bf16.xpose.msra.mxu1 %v3125_v43  ;;  %v2863_v27 = vpack.c.bf16 %v6165_v10, %v6164_v1  ;;  %v7915_v8 = vpack.i.bf16 %v7909_v32, %v7831_v12 }
 0x8da   : > { %v2422_v35 = vmul.f32 %v6570_v34, %v7797_v38  ;;  %v2441_v48 = vadd.f32 %v5284_v0, %v2431_v58  ;;  %v2975_v38 = vsel %vm1255_vm1, %v2859_v33, 0  ;;  %5785 = vmatprep.subr.bf16.mxu1 %v7021_v14  ;;  %v6173_v34 = vpop.permute.xlu0 %6172 }
 0x8db   : > { %v2440_v18 = vadd.f32 %v5284_v0, %v2430_v4  ;;  %v3075_v30 = vsel %vm1255_vm1, %v2863_v27, 0  ;;  %v6174_v58 = vunpack.i.l.bf16 %v6173_v34 }
 0x8dc   : > { %v2432_v19 = vmul.f32 %v5283_v28, %v2422_v35  ;;  %v6175_v35 = vunpack.i.h.bf16 %v6173_v34 }
 0x8dd   : > { %v2443_v24 = vpack.c.bf16 %v2440_v18, %v2439_v37 }
 0x8de   : > { %v2442_v9 = vadd.f32 %v5284_v0, %v2432_v19  ;;  %v7922_v0 = vpack.i.bf16 %v7810_v62, %v7804_v54  ;;  %v6178_v4 = vpop.permute.xlu0 %6177 }
 0x8df   : > { %5741 = vmatprep.mubr.bf16.mxu0 %v2443_v24  ;;  %v6180_v37 = vunpack.i.h.bf16 %v6178_v4  ;;  %v6179_v18 = vunpack.i.l.bf16 %v6178_v4  ;;  %v2868_v24 = vpack.c.bf16 %v6175_v35, %v6174_v58 }
 0x8e0   : > { %v2444_v56 = vpack.c.bf16 %v2442_v9, %v2441_v48 }
 0x8e1   : > { %v3178_v3 = vsel %vm1255_vm1, %v2868_v24, 0 }
 0x8e2   : > { %5742 = vmatmul.mubr.bf16.vlgmr.msra.gmra.mxu0 %v2444_v56  ;;  %v6193_v19 = vpop.permute.xlu0 %6192 }
 0x8e3   : > { %5746 = vmatpush3.bf16.xpose.msra.mxu0 %v2978_v42  ;;  %5749 = vmatprep.mubr.msk.bf16.mxu0 %vm7022_vm0, %v7021_v14  ;;  %v2870_v42 = vpack.c.bf16 %v6180_v37, %v6179_v18  ;;  %v6194_v46 = vunpack.i.l.bf16 %v6193_v19 }
 0x8e4   : > { %5747 = vmatprep.subr.bf16.mxu0 %v7021_v14 }
 0x8e6   : > { %v6203_v5 = vpop.permute.xlu0 %6202 }
 0x8e7   : > { %v6204_v16 = vunpack.i.l.bf16 %v6203_v5 }
 0x8eb   : > { %5748 = vmatpush3.bf16.xpose.msra.mxu0 %v2975_v38  ;;  %v6195_v38 = vunpack.i.h.bf16 %v6193_v19 }
 0x8ec   : > { %5753 = vmatprep.subr.bf16.mxu0 %v7021_v14 }
 0x8ed   : > { %v2867_v11 = vpack.c.bf16 %v6195_v38, %v6194_v46 }
 0x9a2   : > { %v5743_v23 = vpop.f32.mrf.mxu0 }
 0x9a4   : > { %v2543_v33 = vpop.f32.mrf.mxu0 }
 0x9a6   : > { %v5744_v15 = vpop.f32.mrf.mxu0 }
 0x9a7   : > { %v6186_v22 = vpack.i.bf16 %v5744_v15, %v5743_v23  ;;  %v2772_v28 = vpack.c.bf16 %v5744_v15, %v5743_v23  ;;  %v3228_v23 = vsel %vm1255_vm1, %v2870_v42, 0 }
 0x9a8   : > { %v2546_v20 = vpop.f32.mrf.mxu0 }
 0x9a9   : > { %v2771_v31 = vpack.c.bf16 %v2546_v20, %v2543_v33  ;;  %v6231_v50 = vpack.i.bf16 %v2546_v20, %v2543_v33  ;;  %v6208_v33 = vpop.permute.xlu0 %6207  ;;  %v6205_v20 = vunpack.i.h.bf16 %v6203_v5  ;;  %v2956_v5 = vpack.c.bf16 %v7817_v6, %v7814_v47 }
 0x9aa   : > { %v6210_v59 = vunpack.i.h.bf16 %v6208_v33  ;;  %v6209_v25 = vunpack.i.l.bf16 %v6208_v33 }
 0x9ab   : > { %6232 = vrot.lane.b32.xlu0 %v6231_v50, %s7025_s20  ;;  %6182 = vrot.lane.b32.xlu1 %v6231_v50, %s7023_s26  ;;  %v2872_v49 = vpack.c.bf16 %v6205_v20, %v6204_v16 }
 0x9ac   : > { %5750 = vmatmul.mubr.msk.bf16.vlgmr.msra.gmra.mxu0 %vm1255_vm1, %v2771_v31  ;;  %v2874_v27 = vpack.c.bf16 %v6210_v59, %v6209_v25 }
 0x9ad   : > { %5754 = vmatpush3.bf16.xpose.msra.mxu0 %v3028_v26  ;;  %5757 = vmatprep.mubr.msk.bf16.mxu0 %vm7022_vm0, %v7021_v14  ;;  %v6223_v57 = vpop.permute.xlu0 %6222  ;;  %v3278_v4 = vsel %vm1255_vm1, %v2872_v49, 0 }
 0x9ae   : > { %5755 = vmatprep.subr.bf16.mxu0 %v7021_v14  ;;  %v6224_v34 = vunpack.i.l.bf16 %v6223_v57 }
 0x9af   : > { %6242 = vrot.lane.b32.xlu0 %v7884_v55, %s7023_s26  ;;  %6187 = vrot.lane.b32.xlu1 %v6186_v22, %s7023_s26 }
 0x9b3   : > { %6262 = vrot.lane.b32.xlu0 %v7884_v55, %s7024_s17  ;;  %6197 = vrot.lane.b32.xlu1 %v7845_v21, %s7024_s17 }
 0x9b5   : > { %5756 = vmatpush3.bf16.xpose.msra.mxu0 %v3025_v52 }
 0x9b6   : > { %5761 = vmatprep.subr.bf16.mxu0 %v7021_v14 }
 0x9b7   : > { %6212 = vrot.lane.b32.xlu1 %v6231_v50, %s7024_s17  ;;  %v3175_v50 = vsel %vm1255_vm1, %v2867_v11, 0 }
 0x9bb   : > { %6217 = vrot.lane.b32.xlu1 %v6186_v22, %s7024_s17 }
 0x9bc   : > { %5758 = vmatmul.mubr.msk.bf16.vlgmr.msra.gmra.mxu0 %vm1255_vm1, %v2772_v28 }
 0x9bd   : > { %5762 = vmatpush3.bf16.xpose.msra.mxu0 %v3078_v7  ;;  %5765 = vmatprep.mubr.msk.bf16.mxu0 %vm7022_vm0, %v7021_v14 }
 0x9be   : > { %5763 = vmatprep.subr.bf16.mxu0 %v7021_v14 }
 0x9bf   : > { %6227 = vrot.lane.b32.xlu1 %v7845_v21, %s7025_s20  ;;  %v7928_v21 = vpack.i.bf16 %v7827_v17, %v7822_v40 }
 0x9c3   : > { %6237 = vrot.lane.b32.xlu1 %v6186_v22, %s7025_s20 }
 0x9c5   : > { %5764 = vmatpush3.bf16.xpose.msra.mxu0 %v3075_v30  ;;  %v6225_v30 = vunpack.i.h.bf16 %v6223_v57 }
 0x9c6   : > { %5777 = vmatprep.subr.bf16.mxu0 %v7021_v14 }
 0x9c7   : > { %6247 = vrot.lane.b32.xlu1 %v7915_v8, %s7023_s26  ;;  %v2871_v58 = vpack.c.bf16 %v6225_v30, %v6224_v34 }
 0x9cb   : > { %6252 = vrot.lane.b32.xlu1 %v7922_v0, %s7023_s26 }
 0x9cf   : > { %6257 = vrot.lane.b32.xlu1 %v7928_v21, %s7023_s26 }
 0x9d3   : > { %6267 = vrot.lane.b32.xlu1 %v7915_v8, %s7024_s17 }
 0xa1d   : > { %v6183_v61 = vpop.permute.xlu1 %6182  ;;  %v6233_v24 = vpop.permute.xlu0 %6232 }
 0xa1e   : > { %v6185_v48 = vunpack.i.h.bf16 %v6183_v61  ;;  %v6184_v9 = vunpack.i.l.bf16 %v6183_v61  ;;  %v3328_v61 = vsel %vm1255_vm1, %v2874_v27, 0  ;;  %v6234_v42 = vunpack.i.l.bf16 %v6233_v24 }
 0xa20   : > { %v2773_v56 = vpack.c.bf16 %v6185_v48, %v6184_v9  ;;  %v3275_v9 = vsel %vm1255_vm1, %v2871_v58, 0 }
 0xa21   : > { %v6188_v29 = vpop.permute.xlu1 %6187 }
 0xa22   : > { %v6190_v36 = vunpack.i.h.bf16 %v6188_v29  ;;  %v6189_v63 = vunpack.i.l.bf16 %v6188_v29  ;;  %5766 = vmatmul.mubr.msk.bf16.vlgmr.msra.gmra.mxu0 %vm1255_vm1, %v2773_v56  ;;  %v6235_v56 = vunpack.i.h.bf16 %v6233_v24  ;;  %v6243_v29 = vpop.permute.xlu0 %6242 }
 0xa23   : > { %5778 = vmatpush3.bf16.xpose.msra.mxu0 %v3178_v3  ;;  %5781 = vmatprep.mubr.msk.bf16.mxu0 %vm7022_vm0, %v7021_v14 }
 0xa24   : > { %v2774_v51 = vpack.c.bf16 %v6190_v36, %v6189_v63  ;;  %5779 = vmatprep.subr.bf16.mxu0 %v7021_v14  ;;  %v2777_v36 = vpack.c.bf16 %v6235_v56, %v6234_v42 }
 0xa25   : > { %v6198_v13 = vpop.permute.xlu1 %6197 }
 0xa26   : > { %v6200_v45 = vunpack.i.h.bf16 %v6198_v13  ;;  %v6199_v43 = vunpack.i.l.bf16 %v6198_v13  ;;  %5774 = vmatmul.mubr.msk.bf16.vlgmr.msra.gmra.mxu1 %vm1255_vm1, %v2774_v51  ;;  %v6245_v51 = vunpack.i.h.bf16 %v6243_v29  ;;  %v6244_v13 = vunpack.i.l.bf16 %v6243_v29 }
 0xa27   : > { %5786 = vmatpush3.bf16.xpose.msra.mxu1 %v3228_v23  ;;  %5789 = vmatprep.mubr.msk.bf16.mxu1 %vm7022_vm0, %v7021_v14 }
 0xa28   : > { %5787 = vmatprep.subr.bf16.mxu1 %v7021_v14  ;;  %v2869_v31 = vpack.c.bf16 %v6200_v45, %v6199_v43  ;;  %v2955_v43 = vpack.c.bf16 %v7810_v62, %v7804_v54  ;;  %v2960_v23 = vpack.c.bf16 %v6245_v51, %v6244_v13 }
 0xa29   : > { %v6213_v15 = vpop.permute.xlu1 %6212 }
 0xa2a   : > { %v6215_v26 = vunpack.i.h.bf16 %v6213_v15  ;;  %v6214_v22 = vunpack.i.l.bf16 %v6213_v15  ;;  %v3225_v52 = vsel %vm1255_vm1, %v2869_v31, 0 }
 0xa2b   : > { %5780 = vmatpush3.bf16.xpose.msra.mxu0 %v3175_v50 }
 0xa2c   : > { %5793 = vmatprep.subr.bf16.mxu0 %v7021_v14  ;;  %v2775_v28 = vpack.c.bf16 %v6215_v26, %v6214_v22 }
 0xa2d   : > { %v6218_v44 = vpop.permute.xlu1 %6217 }
 0xa2e   : > { %v6220_v7 = vunpack.i.h.bf16 %v6218_v44  ;;  %v6219_v10 = vunpack.i.l.bf16 %v6218_v44 }
 0xa2f   : > { %5788 = vmatpush3.bf16.xpose.msra.mxu1 %v3225_v52 }
 0xa30   : > { %5801 = vmatprep.subr.bf16.mxu1 %v7021_v14  ;;  %v2776_v35 = vpack.c.bf16 %v6220_v7, %v6219_v10 }
 0xa31   : > { %v6228_v1 = vpop.permute.xlu1 %6227 }
 0xa32   : > { %5782 = vmatmul.mubr.msk.bf16.vlgmr.msra.gmra.mxu0 %vm1255_vm1, %v2775_v28  ;;  %v6230_v37 = vunpack.i.h.bf16 %v6228_v1  ;;  %v6229_v18 = vunpack.i.l.bf16 %v6228_v1 }
 0xa33   : > { %5794 = vmatpush3.bf16.xpose.msra.mxu0 %v3278_v4  ;;  %5797 = vmatprep.mubr.msk.bf16.mxu0 %vm7022_vm0, %v7021_v14 }
 0xa34   : > { %5795 = vmatprep.subr.bf16.mxu0 %v7021_v14  ;;  %v2873_v48 = vpack.c.bf16 %v6230_v37, %v6229_v18 }
 0xa35   : > { %v6238_v19 = vpop.permute.xlu1 %6237 }
 0xa36   : > { %5790 = vmatmul.mubr.msk.bf16.vlgmr.msra.gmra.mxu1 %vm1255_vm1, %v2776_v35  ;;  %v3325_v46 = vsel %vm1255_vm1, %v2873_v48, 0  ;;  %v6240_v63 = vunpack.i.h.bf16 %v6238_v19  ;;  %v6239_v3 = vunpack.i.l.bf16 %v6238_v19 }
 0xa37   : > { %5802 = vmatpush3.bf16.xpose.msra.mxu1 %v3328_v61  ;;  %5805 = vmatprep.mubr.msk.bf16.mxu1 %vm7022_vm0, %v7021_v14 }
 0xa38   : > { %5803 = vmatprep.subr.bf16.mxu1 %v7021_v14  ;;  %v2778_v45 = vpack.c.bf16 %v6240_v63, %v6239_v3 }
 0xa39   : > { %v7959_v38 = vpop.permute.xlu1 %6247 }
 0xa3b   : > { %5796 = vmatpush3.bf16.xpose.msra.mxu0 %v3275_v9 }
 0xa3c   : > { %5809 = vmatprep.subr.bf16.mxu0 %v7021_v14 }
 0xa3d   : > { %v6253_v11 = vpop.permute.xlu1 %6252 }
 0xa3e   : > { %v6255_v33 = vunpack.i.h.bf16 %v6253_v11  ;;  %v6254_v15 = vunpack.i.l.bf16 %v6253_v11 }
 0xa3f   : > { %5804 = vmatpush3.bf16.xpose.msra.mxu1 %v3325_v46 }
 0xa40   : > { %5825 = vmatprep.subr.bf16.mxu1 %v7021_v14  ;;  %v2959_v47 = vpack.c.bf16 %v6255_v33, %v6254_v15 }
 0xa42   : > { %5798 = vmatmul.mubr.msk.bf16.vlgmr.msra.gmra.mxu0 %vm1255_vm1, %v2777_v36 }
 0xa43   : > { %5810 = vmatpush3.bf16.msra.mxu0 %v2956_v5  ;;  %5813 = vmatprep.mubr.msk.bf16.mxu0 %vm7022_vm0, %v7021_v14 }
 0xa44   : > { %5811 = vmatprep.subr.bf16.mxu0 %v7021_v14 }
 0xa46   : > { %5806 = vmatmul.mubr.msk.bf16.vlgmr.msra.gmra.mxu1 %vm1255_vm1, %v2778_v45 }
 0xa47   : > { %5812 = vmatpush3.bf16.msra.mxu0 %v2955_v43  ;;  %5826 = vmatpush3.bf16.msra.mxu1 %v2960_v23 }
 0xa48   : > { %5827 = vmatprep.subr.bf16.mxu1 %v7021_v14  ;;  %5817 = vmatprep.subr.bf16.mxu0 %v7021_v14 }
 0xa49   : > { %5829 = vmatprep.mubr.msk.bf16.mxu1 %vm7022_vm0, %v7021_v14 }
 0xa4b   : > { %5828 = vmatpush3.bf16.msra.mxu1 %v2959_v47 }
 0xa4c   : > { %5841 = vmatprep.subr.bf16.mxu1 %v7021_v14 }
 0xa6c   : > { %v3014_v6 = vpop.f32.mrf.mxu0 }
 0xa6d   : > { %v7978_v54 = vmul.f32 0.17677669, %v3014_v6 }
 0xa6e   : > { %v5751_v62 = vpop.f32.mrf.mxu0 }
 0xa6f   : > { %v3387_v20 = vsel %vm1255_vm1, %v7978_v54, -inf }
 0xa70   : > { %3388 = vmax.xlane.f32.xlu0 %v3387_v20  ;;  %v3017_v16 = vpop.f32.mrf.mxu0 }
 0xa71   : > { %v7982_v31 = vmul.f32 0.17677669, %v3017_v16 }
 0xa72   : > { %v5752_v50 = vpop.f32.mrf.mxu0 }
 0xa73   : > { %v3390_v26 = vsel %vm1255_vm1, %v7982_v31, -inf }
 0xa74   : > { %3391 = vmax.xlane.f32.xlu1 %v3390_v26 }
 0xa7c   : > { %v3064_v22 = vpop.f32.mrf.mxu0 }
 0xa7d   : > { %v7986_v44 = vmul.f32 0.17677669, %v3064_v22 }
 0xa7e   : > { %v5759_v49 = vpop.f32.mrf.mxu0 }
 0xa7f   : > { %v3393_v59 = vsel %vm1255_vm1, %v7986_v44, -inf }
 0xa80   : > { %3394 = vmax.xlane.f32.xlu0 %v3393_v59  ;;  %v3067_v25 = vpop.f32.mrf.mxu0 }
 0xa81   : > { %v7990_v52 = vmul.f32 0.17677669, %v3067_v25 }
 0xa82   : > { %v5760_v57 = vpop.f32.mrf.mxu0 }
 0xa83   : > { %v3396_v28 = vsel %vm1255_vm1, %v7990_v52, -inf }
 0xa84   : > { %3397 = vmax.xlane.f32.xlu0 %v3396_v28  ;;  %v8038_v28 = vpop.permute.xlu0 %6262 }
 0xae2   : > { %v3114_v7 = vpop.f32.mrf.mxu0 }
 0xae3   : > { %v7996_v35 = vmul.f32 0.17677669, %v3114_v7 }
 0xae4   : > { %v5767_v10 = vpop.f32.mrf.mxu0 }
 0xae5   : > { %v3399_v24 = vsel %vm1255_vm1, %v7996_v35, -inf }
 0xae6   : > { %v3117_v1 = vpop.f32.mrf.mxu0  ;;  %v3164_v27 = vpop.f32.mrf.mxu1 }
 0xae7   : > { %v7994_v30 = vmul.f32 0.17677669, %v3164_v27  ;;  %v8002_v61 = vmul.f32 0.17677669, %v3117_v1 }
 0xae8   : > { %v5768_v34 = vpop.f32.mrf.mxu0  ;;  %v5775_v4 = vpop.f32.mrf.mxu1 }
 0xae9   : > { %v3405_v58 = vsel %vm1255_vm1, %v7994_v30, -inf  ;;  %v3402_v9 = vsel %vm1255_vm1, %v8002_v61, -inf }
 0xaea   : > { %3406 = vmax.xlane.f32.xlu0 %v3405_v58  ;;  %v3167_v37 = vpop.f32.mrf.mxu1 }
 0xaeb   : > { %v8000_v18 = vmul.f32 0.17677669, %v3167_v37 }
 0xaec   : > { %v5776_v19 = vpop.f32.mrf.mxu1 }
 0xaed   : > { %v3408_v48 = vsel %vm1255_vm1, %v8000_v18, -inf }
 0xaee   : > { %3400 = vmax.xlane.f32.xlu0 %v3399_v24  ;;  %3409 = vmax.xlane.f32.xlu1 %v3408_v48  ;;  %v8058_v48 = vpop.permute.xlu1 %6257 }
 0xaf2   : > { %v3214_v56 = vpop.f32.mrf.mxu0  ;;  %3403 = vmax.xlane.f32.xlu1 %v3402_v9 }
 0xaf3   : > { %v8012_v5 = vmul.f32 0.17677669, %v3214_v56  ;;  %v8064_v56 = vpop.permute.xlu1 %6267 }
 0xaf4   : > { %v5783_v42 = vpop.f32.mrf.mxu0 }
 0xaf5   : > { %v3411_v23 = vsel %vm1255_vm1, %v8012_v5, -inf }
 0xaf6   : > { %v3217_v29 = vpop.f32.mrf.mxu0  ;;  %v3264_v46 = vpop.f32.mrf.mxu1 }
 0xaf7   : > { %v8010_v36 = vmul.f32 0.17677669, %v3264_v46  ;;  %v8018_v43 = vmul.f32 0.17677669, %v3217_v29 }
 0xaf8   : > { %v5784_v63 = vpop.f32.mrf.mxu0  ;;  %v5791_v3 = vpop.f32.mrf.mxu1 }
 0xaf9   : > { %v3417_v51 = vsel %vm1255_vm1, %v8010_v36, -inf  ;;  %v3414_v15 = vsel %vm1255_vm1, %v8018_v43, -inf  ;;  %v3389_v7 = vpop.xlane.xlu0 %3388 }
 0xafa   : > { %3418 = vmax.xlane.f32.xlu0 %v3417_v51  ;;  %v3267_v13 = vpop.f32.mrf.mxu1  ;;  %v3435_v10 = vsub.f32 %v7978_v54, %v3389_v7 }
 0xafb   : > { %v8016_v11 = vmul.f32 0.17677669, %v3267_v13 }
 0xafc   : > { %v5792_v45 = vpop.f32.mrf.mxu1  ;;  %v3451_v27 = vmul.f32 1.442695, %v3435_v10 }
 0xafd   : > { %v3420_v33 = vsel %vm1255_vm1, %v8016_v11, -inf  ;;  %v3392_v42 = vpop.xlane.xlu1 %3391 }
 0xafe   : > { %3412 = vmax.xlane.f32.xlu0 %v3411_v23  ;;  %3421 = vmax.xlane.f32.xlu1 %v3420_v33  ;;  %6571 = vpow2.f32 %v3451_v27  ;;  %v3436_v29 = vsub.f32 %v7982_v31, %v3392_v42 }
 0xb00   : > { %v3453_v63 = vmul.f32 1.442695, %v3436_v29 }
 0xb02   : > { %v3314_v47 = vpop.f32.mrf.mxu0  ;;  %3415 = vmax.xlane.f32.xlu1 %v3414_v15 }
 0xb03   : > { %v8028_v22 = vmul.f32 0.17677669, %v3314_v47 }
 0xb04   : > { %v5799_v6 = vpop.f32.mrf.mxu0 }
 0xb05   : > { %v3423_v57 = vsel %vm1255_vm1, %v8028_v22, -inf }
 0xb06   : > { %v3317_v62 = vpop.f32.mrf.mxu0  ;;  %v3364_v20 = vpop.f32.mrf.mxu1 }
 0xb07   : > { %v8026_v16 = vmul.f32 0.17677669, %v3364_v20  ;;  %v8046_v58 = vmul.f32 0.17677669, %v3317_v62 }
 0xb08   : > { %v5800_v50 = vpop.f32.mrf.mxu0  ;;  %v5807_v26 = vpop.f32.mrf.mxu1 }
 0xb09   : > { %v3429_v49 = vsel %vm1255_vm1, %v8026_v16, -inf  ;;  %v3395_v1 = vpop.xlane.xlu0 %3394 }
 0xb0a   : > { %3430 = vmax.xlane.f32.xlu0 %v3429_v49  ;;  %v3367_v59 = vpop.f32.mrf.mxu1  ;;  %v3437_v34 = vsub.f32 %v7986_v44, %v3395_v1 }
 0xb0b   : > { %v8044_v4 = vmul.f32 0.17677669, %v3367_v59  ;;  %v8052_v54 = vpop.eup %6571 }
 0xb0c   : > { %v5808_v25 = vpop.f32.mrf.mxu1  ;;  %v3455_v37 = vmul.f32 1.442695, %v3437_v34  ;;  %v3483_v44 = vsel %vm1255_vm1, %v8052_v54, 0.0 }
 0xb0d   : > { %v3432_v19 = vsel %vm1255_vm1, %v8044_v4, -inf  ;;  %v3398_v46 = vpop.xlane.xlu0 %3397 }
 0xb0e   : > { %3424 = vmax.xlane.f32.xlu0 %v3423_v57  ;;  %6573 = vpow2.f32 %v3455_v37  ;;  %v3438_v3 = vsub.f32 %v7990_v52, %v3398_v46 }
 0xb0f   : > { %6575 = vpow2.f32 %v3453_v63 }
 0xb10   : > { %v3457_v51 = vmul.f32 1.442695, %v3438_v3 }
 0xb12   : > { %6577 = vpow2.f32 %v3457_v51 }
 0xb13   : > { %6277 = vrot.lane.b32.xlu1 %v7928_v21, %s7024_s17 }
 0xb1b   : > { %v8056_v24 = vpop.eup %6573 }
 0xb1c   : > { %v3489_v9 = vsel %vm1255_vm1, %v8056_v24, 0.0  ;;  %v8068_v13 = vpop.eup %6575 }
 0xb1d   : > { %v3486_v45 = vsel %vm1255_vm1, %v8068_v13, 0.0 }
 0xb1f   : > { %v8072_v23 = vpop.eup %6577 }
 0xb20   : > { %v3492_v33 = vsel %vm1255_vm1, %v8072_v23, 0.0 }
 0xb24   : > { %6272 = vrot.lane.b32.xlu0 %v7922_v0, %s7024_s17 }
 0xb28   : > { %6282 = vrot.lane.b32.xlu0 %v7884_v55, %s7025_s20  ;;  %v3426_v55 = vsel %vm1255_vm1, %v8046_v58, -inf }
 0xb37   : > { %3433 = vmax.xlane.f32.xlu1 %v3432_v19 }
 0xb3b   : > { %3427 = vmax.xlane.f32.xlu1 %v3426_v55 }
 0xb47   : > { %3484 = vadd.xlane.f32.xlu0 %v3483_v44 }
 0xb4b   : > { %3490 = vadd.xlane.f32.xlu0 %v3489_v9 }
 0xb4c   : > { %6287 = vrot.lane.b32.xlu1 %v7915_v8, %s7025_s20 }
 0xb70   : > { %3487 = vadd.xlane.f32.xlu1 %v3486_v45 }
 0xb73   : > { %v3407_v8 = vpop.xlane.xlu0 %3406 }
 0xb74   : > { %v3441_v31 = vsub.f32 %v7994_v30, %v3407_v8  ;;  %3493 = vadd.xlane.f32.xlu1 %v3492_v33 }
 0xb76   : > { %v3463_v15 = vmul.f32 1.442695, %v3441_v31 }
 0xb77   : > { %v3401_v52 = vpop.xlane.xlu0 %3400  ;;  %v3410_v47 = vpop.xlane.xlu1 %3409 }
 0xb78   : > { %6579 = vpow2.f32 %v3463_v15  ;;  %v3439_v6 = vsub.f32 %v7996_v35, %v3401_v52  ;;  %v3442_v62 = vsub.f32 %v8000_v18, %v3410_v47 }
 0xb7a   : > { %v3459_v20 = vmul.f32 1.442695, %v3439_v6  ;;  %v3465_v50 = vmul.f32 1.442695, %v3442_v62 }
 0xb7b   : > { %v3404_v26 = vpop.xlane.xlu1 %3403 }
 0xb7c   : > { %6581 = vpow2.f32 %v3459_v20  ;;  %v3440_v49 = vsub.f32 %v8002_v61, %v3404_v26 }
 0xb7d   : > { %6583 = vpow2.f32 %v3465_v50 }
 0xb7e   : > { %v3461_v59 = vmul.f32 1.442695, %v3440_v49 }
 0xb80   : > { %6585 = vpow2.f32 %v3461_v59 }
 0xb83   : > { %v3419_v25 = vpop.xlane.xlu0 %3418 }
 0xb84   : > { %v3445_v30 = vsub.f32 %v8010_v36, %v3419_v25 }
 0xb85   : > { %v8081_v57 = vpop.eup %6579 }
 0xb86   : > { %v3471_v7 = vmul.f32 1.442695, %v3445_v30  ;;  %v3501_v35 = vsel %vm1255_vm1, %v8081_v57, 0.0 }
 0xb87   : > { %v3413_v10 = vpop.xlane.xlu0 %3412  ;;  %v3422_v18 = vpop.xlane.xlu1 %3421  ;;  %3502 = vadd.xlane.f32.xlu0 %v3501_v35 }
 0xb88   : > { %6587 = vpow2.f32 %v3471_v7  ;;  %v3443_v1 = vsub.f32 %v8012_v5, %v3413_v10  ;;  %v3446_v61 = vsub.f32 %v8016_v11, %v3422_v18 }
 0xb89   : > { %v8087_v27 = vpop.eup %6581 }
 0xb8a   : > { %v8089_v34 = vpop.eup %6583  ;;  %v3467_v37 = vmul.f32 1.442695, %v3443_v1  ;;  %v3473_v36 = vmul.f32 1.442695, %v3446_v61  ;;  %v3495_v19 = vsel %vm1255_vm1, %v8087_v27, 0.0 }
 0xb8b   : > { %v3416_v55 = vpop.xlane.xlu1 %3415  ;;  %3496 = vadd.xlane.f32.xlu0 %v3495_v19  ;;  %v3504_v44 = vsel %vm1255_vm1, %v8089_v34, 0.0 }
 0xb8c   : > { %6589 = vpow2.f32 %v3467_v37  ;;  %v3444_v9 = vsub.f32 %v8018_v43, %v3416_v55  ;;  %3505 = vadd.xlane.f32.xlu1 %v3504_v44 }
 0xb8d   : > { %v8096_v5 = vpop.eup %6585  ;;  %6591 = vpow2.f32 %v3473_v36 }
 0xb8e   : > { %v3469_v11 = vmul.f32 1.442695, %v3444_v9  ;;  %v3498_v42 = vsel %vm1255_vm1, %v8096_v5, 0.0 }
 0xb8f   : > { %v8126_v50 = vpop.permute.xlu1 %6277 }
 0xb90   : > { %6593 = vpow2.f32 %v3469_v11  ;;  %3499 = vadd.xlane.f32.xlu1 %v3498_v42 }
 0xb93   : > { %v3431_v29 = vpop.xlane.xlu0 %3430 }
 0xb94   : > { %v3449_v46 = vsub.f32 %v8026_v16, %v3431_v29  ;;  %v2958_v29 = vpack.c.bf16 %v7909_v32, %v7831_v12 }
 0xb95   : > { %v8101_v63 = vpop.eup %6587 }
 0xb96   : > { %v3479_v3 = vmul.f32 1.442695, %v3449_v46  ;;  %v3513_v51 = vsel %vm1255_vm1, %v8101_v63, 0.0 }
 0xb97   : > { %3514 = vadd.xlane.f32.xlu0 %v3513_v51  ;;  %v3425_v43 = vpop.xlane.xlu0 %3424  ;;  %v6249_v51 = vunpack.i.l.bf16 %v7959_v38 }
 0xb98   : > { %6595 = vpow2.f32 %v3479_v3  ;;  %v3447_v45 = vsub.f32 %v8028_v22, %v3425_v43 }
 0xb99   : > { %v8106_v8 = vpop.eup %6589 }
 0xb9a   : > { %v8108_v33 = vpop.eup %6591  ;;  %v3475_v31 = vmul.f32 1.442695, %v3447_v45  ;;  %v3507_v15 = vsel %vm1255_vm1, %v8106_v8, 0.0 }
 0xb9b   : > { %3508 = vadd.xlane.f32.xlu0 %v3507_v15  ;;  %v3516_v16 = vsel %vm1255_vm1, %v8108_v33, 0.0  ;;  %v6259_v15 = vunpack.i.l.bf16 %v8058_v48 }
 0xb9c   : > { %6597 = vpow2.f32 %v3475_v31  ;;  %3517 = vadd.xlane.f32.xlu1 %v3516_v16  ;;  %v6260_v31 = vunpack.i.h.bf16 %v8058_v48 }
 0xb9d   : > { %v8114_v52 = vpop.eup %6593 }
 0xb9e   : > { %v3510_v47 = vsel %vm1255_vm1, %v8114_v52, 0.0 }
 0xba0   : > { %3511 = vadd.xlane.f32.xlu1 %v3510_v47  ;;  %v6270_v47 = vunpack.i.h.bf16 %v8064_v56 }
 0xba5   : > { %v8118_v22 = vpop.eup %6595 }
 0xba6   : > { %v3525_v6 = vsel %vm1255_vm1, %v8118_v22, 0.0 }
 0xba7   : > { %3526 = vadd.xlane.f32.xlu0 %v3525_v6  ;;  %v6269_v6 = vunpack.i.l.bf16 %v8064_v56  ;;  %v6279_v56 = vunpack.i.l.bf16 %v8126_v50 }
 0xba9   : > { %v8122_v62 = vpop.eup %6597 }
 0xbaa   : > { %v3519_v20 = vsel %vm1255_vm1, %v8122_v62, 0.0 }
 0xbab   : > { %3520 = vadd.xlane.f32.xlu0 %v3519_v20 }
 0xbc0   : > { %v3434_v26 = vpop.xlane.xlu1 %3433 }
 0xbc1   : > { %v3450_v49 = vsub.f32 %v8044_v4, %v3434_v26  ;;  %6292 = vrot.lane.b32.xlu0 %v7922_v0, %s7025_s20  ;;  %v8142_v0 = vpop.permute.xlu0 %6272 }
 0xbc3   : > { %v3481_v59 = vmul.f32 1.442695, %v3450_v49 }
 0xbc4   : > { %v3428_v25 = vpop.xlane.xlu1 %3427 }
 0xbc5   : > { %6599 = vpow2.f32 %v3481_v59  ;;  %v3448_v30 = vsub.f32 %v8046_v58, %v3428_v25  ;;  %v8144_v58 = vpop.permute.xlu0 %6282 }
 0xbc7   : > { %v3477_v7 = vmul.f32 1.442695, %v3448_v30  ;;  %v6265_v30 = vunpack.i.h.bf16 %v8038_v28 }
 0xbc8   : > { %v8146_v1 = vpop.permute.xlu1 %6287 }
 0xbc9   : > { %6601 = vpow2.f32 %v3477_v7 }
 0xbd0   : > { %v3485_v61 = vpop.xlane.xlu0 %3484 }
 0xbd1   : > { %6603 = vrcp.f32 %v3485_v61  ;;  %v2966_v61 = vpack.c.bf16 %v6270_v47, %v6269_v6 }
 0xbd2   : > { %v8132_v35 = vpop.eup %6599 }
 0xbd3   : > { %v3528_v10 = vsel %vm1255_vm1, %v8132_v35, 0.0 }
 0xbd4   : > { %3529 = vadd.xlane.f32.xlu1 %v3528_v10  ;;  %v3491_v36 = vpop.xlane.xlu0 %3490 }
 0xbd6   : > { %v8136_v18 = vpop.eup %6601 }
 0xbd7   : > { %v3522_v4 = vsel %vm1255_vm1, %v8136_v18, 0.0 }
 0xbd8   : > { %3523 = vadd.xlane.f32.xlu1 %v3522_v4  ;;  %v6264_v4 = vunpack.i.l.bf16 %v8038_v28 }
 0xbde   : > { %v6604_v55 = vpop.eup %6603 }
 0xbdf   : > { %v3547_v9 = vmul.f32 %v6604_v55, %v8052_v54  ;;  %v2957_v54 = vpack.c.bf16 %v7827_v17, %v7822_v40 }
 0xbe9   : > { %6297 = vrot.lane.b32.xlu1 %v7928_v21, %s7025_s20 }
 0xbf9   : > { %v3488_v37 = vpop.xlane.xlu1 %3487 }
 0xbfa   : > { %6605 = vrcp.f32 %v3488_v37  ;;  %v6280_v37 = vunpack.i.h.bf16 %v8126_v50  ;;  %v6275_v50 = vunpack.i.h.bf16 %v8142_v0 }
 0xbfc   : > { %v2965_v55 = vpack.c.bf16 %v6280_v37, %v6279_v56 }
 0xbfd   : > { %v3494_v19 = vpop.xlane.xlu1 %3493 }
 0xbfe   : > { %6607 = vrcp.f32 %v3494_v19  ;;  %v2964_v19 = vpack.c.bf16 %v6265_v30, %v6264_v4 }
 0xbff   : > { %6609 = vrcp.f32 %v3491_v36 }
 0xc07   : > { %v6606_v44 = vpop.eup %6605 }
 0xc08   : > { %v3548_v21 = vmul.f32 %v6606_v44, %v8068_v13  ;;  %v6250_v13 = vunpack.i.h.bf16 %v7959_v38  ;;  %v2961_v38 = vpack.c.bf16 %v6260_v31, %v6259_v15  ;;  %v6274_v44 = vunpack.i.l.bf16 %v8142_v0 }
 0xc09   : > { %v6290_v0 = vunpack.i.h.bf16 %v8146_v1 }
 0xc0a   : > { %v3563_v11 = vpack.c.bf16 %v3548_v21, %v3547_v9  ;;  %v2962_v45 = vpack.c.bf16 %v6250_v13, %v6249_v51  ;;  %v6285_v51 = vunpack.i.h.bf16 %v8144_v58 }
 0xc0b   : > { %v6608_v42 = vpop.eup %6607 }
 0xc0c   : > { %5814 = vmatmul.mubr.msk.bf16.vlgmr.msra.gmra.mxu0 %vm1255_vm1, %v3563_v11  ;;  %v6610_v46 = vpop.eup %6609  ;;  %v3550_v3 = vmul.f32 %v6608_v42, %v8072_v23  ;;  %v6289_v11 = vunpack.i.l.bf16 %v8146_v1 }
 0xc0d   : > { %5818 = vmatpush3.bf16.msra.mxu0 %v2958_v29  ;;  %5821 = vmatprep.mubr.msk.bf16.mxu0 %vm7022_vm0, %v7021_v14  ;;  %v3549_v12 = vmul.f32 %v6610_v46, %v8056_v24 }
 0xc0e   : > { %5819 = vmatprep.subr.bf16.mxu0 %v7021_v14 }
 0xc0f   : > { %v3564_v32 = vpack.c.bf16 %v3550_v3, %v3549_v12  ;;  %v2970_v12 = vpack.c.bf16 %v6290_v0, %v6289_v11  ;;  %v6405_v0 = vld [vmem:[#allocation13 + $0x28] sm:$0xff]  }
 0xc10   : > { %v3503_v43 = vpop.xlane.xlu0 %3502 }
 0xc11   : > { %5820 = vmatpush3.bf16.msra.mxu0 %v2957_v54  ;;  %6611 = vrcp.f32 %v3503_v43  ;;  %v6284_v43 = vunpack.i.l.bf16 %v8144_v58 }
 0xc12   : > { %5833 = vmatprep.subr.bf16.mxu0 %v7021_v14 }
 0xc14   : > { %5822 = vmatmul.mubr.msk.bf16.vlgmr.msra.gmra.mxu0 %vm1255_vm1, %v3564_v32  ;;  %v3497_v40 = vpop.xlane.xlu0 %3496 }
 0xc15   : > { %5834 = vmatpush3.bf16.msra.mxu0 %v2962_v45  ;;  %v3506_v17 = vpop.xlane.xlu1 %3505  ;;  %5837 = vmatprep.mubr.msk.bf16.mxu0 %vm7022_vm0, %v7021_v14 }
 0xc16   : > { %6613 = vrcp.f32 %v3506_v17  ;;  %5835 = vmatprep.subr.bf16.mxu0 %v7021_v14 }
 0xc17   : > { %6615 = vrcp.f32 %v3497_v40 }
 0xc19   : > { %5836 = vmatpush3.bf16.msra.mxu0 %v2961_v38  ;;  %v3500_v24 = vpop.xlane.xlu1 %3499 }
 0xc1a   : > { %6617 = vrcp.f32 %v3500_v24  ;;  %5849 = vmatprep.subr.bf16.mxu0 %v7021_v14 }
 0xc1e   : > { %v6612_v23 = vpop.eup %6611 }
 0xc1f   : > { %v3553_v20 = vmul.f32 %v6612_v23, %v8081_v57 }
 0xc20   : > { %v3515_v48 = vpop.xlane.xlu0 %3514 }
 0xc21   : > { %6619 = vrcp.f32 %v3515_v48 }
 0xc23   : > { %v6614_v16 = vpop.eup %6613 }
 0xc24   : > { %v3554_v26 = vmul.f32 %v6614_v16, %v8089_v34  ;;  %v6616_v49 = vpop.eup %6615  ;;  %v3509_v59 = vpop.xlane.xlu0 %3508 }
 0xc25   : > { %v3518_v25 = vpop.xlane.xlu1 %3517  ;;  %v3551_v57 = vmul.f32 %v6616_v49, %v8087_v27  ;;  %v2963_v27 = vpack.c.bf16 %v6275_v50, %v6274_v44  ;;  %v6403_v44 = vld [vmem:[#allocation13 + $0x38] sm:$0xff]  }
 0xc26   : > { %6621 = vrcp.f32 %v3518_v25  ;;  %v3566_v7 = vpack.c.bf16 %v3554_v26, %v3553_v20 }
 0xc27   : > { %v6618_v10 = vpop.eup %6617  ;;  %6623 = vrcp.f32 %v3509_v59 }
 0xc28   : > { %5838 = vmatmul.mubr.msk.bf16.vlgmr.msra.gmra.mxu0 %vm1255_vm1, %v3566_v7  ;;  %v3552_v34 = vmul.f32 %v6618_v10, %v8096_v5 }
 0xc29   : > { %5850 = vmatpush3.bf16.msra.mxu0 %v2966_v61  ;;  %v3512_v36 = vpop.xlane.xlu1 %3511  ;;  %5853 = vmatprep.mubr.msk.bf16.mxu0 %vm7022_vm0, %v7021_v14 }
 0xc2a   : > { %6625 = vrcp.f32 %v3512_v36  ;;  %5851 = vmatprep.subr.bf16.mxu0 %v7021_v14  ;;  %v3565_v28 = vpack.c.bf16 %v3552_v34, %v3551_v57 }
 0xc2c   : > { %5830 = vmatmul.mubr.msk.bf16.vlgmr.msra.gmra.mxu1 %vm1255_vm1, %v3565_v28 }
 0xc2d   : > { %5842 = vmatpush3.bf16.msra.mxu1 %v2964_v19  ;;  %5852 = vmatpush3.bf16.msra.mxu0 %v2965_v55 }
 0xc2e   : > { %5843 = vmatprep.subr.bf16.mxu1 %v7021_v14  ;;  %5865 = vmatprep.subr.bf16.mxu0 %v7021_v14  ;;  %v6620_v9 = vpop.eup %6619 }
 0xc2f   : > { %5845 = vmatprep.mubr.msk.bf16.mxu1 %vm7022_vm0, %v7021_v14  ;;  %v3557_v29 = vmul.f32 %v6620_v9, %v8101_v63 }
 0xc30   : > { %v3527_v5 = vpop.xlane.xlu0 %3526 }
 0xc31   : > { %5844 = vmatpush3.bf16.msra.mxu1 %v2963_v27  ;;  %6627 = vrcp.f32 %v3527_v5  ;;  %v6404_v27 = vld [vmem:[#allocation13 + $0x30] sm:$0xff]  }
 0xc32   : > { %5857 = vmatprep.subr.bf16.mxu1 %v7021_v14 }
 0xc33   : > { %v6622_v21 = vpop.eup %6621 }
 0xc34   : > { %v3521_v42 = vpop.xlane.xlu0 %3520  ;;  %v3558_v46 = vmul.f32 %v6622_v21, %v8108_v33  ;;  %v6624_v3 = vpop.eup %6623  ;;  %v2968_v33 = vpack.c.bf16 %v6285_v51, %v6284_v43  ;;  %v6407_v51 = vld [vmem:[#allocation13 + $0x18] sm:$0xff]   ;;  %v6408_v43 = vld [vmem:[#allocation13 + $0x10] sm:$0xff]  }
 0xc35   : > { %v3555_v45 = vmul.f32 %v6624_v3, %v8106_v8  ;;  %v6406_v3 = vld [vmem:[#allocation13 + $0x20] sm:$0xff]  }
 0xc36   : > { %v3568_v54 = vpack.c.bf16 %v3558_v46, %v3557_v29 }
 0xc37   : > { %v6626_v13 = vpop.eup %6625 }
 0xc38   : > { %5854 = vmatmul.mubr.msk.bf16.vlgmr.msra.gmra.mxu0 %vm1255_vm1, %v3568_v54  ;;  %v6293_v32 = vpop.permute.xlu0 %6292  ;;  %v3556_v1 = vmul.f32 %v6626_v13, %v8114_v52 }
 0xc39   : > { %5866 = vmatpush3.bf16.msra.mxu0 %v2970_v12  ;;  %5869 = vmatprep.mubr.msk.bf16.mxu0 %vm7022_vm0, %v7021_v14  ;;  %v6295_v31 = vunpack.i.h.bf16 %v6293_v32  ;;  %v6294_v15 = vunpack.i.l.bf16 %v6293_v32  ;;  %v6409_v12 = vld [vmem:[#allocation13 + $0x8] sm:$0xff]   ;;  %v6410_v32 = vld [vmem:[#allocation13] sm:$0xff]  }
 0xc3a   : > { %v3567_v63 = vpack.c.bf16 %v3556_v1, %v3555_v45  ;;  %5867 = vmatprep.subr.bf16.mxu0 %v7021_v14 }
 0xc3b   : > { %v2967_v8 = vpack.c.bf16 %v6295_v31, %v6294_v15 }
 0xc3c   : > { %5846 = vmatmul.mubr.msk.bf16.vlgmr.msra.gmra.mxu1 %vm1255_vm1, %v3567_v63 }
 0xc3d   : > { %5858 = vmatpush3.bf16.msra.mxu1 %v2968_v33  ;;  %5861 = vmatprep.mubr.msk.bf16.mxu1 %vm7022_vm0, %v7021_v14 }
 0xc3e   : > { %5859 = vmatprep.subr.bf16.mxu1 %v7021_v14  ;;  %v6628_v48 = vpop.eup %6627 }
 0xc3f   : > { %v3561_v16 = vmul.f32 %v6628_v48, %v8118_v22 }
 0xc41   : > { %5860 = vmatpush3.bf16.msra.mxu1 %v2967_v8 }
 0xc42   : > { %5873 = vmatprep.subr.bf16.mxu1 %v6403_v44 }
 0xc5d   : > { %v3530_v52 = vpop.xlane.xlu1 %3529 }
 0xc5e   : > { %6629 = vrcp.f32 %v3530_v52 }
 0xc5f   : > { %6631 = vrcp.f32 %v3521_v42 }
 0xc61   : > { %v3524_v58 = vpop.xlane.xlu1 %3523 }
 0xc62   : > { %6633 = vrcp.f32 %v3524_v58 }
 0xc65   : > { %v6298_v40 = vpop.permute.xlu1 %6297 }
 0xc66   : > { %v6300_v17 = vunpack.i.h.bf16 %v6298_v40  ;;  %v6299_v38 = vunpack.i.l.bf16 %v6298_v40 }
 0xc68   : > { %v2969_v24 = vpack.c.bf16 %v6300_v17, %v6299_v38 }
 0xc6a   : > { %5868 = vmatpush3.bf16.msra.mxu0 %v2969_v24 }
 0xc6b   : > { %v6630_v23 = vpop.eup %6629 }
 0xc6c   : > { %v3562_v47 = vmul.f32 %v6630_v23, %v8132_v35  ;;  %v6632_v14 = vpop.eup %6631 }
 0xc6d   : > { %v3559_v26 = vmul.f32 %v6632_v14, %v8122_v62 }
 0xc6e   : > { %v3570_v6 = vpack.c.bf16 %v3562_v47, %v3561_v16 }
 0xc6f   : > { %v6634_v20 = vpop.eup %6633 }
 0xc70   : > { %5870 = vmatmul.mubr.msk.bf16.vlgmr.msra.gmra.mxu0 %vm1255_vm1, %v3570_v6  ;;  %v3560_v49 = vmul.f32 %v6634_v20, %v8136_v18 }
 0xc71   : > { %4427 = vmatprep.mubr.bf16.mxu0 %v7020_v39 }
 0xc72   : > { %v3569_v59 = vpack.c.bf16 %v3560_v49, %v3559_v26 }
 0xc74   : > { %5862 = vmatmul.mubr.msk.bf16.vlgmr.msra.gmra.mxu1 %vm1255_vm1, %v3569_v59 }
 0xc75   : > { %5874 = vmatpush3.bf16.msra.mxu1 %v6403_v44 }
 0xc76   : > { %5875 = vmatprep.subr.bf16.mxu1 %v6404_v27 }
 0xc79   : > { %5876 = vmatpush3.bf16.msra.mxu1 %v6404_v27 }
 0xc7a   : > { %5877 = vmatprep.subr.bf16.mxu1 %v6405_v0 }
 0xc7d   : > { %5878 = vmatpush3.bf16.msra.mxu1 %v6405_v0 }
 0xc7e   : > { %5879 = vmatprep.subr.bf16.mxu1 %v6406_v3 }
 0xc81   : > { %5880 = vmatpush3.bf16.msra.mxu1 %v6406_v3 }
 0xc82   : > { %5881 = vmatprep.subr.bf16.mxu1 %v6407_v51 }
 0xc85   : > { %5882 = vmatpush3.bf16.msra.mxu1 %v6407_v51  ;;  %v6414_v51 = vld [vmem:[#allocation14 + $0xe8] ss:$16 sps:$4 sm:$0xff]  }
 0xc86   : > { %5883 = vmatprep.subr.bf16.mxu1 %v6408_v43 }
 0xc89   : > { %5884 = vmatpush3.bf16.msra.mxu1 %v6408_v43 }
 0xc8a   : > { %5885 = vmatprep.subr.bf16.mxu1 %v6409_v12 }
 0xc8d   : > { %5886 = vmatpush3.bf16.msra.mxu1 %v6409_v12 }
 0xc8e   : > { %5887 = vmatprep.subr.bf16.mxu1 %v6410_v32 }
 0xc91   : > { %5888 = vmatpush3.bf16.msra.mxu1 %v6410_v32 }
 0xccc   : > { %v8215_v25 = vpop.f32.mrf.mxu0 }
 0xcce   : > { %v5815_v30 = vpop.f32.mrf.mxu0 }
 0xcd0   : > { %v8217_v22 = vpop.f32.mrf.mxu0 }
 0xcd2   : > { %v5816_v35 = vpop.f32.mrf.mxu0 }
 0xcd4   : > { %v8219_v7 = vpop.f32.mrf.mxu0 }
 0xcd6   : > { %v5823_v10 = vpop.f32.mrf.mxu0 }
 0xcd8   : > { %v8221_v4 = vpop.f32.mrf.mxu0 }
 0xcda   : > { %v5824_v61 = vpop.f32.mrf.mxu0 }
 0xce8   : > { %v3740_v62 = vpop.f32.mrf.mxu0 }
 0xcea   : > { %v5839_v37 = vpop.f32.mrf.mxu0 }
 0xcec   : > { %v3696_v18 = vpop.f32.mrf.mxu1  ;;  %v3743_v56 = vpop.f32.mrf.mxu0 }
 0xced   : > { %v6301_v57 = vpack.i.bf16 %v3743_v56, %v3740_v62 }
 0xcee   : > { %v5831_v34 = vpop.f32.mrf.mxu1  ;;  %v5840_v36 = vpop.f32.mrf.mxu0 }
 0xcef   : > { %6302 = vrot.lane.b32.xlu1 %v6301_v57, %s7025_s20 }
 0xcf0   : > { %v3699_v28 = vpop.f32.mrf.mxu1 }
 0xcf1   : > { %v6306_v19 = vpack.i.bf16 %v3699_v28, %v3696_v18 }
 0xcf2   : > { %v5832_v55 = vpop.f32.mrf.mxu1 }
 0xcf3   : > { %6307 = vrot.lane.b32.xlu0 %v6306_v19, %s7025_s20 }
 0xcf8   : > { %v3828_v50 = vpop.f32.mrf.mxu0 }
 0xcfa   : > { %v5855_v5 = vpop.f32.mrf.mxu0 }
 0xcfc   : > { %v3784_v9 = vpop.f32.mrf.mxu1  ;;  %v3831_v21 = vpop.f32.mrf.mxu0 }
 0xcfd   : > { %v6311_v11 = vpack.i.bf16 %v3831_v21, %v3828_v50 }
 0xcfe   : > { %v5847_v42 = vpop.f32.mrf.mxu1  ;;  %v5856_v29 = vpop.f32.mrf.mxu0 }
 0xcff   : > { %6312 = vrot.lane.b32.xlu1 %v6311_v11, %s7024_s17 }
 0xd00   : > { %v3787_v46 = vpop.f32.mrf.mxu1 }
 0xd01   : > { %v6316_v54 = vpack.i.bf16 %v3787_v46, %v3784_v9  ;;  %v5333_v9 = vld [vmem:[%s8506_s12] ss:$0 sm:$0xff] }
 0xd02   : > { %v5848_v13 = vpop.f32.mrf.mxu1 }
 0xd03   : > { %6317 = vrot.lane.b32.xlu0 %v6316_v54, %s7024_s17  ;;  %v6413_v13 = vld [vmem:[#allocation14 + $0xe4] ss:$16 sps:$4 sm:$0xff]  }
 0xd04   : > { %4395 = vmatprep.subr.bf16.mxu0 %v6413_v13 }
 0xd30   : > { %v3916_v45 = vpop.f32.mrf.mxu0 }
 0xd32   : > { %v5871_v1 = vpop.f32.mrf.mxu0 }
 0xd34   : > { %v3872_v63 = vpop.f32.mrf.mxu1  ;;  %v3919_v33 = vpop.f32.mrf.mxu0 }
 0xd35   : > { %v6326_v31 = vpack.i.bf16 %v3919_v33, %v3916_v45 }
 0xd36   : > { %v5863_v15 = vpop.f32.mrf.mxu1  ;;  %v5872_v8 = vpop.f32.mrf.mxu0 }
 0xd37   : > { %6327 = vrot.lane.b32.xlu1 %v6326_v31, %s7023_s26 }
 0xd38   : > { %v3875_v52 = vpop.f32.mrf.mxu1 }
 0xd39   : > { %v6321_v58 = vpack.i.bf16 %v3875_v52, %v3872_v63 }
 0xd3a   : > { %v5864_v40 = vpop.f32.mrf.mxu1 }
 0xd3b   : > { %6322 = vrot.lane.b32.xlu0 %v6321_v58, %s7023_s26  ;;  %s8584_s26 = sld [smem:[#allocation39_spill]] }
 0xd61   : > { %v6303_v17 = vpop.permute.xlu1 %6302 }
 0xd62   : > { %v6305_v23 = vunpack.i.h.bf16 %v6303_v17  ;;  %v6304_v16 = vunpack.i.l.bf16 %v6303_v17 }
 0xd64   : > { %v3974_v10 = vsel %vm1255_vm1, %v8221_v4, %v6305_v23  ;;  %v3973_v61 = vsel %vm1255_vm1, %v8219_v7, %v6304_v16  ;;  %v6417_v23 = vld [vmem:[#allocation14 + $0xc0] ss:$16 sps:$4 sm:$0xff]   ;;  %v6420_v16 = vld [vmem:[#allocation14 + $0xc8] ss:$16 sps:$4 sm:$0xff]  }
 0xd65   : > { %v6308_v38 = vpop.permute.xlu0 %6307 }
 0xd66   : > { %v6310_v47 = vunpack.i.h.bf16 %v6308_v38  ;;  %v6309_v14 = vunpack.i.l.bf16 %v6308_v38 }
 0xd68   : > { %v3972_v62 = vsel %vm1255_vm1, %v8217_v22, %v6310_v47  ;;  %v3971_v37 = vsel %vm1255_vm1, %v8215_v25, %v6309_v14  ;;  %v6425_v47 = vld [vmem:[#allocation14 + $0xa4] ss:$16 sps:$4 sm:$0xff]   ;;  %v6428_v14 = vld [vmem:[#allocation14 + $0xac] ss:$16 sps:$4 sm:$0xff]  }
 0xd71   : > { %v6313_v24 = vpop.permute.xlu1 %6312 }
 0xd72   : > { %v6315_v20 = vunpack.i.h.bf16 %v6313_v24  ;;  %v6314_v26 = vunpack.i.l.bf16 %v6313_v24  ;;  %v6419_v24 = vld [vmem:[#allocation14 + $0xc4] ss:$16 sps:$4 sm:$0xff]  }
 0xd74   : > { %v3977_v56 = vsel %vm2237_vm3, %v3973_v61, %v6314_v26  ;;  %v3978_v57 = vsel %vm2237_vm3, %v3974_v10, %v6315_v20  ;;  %v6426_v20 = vld [vmem:[#allocation14 + $0xa8] ss:$16 sps:$4 sm:$0xff]   ;;  %v6431_v26 = vld [vmem:[#allocation14 + $0x84] ss:$16 sps:$4 sm:$0xff]   ;;  %v6435_v10 = vld [vmem:[#allocation14 + $0x60] ss:$16 sps:$4 sm:$0xff]  }
 0xd75   : > { %v6318_v48 = vpop.permute.xlu0 %6317  ;;  %v6438_v61 = vld [vmem:[#allocation14 + $0x68] ss:$16 sps:$4 sm:$0xff]  }
 0xd76   : > { %v6320_v49 = vunpack.i.h.bf16 %v6318_v48  ;;  %v6319_v59 = vunpack.i.l.bf16 %v6318_v48  ;;  %v6422_v48 = vld [vmem:[#allocation14 + $0xcc] ss:$16 sps:$4 sm:$0xff]  }
 0xd78   : > { %v3976_v28 = vsel %vm2237_vm3, %v3972_v62, %v6320_v49  ;;  %v3975_v4 = vsel %vm2237_vm3, %v3971_v37, %v6319_v59  ;;  %v6434_v49 = vld [vmem:[#allocation14 + $0x8c] ss:$16 sps:$4 sm:$0xff]   ;;  %v6429_v59 = vld [vmem:[#allocation14 + $0x80] ss:$16 sps:$4 sm:$0xff]   ;;  %v6443_v37 = vld [vmem:[#allocation14 + $0x44] ss:$16 sps:$4 sm:$0xff]  }
 0xd79   : > { %v6440_v62 = vld [vmem:[#allocation14 + $0x6c] ss:$16 sps:$4 sm:$0xff]  }
 0xda9   : > { %v6328_v6 = vpop.permute.xlu1 %6327 }
 0xdaa   : > { %v6330_v30 = vunpack.i.h.bf16 %v6328_v6  ;;  %v6329_v35 = vunpack.i.l.bf16 %v6328_v6  ;;  %v6423_v6 = vld [vmem:[#allocation14 + $0xa0] ss:$16 sps:$4 sm:$0xff]  }
 0xdac   : > { %v3982_v19 = vsel %vm2242_vm4, %v3978_v57, %v6330_v30  ;;  %v3981_v7 = vsel %vm2242_vm4, %v3977_v56, %v6329_v35  ;;  %v6432_v30 = vld [vmem:[#allocation14 + $0x88] ss:$16 sps:$4 sm:$0xff]   ;;  %v6437_v35 = vld [vmem:[#allocation14 + $0x64] ss:$16 sps:$4 sm:$0xff]   ;;  %v6441_v56 = vld [vmem:[#allocation14 + $0x40] ss:$16 sps:$4 sm:$0xff]  }
 0xdad   : > { %v6323_v18 = vpop.permute.xlu0 %6322  ;;  %v3984_v50 = vpack.c.bf16 %v3982_v19, %v3981_v7  ;;  %v6444_v57 = vld [vmem:[#allocation14 + $0x48] ss:$16 sps:$4 sm:$0xff]   ;;  %v6455_v19 = vld [vmem:[#allocation14 + $0x4] ss:$16 sps:$4 sm:$0xff]   ;;  %v6458_v7 = vld [vmem:[#allocation14 + $0xc] ss:$16 sps:$4 sm:$0xff]  }
 0xdae   : > { %v6325_v34 = vunpack.i.h.bf16 %v6323_v18  ;;  %v6324_v36 = vunpack.i.l.bf16 %v6323_v18  ;;  %v6446_v18 = vld [vmem:[#allocation14 + $0x4c] ss:$16 sps:$4 sm:$0xff]  }
 0xdb0   : > { %v3979_v22 = vsel %vm2242_vm4, %v3975_v4, %v6324_v36  ;;  %v3980_v55 = vsel %vm2242_vm4, %v3976_v28, %v6325_v34  ;;  %v6449_v34 = vld [vmem:[#allocation14 + $0x24] ss:$16 sps:$4 sm:$0xff]   ;;  %v6452_v36 = vld [vmem:[#allocation14 + $0x2c] ss:$16 sps:$4 sm:$0xff]   ;;  %v6447_v28 = vld [vmem:[#allocation14 + $0x20] ss:$16 sps:$4 sm:$0xff]  }
 0xdb1   : > { %v3983_v25 = vpack.c.bf16 %v3980_v55, %v3979_v22  ;;  %v6450_v4 = vld [vmem:[#allocation14 + $0x28] ss:$16 sps:$4 sm:$0xff]   ;;  %v6453_v22 = vld [vmem:[#allocation14] ss:$16 sps:$4 sm:$0xff]  }
 0xdb2   : > { %v6456_v55 = vld [vmem:[#allocation14 + $0x8] ss:$16 sps:$4 sm:$0xff]  }
 0xdb3   : > { %5889 = vmatprep.mubr.bf16.mxu1 %v3983_v25 }
 0xdb4   : > { %5890 = vmatmul.mubr.bf16.vlgmr.msra.gmra.mxu1 %v3984_v50 }
 0xdb5   : > { %4480 = vmatprep.mubr.bf16.mxu1 %v7020_v39 }
 0xe74   : > { %v5891_v44 = vpop.f32.mrf.mxu1 }
 0xe75   : > { %v4100_v0 = vadd.f32 %v5891_v44, %v7757_v60  ;;  %v6411_v60 = vld [vmem:[#allocation14 + $0xe0] ss:$16 sps:$4 sm:$0xff]  }
 0xe76   : > { %v4083_v27 = vpop.f32.mrf.mxu1  ;;  %4396 = vmatpush1.bf16.msra.mxu0 %v6411_v60 }
 0xe77   : > { %v4098_v5 = vadd.f32 %v4083_v27, %v7753_v53  ;;  %v8255_v46 = vadd.f32 %v5333_v9, %v4100_v0  ;;  %4397 = vmatprep.subr.bf16.mxu0 %v6419_v24 }
 0xe78   : > { %v5892_v21 = vpop.f32.mrf.mxu1 }
 0xe79   : > { %v8251_v11 = vadd.f32 %v5333_v9, %v4098_v5  ;;  %v4101_v3 = vadd.f32 %v5892_v21, %v7764_v2 }
 0xe7a   : > { %v4086_v42 = vpop.f32.mrf.mxu1  ;;  %4398 = vmatpush1.bf16.msra.mxu0 %v6417_v23 }
 0xe7b   : > { %v4099_v29 = vadd.f32 %v4086_v42, %v7760_v41  ;;  %4115 = vadd.xlane.f32.xlu0 %v8251_v11  ;;  %v8262_v53 = vadd.f32 %v5333_v9, %v4101_v3  ;;  %v6416_v41 = vld [vmem:[#allocation14 + $0xec] ss:$16 sps:$4 sm:$0xff]   ;;  %4399 = vmatprep.subr.bf16.mxu0 %v6425_v47 }
 0xe7c   : > { %4448 = vmatprep.subr.bf16.mxu1 %v6416_v41  ;;  %v5334_v41 = vld [vmem:[%s8507_s13] ss:$0 sm:$0xff]  ;;  %v6461_v47 = vld [vmem:[#allocation16 + $0x38] sm:$0xff]  }
 0xe7d   : > { %v8258_v54 = vadd.f32 %v5333_v9, %v4099_v29  ;;  %4449 = vmatpush1.bf16.msra.mxu1 %v6414_v51 }
 0xe7e   : > { %4450 = vmatprep.subr.bf16.mxu1 %v6422_v48  ;;  %4400 = vmatpush1.bf16.msra.mxu0 %v6423_v6  ;;  %v6464_v6 = vld [vmem:[#allocation16 + $0xf0] sm:$0xff]  }
 0xe7f   : > { %4119 = vadd.xlane.f32.xlu0 %v8255_v46  ;;  %4117 = vadd.xlane.f32.xlu1 %v8258_v54 }
 0xe80   : > { %4401 = vmatprep.subr.bf16.mxu0 %v6431_v26  ;;  %v6466_v26 = vld [vmem:[#allocation16 + $0xb0] sm:$0xff]  }
 0xe81   : > { %4451 = vmatpush1.bf16.msra.mxu1 %v6420_v16  ;;  %v6459_v16 = vld [vmem:[#allocation16 + $0x78] sm:$0xff]  }
 0xe82   : > { %4452 = vmatprep.subr.bf16.mxu1 %v6428_v14  ;;  %4402 = vmatpush1.bf16.msra.mxu0 %v6429_v59  ;;  %v6462_v14 = vld [vmem:[#allocation16 + $0xb8] sm:$0xff]   ;;  %v6469_v59 = vld [vmem:[#allocation16 + $0x28] sm:$0xff]  }
 0xe83   : > { %4121 = vadd.xlane.f32.xlu0 %v8262_v53  ;;  %4403 = vmatprep.subr.bf16.mxu0 %v6437_v35  ;;  %v6471_v35 = vld [vmem:[#allocation16 + $0x60] sm:$0xff]  }
 0xe85   : > { %4453 = vmatpush1.bf16.msra.mxu1 %v6426_v20  ;;  %v6465_v20 = vld [vmem:[#allocation16 + $0x30] sm:$0xff]  }
 0xe86   : > { %4454 = vmatprep.subr.bf16.mxu1 %v6434_v49  ;;  %4404 = vmatpush1.bf16.msra.mxu0 %v6435_v10  ;;  %v6468_v49 = vld [vmem:[#allocation16 + $0xe8] sm:$0xff]   ;;  %v6472_v10 = vld [vmem:[#allocation16 + $0xe0] sm:$0xff]  }
 0xe87   : > { %4405 = vmatprep.subr.bf16.mxu0 %v6443_v37  ;;  %v6475_v37 = vld [vmem:[#allocation16 + $0x58] sm:$0xff]  }
 0xe89   : > { %4455 = vmatpush1.bf16.msra.mxu1 %v6432_v30  ;;  %v6470_v30 = vld [vmem:[#allocation16 + $0xa8] sm:$0xff]  }
 0xe8a   : > { %4456 = vmatprep.subr.bf16.mxu1 %v6440_v62  ;;  %4406 = vmatpush1.bf16.msra.mxu0 %v6441_v56  ;;  %v6474_v62 = vld [vmem:[#allocation16 + $0xa0] sm:$0xff]   ;;  %v6477_v56 = vld [vmem:[#allocation16 + $0x18] sm:$0xff]  }
 0xe8b   : > { %4407 = vmatprep.subr.bf16.mxu0 %v6449_v34  ;;  %v6479_v34 = vld [vmem:[#allocation16 + $0x50] sm:$0xff]  }
 0xe8d   : > { %4457 = vmatpush1.bf16.msra.mxu1 %v6438_v61  ;;  %v6473_v61 = vld [vmem:[#allocation16 + $0x20] sm:$0xff]  }
 0xe8e   : > { %4458 = vmatprep.subr.bf16.mxu1 %v6446_v18  ;;  %4408 = vmatpush1.bf16.msra.mxu0 %v6447_v28  ;;  %v6476_v18 = vld [vmem:[#allocation16 + $0xd8] sm:$0xff]   ;;  %v6481_v28 = vld [vmem:[#allocation16 + $0x10] sm:$0xff]  }
 0xe8f   : > { %4409 = vmatprep.subr.bf16.mxu0 %v6455_v19  ;;  %v6483_v19 = vld [vmem:[#allocation16 + $0x48] sm:$0xff]  }
 0xe91   : > { %4459 = vmatpush1.bf16.msra.mxu1 %v6444_v57  ;;  %v6478_v57 = vld [vmem:[#allocation16 + $0x98] sm:$0xff]  }
 0xe92   : > { %4460 = vmatprep.subr.bf16.mxu1 %v6452_v36  ;;  %4410 = vmatpush1.bf16.msra.mxu0 %v6453_v22  ;;  %v6480_v36 = vld [vmem:[#allocation16 + $0xd0] sm:$0xff]   ;;  %v6485_v22 = vld [vmem:[#allocation16 + $0x8] sm:$0xff]  }
 0xe93   : > { %5533 = vmatprep.subr.bf16.mxu0 %v6459_v16 }
 0xe95   : > { %4461 = vmatpush1.bf16.msra.mxu1 %v6450_v4  ;;  %v6482_v4 = vld [vmem:[#allocation16 + $0x90] sm:$0xff]  }
 0xe96   : > { %4462 = vmatprep.subr.bf16.mxu1 %v6458_v7  ;;  %v6484_v7 = vld [vmem:[#allocation16 + $0xc8] sm:$0xff]  }
 0xe99   : > { %4463 = vmatpush1.bf16.msra.mxu1 %v6456_v55  ;;  %v6486_v55 = vld [vmem:[#allocation16 + $0x88] sm:$0xff]  }
 0xf04   : > { %v4116_v43 = vpop.xlane.xlu0 %4115 }
 0xf05   : > { %v4123_v2 = vmul.f32 0.0078125, %v4116_v43 }
 0xf07   : > { %v8266_v12 = vsub.f32 %v8251_v11, %v4123_v2 }
 0xf08   : > { %v4120_v32 = vpop.xlane.xlu0 %4119  ;;  %v4118_v45 = vpop.xlane.xlu1 %4117 }
 0xf09   : > { %v4125_v1 = vmul.f32 0.0078125, %v4120_v32  ;;  %v4124_v63 = vmul.f32 0.0078125, %v4118_v45  ;;  %v4131_v33 = vmul.f32 %v8266_v12, %v8266_v12 }
 0xf0b   : > { %v8271_v31 = vsub.f32 %v8255_v46, %v4125_v1  ;;  %v8274_v15 = vsub.f32 %v8258_v54, %v4124_v63  ;;  %4135 = vadd.xlane.f32.xlu0 %v4131_v33  ;;  %v5335_v1 = vld [vmem:[%s8508_s14] ss:$0 sm:$0xff] }
 0xf0c   : > { %v4122_v8 = vpop.xlane.xlu0 %4121 }
 0xf0d   : > { %v4126_v52 = vmul.f32 0.0078125, %v4122_v8  ;;  %v4133_v58 = vmul.f32 %v8271_v31, %v8271_v31  ;;  %v4132_v40 = vmul.f32 %v8274_v15, %v8274_v15 }
 0xf0f   : > { %v8281_v17 = vsub.f32 %v8262_v53, %v4126_v52  ;;  %4139 = vadd.xlane.f32.xlu0 %v4133_v58  ;;  %4137 = vadd.xlane.f32.xlu1 %v4132_v40 }
 0xf11   : > { %v4134_v38 = vmul.f32 %v8281_v17, %v8281_v17 }
 0xf13   : > { %4141 = vadd.xlane.f32.xlu1 %v4134_v38 }
 0xf94   : > { %v4136_v25 = vpop.xlane.xlu0 %4135 }
 0xf95   : > { %v4143_v50 = vmul.f32 0.0078125, %v4136_v25  ;;  %v6487_v25 = vld [vmem:[#allocation16 + $0x40] sm:$0xff]  }
 0xf97   : > { %v4147_v44 = vadd.f32 1e-05, %v4143_v50  ;;  %v6488_v50 = vld [vmem:[#allocation16 + $0xc0] sm:$0xff]  }
 0xf98   : > { %v4140_v27 = vpop.xlane.xlu0 %4139  ;;  %v4138_v5 = vpop.xlane.xlu1 %4137 }
 0xf99   : > { %6635 = vrsqrt.f32 %v4147_v44  ;;  %v4145_v9 = vmul.f32 0.0078125, %v4140_v27  ;;  %v4144_v21 = vmul.f32 0.0078125, %v4138_v5  ;;  %v6489_v44 = vld [vmem:[#allocation16] sm:$0xff]   ;;  %v4215_v5 = vlaneseq }
 0xf9a   : > { %v6490_v27 = vld [vmem:[#allocation16 + $0x80] sm:$0xff]  }
 0xf9b   : > { %v4148_v0 = vadd.f32 1e-05, %v4144_v21  ;;  %v4149_v42 = vadd.f32 1e-05, %v4145_v9  ;;  %v4216_v9 = vshrl.u32 %v4215_v5, 7 }
 0xf9c   : > { %v4142_v29 = vpop.xlane.xlu1 %4141 }
 0xf9d   : > { %v4146_v3 = vmul.f32 0.0078125, %v4142_v29  ;;  %6637 = vrsqrt.f32 %v4148_v0  ;;  %v4217_v21 = vsub.s32 0, %v4216_v9  ;;  %v4225_v0 = vsub.s32 2, %v4216_v9 }
 0xf9e   : > { %6639 = vrsqrt.f32 %v4149_v42  ;;  %v4213_v42 = vld [vmem:[%s8584_s26] sm:$0xf]  ;;  %v4221_v29 = vsub.s32 1, %v4216_v9 }
 0xf9f   : > { %v4150_v60 = vadd.f32 1e-05, %v4146_v3  ;;  %v4229_v3 = vsub.s32 3, %v4216_v9 }
 0xfa1   : > { %6641 = vrsqrt.f32 %v4150_v60  ;;  %v8300_v60 = vrot.slane %v4213_v42, %v4217_v21 }
 0xfa6   : > { %v6636_v13 = vpop.eup %6635 }
 0xfa7   : > { %v4155_v51 = vmul.f32 %v6636_v13, %v8266_v12  ;;  %v8302_v13 = vrot.slane %v4213_v42, %v4225_v0 }
 0xfa9   : > { %v4165_v32 = vmul.f32 %v5334_v41, %v4155_v51 }
 0xfaa   : > { %v6638_v43 = vpop.eup %6637 }
 0xfab   : > { %v4156_v2 = vmul.f32 %v6638_v43, %v8274_v15  ;;  %v6640_v45 = vpop.eup %6639  ;;  %v4175_v52 = vadd.f32 %v5335_v1, %v4165_v32  ;;  %v8304_v43 = vrot.slane %v4213_v42, %v4221_v29 }
 0xfac   : > { %v4157_v12 = vmul.f32 %v6640_v45, %v8271_v31  ;;  %v6463_v31 = vld [vmem:[#allocation16 + $0x70] sm:$0xff]  }
 0xfad   : > { %v4166_v33 = vmul.f32 %v5334_v41, %v4156_v2  ;;  %v8306_v2 = vrot.slane %v4213_v42, %v4229_v3 }
 0xfae   : > { %v6642_v63 = vpop.eup %6641  ;;  %v4167_v24 = vmul.f32 %v5334_v41, %v4157_v12 }
 0xfaf   : > { %v4158_v8 = vmul.f32 %v6642_v63, %v8281_v17  ;;  %v4176_v58 = vadd.f32 %v5335_v1, %v4166_v33  ;;  %v6460_v17 = vld [vmem:[#allocation16 + $0xf8] sm:$0xff]  }
 0xfb0   : > { %v4177_v48 = vadd.f32 %v5335_v1, %v4167_v24  ;;  %5561 = vmatprep.subr.bf16.mxu1 %v6460_v17 }
 0xfb1   : > { %v4179_v40 = vpack.c.bf16 %v4176_v58, %v4175_v52  ;;  %v4168_v38 = vmul.f32 %v5334_v41, %v4158_v8 }
 0xfb3   : > { %4428 = vmatmul.mubr.bf16.vlgmr.msra.gmra.mxu0 %v4179_v40  ;;  %4481 = vmatmul.mubr.bf16.vlgmr.msra.gmra.mxu1 %v4179_v40  ;;  %v4178_v15 = vadd.f32 %v5335_v1, %v4168_v38 }
 0xfb4   : > { %4437 = vmatprep.mubr.bf16.mxu0 %v7020_v39  ;;  %4490 = vmatprep.mubr.bf16.mxu1 %v7020_v39  ;;  %v6467_v39 = vld [vmem:[#allocation16 + $0x68] sm:$0xff]  }
 0xfb5   : > { %v4180_v23 = vpack.c.bf16 %v4178_v15, %v4177_v48  ;;  %5534 = vmatpush3.bf16.msra.mxu0 %v6461_v47  ;;  %5562 = vmatpush3.bf16.msra.mxu1 %v6462_v14 }
 0xfb6   : > { %5535 = vmatprep.subr.bf16.mxu0 %v6463_v31  ;;  %5563 = vmatprep.subr.bf16.mxu1 %v6464_v6 }
 0xfb9   : > { %5536 = vmatpush3.bf16.msra.mxu0 %v6465_v20  ;;  %5564 = vmatpush3.bf16.msra.mxu1 %v6466_v26 }
 0xfba   : > { %5537 = vmatprep.subr.bf16.mxu0 %v6467_v39  ;;  %5565 = vmatprep.subr.bf16.mxu1 %v6468_v49 }
 0xfbb   : > { %4438 = vmatmul.mubr.bf16.gmra.mxu0 %v4180_v23  ;;  %4491 = vmatmul.mubr.bf16.gmra.mxu1 %v4180_v23 }
 0xfbd   : > { %5538 = vmatpush3.bf16.msra.mxu0 %v6469_v59  ;;  %5566 = vmatpush3.bf16.msra.mxu1 %v6470_v30 }
 0xfbe   : > { %5539 = vmatprep.subr.bf16.mxu0 %v6471_v35  ;;  %5567 = vmatprep.subr.bf16.mxu1 %v6472_v10 }
 0xfc1   : > { %5540 = vmatpush3.bf16.msra.mxu0 %v6473_v61  ;;  %5568 = vmatpush3.bf16.msra.mxu1 %v6474_v62 }
 0xfc2   : > { %5541 = vmatprep.subr.bf16.mxu0 %v6475_v37  ;;  %5569 = vmatprep.subr.bf16.mxu1 %v6476_v18 }
 0xfc5   : > { %5542 = vmatpush3.bf16.msra.mxu0 %v6477_v56  ;;  %5570 = vmatpush3.bf16.msra.mxu1 %v6478_v57 }
 0xfc6   : > { %5543 = vmatprep.subr.bf16.mxu0 %v6479_v34  ;;  %5571 = vmatprep.subr.bf16.mxu1 %v6480_v36 }
 0xfc9   : > { %5544 = vmatpush3.bf16.msra.mxu0 %v6481_v28  ;;  %5572 = vmatpush3.bf16.msra.mxu1 %v6482_v4 }
 0xfca   : > { %5545 = vmatprep.subr.bf16.mxu0 %v6483_v19  ;;  %5573 = vmatprep.subr.bf16.mxu1 %v6484_v7 }
 0xfcd   : > { %5546 = vmatpush3.bf16.msra.mxu0 %v6485_v22  ;;  %5574 = vmatpush3.bf16.msra.mxu1 %v6486_v55 }
 0xfce   : > { %5547 = vmatprep.subr.bf16.mxu0 %v6487_v25  ;;  %5575 = vmatprep.subr.bf16.mxu1 %v6488_v50 }
 0xfd1   : > { %5548 = vmatpush3.bf16.msra.mxu0 %v6489_v44  ;;  %5576 = vmatpush3.bf16.msra.mxu1 %v6490_v27 }
0x1073   : > { %v4429_v51 = vpop.f32.mrf.mxu0  ;;  %v4482_v41 = vpop.f32.mrf.mxu1 }
0x1074   : > { %v8309_v32 = vadd.f32 %v4429_v51, %v8300_v60  ;;  %v8312_v45 = vadd.f32 %v4482_v41, %v8302_v13 }
0x1075   : > { %v4431_v1 = vpop.f32.mrf.mxu0  ;;  %v4484_v63 = vpop.f32.mrf.mxu1 }
0x1076   : > { %v4517_v33 = vmul.f32 0.044715, %v8309_v32  ;;  %v4519_v8 = vmul.f32 0.044715, %v8312_v45  ;;  %v8317_v52 = vadd.f32 %v4431_v1, %v8304_v43  ;;  %v8320_v58 = vadd.f32 %v4484_v63, %v8306_v2 }
0x1077   : > { %v4433_v12 = vpop.f32.mrf.mxu0  ;;  %v4486_v40 = vpop.f32.mrf.mxu1 }
0x1078   : > { %v4533_v38 = vmul.f32 %v4517_v33, %v8309_v32  ;;  %v4535_v24 = vmul.f32 %v4519_v8, %v8312_v45  ;;  %v8325_v15 = vadd.f32 %v4433_v12, %v8300_v60  ;;  %v8328_v48 = vadd.f32 %v4486_v40, %v8302_v13 }
0x1079   : > { %v4435_v23 = vpop.f32.mrf.mxu0  ;;  %v4488_v16 = vpop.f32.mrf.mxu1  ;;  %v4518_v14 = vmul.f32 0.044715, %v8317_v52  ;;  %v4520_v6 = vmul.f32 0.044715, %v8320_v58 }
0x107a   : > { %v4549_v17 = vmul.f32 %v4533_v38, %v8309_v32  ;;  %v4551_v47 = vmul.f32 %v4535_v24, %v8312_v45  ;;  %v4521_v31 = vmul.f32 0.044715, %v8325_v15  ;;  %v4523_v20 = vmul.f32 0.044715, %v8328_v48 }
0x107b   : > { %v4439_v26 = vpop.f32.mrf.mxu0  ;;  %v4492_v39 = vpop.f32.mrf.mxu1  ;;  %v8339_v30 = vadd.f32 %v4435_v23, %v8304_v43  ;;  %v8343_v10 = vadd.f32 %v4488_v16, %v8306_v2  ;;  %v4534_v18 = vmul.f32 %v4518_v14, %v8317_v52  ;;  %v4536_v34 = vmul.f32 %v4520_v6, %v8320_v58 }
0x107c   : > { %v4565_v49 = vadd.f32 %v4549_v17, %v8309_v32  ;;  %v4537_v59 = vmul.f32 %v4521_v31, %v8325_v15  ;;  %v4539_v35 = vmul.f32 %v4523_v20, %v8328_v48  ;;  %v4567_v37 = vadd.f32 %v4551_v47, %v8312_v45 }
0x107d   : > { %v4441_v61 = vpop.f32.mrf.mxu0  ;;  %v4494_v62 = vpop.f32.mrf.mxu1  ;;  %v4522_v57 = vmul.f32 0.044715, %v8339_v30  ;;  %v4524_v28 = vmul.f32 0.044715, %v8343_v10  ;;  %v8353_v4 = vadd.f32 %v4439_v26, %v8300_v60  ;;  %v4550_v5 = vmul.f32 %v4534_v18, %v8317_v52 }
0x107e   : > { %v4553_v56 = vmul.f32 %v4537_v59, %v8325_v15  ;;  %v4555_v36 = vmul.f32 %v4539_v35, %v8328_v48  ;;  %v4581_v7 = vmul.f32 0.7978846, %v4565_v49  ;;  %v8358_v25 = vadd.f32 %v4441_v61, %v8304_v43 }
0x107f   : > { %v4443_v19 = vpop.f32.mrf.mxu0  ;;  %v4538_v55 = vmul.f32 %v4522_v57, %v8339_v30  ;;  %v4496_v50 = vpop.f32.mrf.mxu1  ;;  %v4583_v27 = vmul.f32 0.7978846, %v4567_v37  ;;  %v8363_v9 = vadd.f32 %v4492_v39, %v8302_v13  ;;  %v4552_v0 = vmul.f32 %v4536_v34, %v8320_v58 }
0x1080   : > { %v4569_v22 = vadd.f32 %v4553_v56, %v8325_v15  ;;  %v4571_v44 = vadd.f32 %v4555_v36, %v8328_v48  ;;  %v4526_v21 = vmul.f32 0.044715, %v8358_v25  ;;  %v4540_v42 = vmul.f32 %v4524_v28, %v8343_v10 }
0x1081   : > { %v4525_v29 = vmul.f32 0.044715, %v8353_v4  ;;  %v8370_v3 = vadd.f32 %v4494_v62, %v8306_v2  ;;  %v4445_v51 = vpop.f32.mrf.mxu0  ;;  %6643 = vtanh.f32 %v4581_v7  ;;  %v4554_v1 = vmul.f32 %v4538_v55, %v8339_v30  ;;  %v4498_v33 = vpop.f32.mrf.mxu1 }
0x1082   : > { %v4585_v41 = vmul.f32 0.7978846, %v4569_v22  ;;  %v8374_v63 = vadd.f32 %v4443_v19, %v8300_v60  ;;  %v4587_v8 = vmul.f32 0.7978846, %v4571_v44  ;;  %v4542_v12 = vmul.f32 %v4526_v21, %v8358_v25 }
0x1083   : > { %v4528_v40 = vmul.f32 0.044715, %v8370_v3  ;;  %v8379_v38 = vadd.f32 %v4496_v50, %v8302_v13  ;;  %6645 = vtanh.f32 %v4583_v27  ;;  %v4527_v24 = vmul.f32 0.044715, %v8363_v9 }
0x1084   : > { %v4529_v23 = vmul.f32 0.044715, %v8374_v63  ;;  %v8384_v16 = vadd.f32 %v4445_v51, %v8304_v43  ;;  %v4556_v60 = vmul.f32 %v4540_v42, %v8343_v10  ;;  %v4541_v17 = vmul.f32 %v4525_v29, %v8353_v4 }
0x1085   : > { %v4544_v47 = vmul.f32 %v4528_v40, %v8370_v3  ;;  %v8390_v14 = vadd.f32 %v4498_v33, %v8306_v2  ;;  %6647 = vtanh.f32 %v4585_v41  ;;  %v4566_v31 = vadd.f32 %v4550_v5, %v8317_v52 }
0x1086   : > { %v4530_v13 = vmul.f32 0.044715, %v8384_v16  ;;  %v4570_v6 = vadd.f32 %v4554_v1, %v8339_v30  ;;  %6649 = vtanh.f32 %v4587_v8  ;;  %v4558_v43 = vmul.f32 %v4542_v12, %v8358_v25 }
0x1087   : > { %v4531_v20 = vmul.f32 0.044715, %v8379_v38  ;;  %v4532_v26 = vmul.f32 0.044715, %v8390_v14  ;;  %v4545_v39 = vmul.f32 %v4529_v23, %v8374_v63  ;;  %v4582_v2 = vmul.f32 0.7978846, %v4566_v31 }
0x1088   : > { %v4546_v49 = vmul.f32 %v4530_v13, %v8384_v16  ;;  %v4586_v59 = vmul.f32 0.7978846, %v4570_v6  ;;  %v4560_v35 = vmul.f32 %v4544_v47, %v8370_v3  ;;  %v4568_v62 = vadd.f32 %v4552_v0, %v8320_v58 }
0x1089   : > { %v4548_v61 = vmul.f32 %v4532_v26, %v8390_v14  ;;  %v4572_v37 = vadd.f32 %v4556_v60, %v8343_v10  ;;  %v4543_v18 = vmul.f32 %v4527_v24, %v8363_v9  ;;  %6651 = vtanh.f32 %v4582_v2 }
0x108a   : > { %v4562_v56 = vmul.f32 %v4546_v49, %v8384_v16  ;;  %6653 = vtanh.f32 %v4586_v59  ;;  %v4584_v34 = vmul.f32 0.7978846, %v4568_v62  ;;  %v4557_v28 = vmul.f32 %v4541_v17, %v8353_v4 }
0x108b   : > { %v4564_v57 = vmul.f32 %v4548_v61, %v8390_v14  ;;  %v4588_v36 = vmul.f32 0.7978846, %v4572_v37  ;;  %v4547_v19 = vmul.f32 %v4531_v20, %v8379_v38  ;;  %v4574_v7 = vadd.f32 %v4558_v43, %v8358_v25 }
0x108c   : > { %v4578_v22 = vadd.f32 %v4562_v56, %v8384_v16  ;;  %v4561_v55 = vmul.f32 %v4545_v39, %v8374_v63  ;;  %6655 = vtanh.f32 %v4584_v34  ;;  %v4576_v50 = vadd.f32 %v4560_v35, %v8370_v3 }
0x108d   : > { %6657 = vtanh.f32 %v4588_v36  ;;  %v4590_v44 = vmul.f32 0.7978846, %v4574_v7  ;;  %v4580_v21 = vadd.f32 %v4564_v57, %v8390_v14  ;;  %v4559_v42 = vmul.f32 %v4543_v18, %v8363_v9 }
0x108e   : > { %v4594_v27 = vmul.f32 0.7978846, %v4578_v22  ;;  %v6644_v5 = vpop.eup %6643  ;;  %v4592_v0 = vmul.f32 0.7978846, %v4576_v50  ;;  %v4563_v29 = vmul.f32 %v4547_v19, %v8379_v38  ;;  %v4573_v51 = vadd.f32 %v4557_v28, %v8353_v4 }
0x108f   : > { %6659 = vtanh.f32 %v4590_v44  ;;  %v4596_v1 = vmul.f32 0.7978846, %v4580_v21  ;;  %v4577_v33 = vadd.f32 %v4561_v55, %v8374_v63  ;;  %v4575_v23 = vadd.f32 %v4559_v42, %v8363_v9 }
0x1090   : > { %v6646_v41 = vpop.eup %6645  ;;  %6661 = vtanh.f32 %v4594_v27  ;;  %v4589_v8 = vmul.f32 0.7978846, %v4573_v51  ;;  %v4579_v60 = vadd.f32 %v4563_v29, %v8379_v38  ;;  %v4502_v6 = vmul.f32 0.5, %v8317_v52 }
0x1091   : > { %6663 = vtanh.f32 %v4592_v0  ;;  %v4593_v40 = vmul.f32 0.7978846, %v4577_v33  ;;  %v4591_v47 = vmul.f32 0.7978846, %v4575_v23  ;;  %v4505_v20 = vmul.f32 0.5, %v8325_v15 }
0x1092   : > { %v6648_v12 = vpop.eup %6647  ;;  %6665 = vtanh.f32 %v4596_v1  ;;  %v4595_v13 = vmul.f32 0.7978846, %v4579_v60  ;;  %v4613_v39 = vadd.f32 1.0, %v6644_v5  ;;  %v4506_v49 = vmul.f32 0.5, %v8339_v30 }
0x1093   : > { %v6650_v24 = vpop.eup %6649  ;;  %6667 = vtanh.f32 %v4589_v8  ;;  %v4617_v17 = vadd.f32 1.0, %v6648_v12  ;;  %v4501_v61 = vmul.f32 0.5, %v8309_v32  ;;  %v4507_v62 = vmul.f32 0.5, %v8328_v48 }
0x1094   : > { %6669 = vtanh.f32 %v4593_v40  ;;  %v4619_v59 = vadd.f32 1.0, %v6650_v24  ;;  %v4615_v34 = vadd.f32 1.0, %v6646_v41  ;;  %v4504_v15 = vmul.f32 0.5, %v8320_v58 }
0x1095   : > { %6671 = vtanh.f32 %v4591_v47  ;;  %v4633_v37 = vmul.f32 %v4617_v17, %v4505_v20  ;;  %v4508_v36 = vmul.f32 0.5, %v8343_v10  ;;  %v4629_v30 = vmul.f32 %v4613_v39, %v4501_v61 }
0x1096   : > { %v6652_v31 = vpop.eup %6651  ;;  %6673 = vtanh.f32 %v4595_v13  ;;  %v4503_v7 = vmul.f32 0.5, %v8312_v45  ;;  %v4635_v55 = vmul.f32 %v4619_v59, %v4507_v62  ;;  %v4510_v0 = vmul.f32 0.5, %v8358_v25 }
0x1097   : > { %v6654_v43 = vpop.eup %6653  ;;  %v4614_v26 = vadd.f32 1.0, %v6652_v31  ;;  %v4645_v44 = vpack.c.bf16 %v4633_v37, %v4629_v30  ;;  %v4514_v58 = vmul.f32 0.5, %v8384_v16  ;;  %v4512_v45 = vmul.f32 0.5, %v8370_v3 }
0x1098   : > { %v4618_v2 = vadd.f32 1.0, %v6654_v43  ;;  %v4631_v21 = vmul.f32 %v4615_v34, %v4503_v7  ;;  %v4516_v51 = vmul.f32 0.5, %v8390_v14  ;;  %v4509_v25 = vmul.f32 0.5, %v8353_v4 }
0x1099   : > { %v6656_v35 = vpop.eup %6655  ;;  %v4630_v56 = vmul.f32 %v4614_v26, %v4502_v6  ;;  %v4513_v16 = vmul.f32 0.5, %v8374_v63  ;;  %v4511_v39 = vmul.f32 0.5, %v8363_v9  ;;  %v4515_v4 = vmul.f32 0.5, %v8379_v38  ;;  %v5400_v38 = vld [vmem:[%s8585_s3] ss:$0 sm:$0xff] }
0x109a   : > { %v6658_v18 = vpop.eup %6657  ;;  %v4634_v52 = vmul.f32 %v4618_v2, %v4506_v49  ;;  %v4616_v57 = vadd.f32 1.0, %v6656_v35  ;;  %v4647_v33 = vpack.c.bf16 %v4635_v55, %v4631_v21 }
0x109b   : > { %v4620_v28 = vadd.f32 1.0, %v6658_v18 }
0x109c   : > { %v6660_v19 = vpop.eup %6659  ;;  %v4646_v22 = vpack.c.bf16 %v4634_v52, %v4630_v56  ;;  %v4632_v50 = vmul.f32 %v4616_v57, %v4504_v15 }
0x109d   : > { %v6662_v32 = vpop.eup %6661  ;;  %v4636_v48 = vmul.f32 %v4620_v28, %v4508_v36  ;;  %v4622_v27 = vadd.f32 1.0, %v6660_v19 }
0x109e   : > { %v6664_v5 = vpop.eup %6663  ;;  %4941 = vmatprep.mubr.bf16.mxu0 %v4646_v22  ;;  %v4626_v10 = vadd.f32 1.0, %v6662_v32 }
0x109f   : > { %v6666_v42 = vpop.eup %6665  ;;  %v4648_v29 = vpack.c.bf16 %v4636_v48, %v4632_v50  ;;  %4942 = vmatmul.mubr.bf16.vlgmr.msra.gmra.mxu0 %v4645_v44  ;;  %v4624_v41 = vadd.f32 1.0, %v6664_v5  ;;  %v4638_v8 = vmul.f32 %v4622_v27, %v4510_v0 }
0x10a0   : > { %v6668_v1 = vpop.eup %6667  ;;  %v4642_v12 = vmul.f32 %v4626_v10, %v4514_v58  ;;  %v4628_v40 = vadd.f32 1.0, %v6666_v42 }
0x10a1   : > { %v6670_v24 = vpop.eup %6669  ;;  %4990 = vmatprep.mubr.bf16.mxu1 %v4648_v29  ;;  %v4621_v23 = vadd.f32 1.0, %v6668_v1  ;;  %v4640_v17 = vmul.f32 %v4624_v41, %v4512_v45 }
0x10a2   : > { %4991 = vmatmul.mubr.bf16.vlgmr.msra.gmra.mxu1 %v4647_v33  ;;  %v4650_v60 = vpack.c.bf16 %v4642_v12, %v4638_v8  ;;  %v4644_v47 = vmul.f32 %v4628_v40, %v4516_v51  ;;  %v4625_v3 = vadd.f32 1.0, %v6670_v24  ;;  %v6672_v13 = vpop.eup %6671 }
0x10a3   : > { %v4637_v31 = vmul.f32 %v4621_v23, %v4509_v25  ;;  %v6674_v43 = vpop.eup %6673  ;;  %v4623_v20 = vadd.f32 1.0, %v6672_v13 }
0x10a4   : > { %4949 = vmatprep.mubr.bf16.mxu0 %v4650_v60  ;;  %v4652_v14 = vpack.c.bf16 %v4644_v47, %v4640_v17  ;;  %v4641_v6 = vmul.f32 %v4625_v3, %v4513_v16  ;;  %v4627_v63 = vadd.f32 1.0, %v6674_v43 }
0x10a5   : > { %v4639_v49 = vmul.f32 %v4623_v20, %v4511_v39 }
0x10a6   : > { %4998 = vmatprep.mubr.bf16.mxu1 %v4652_v14  ;;  %v4649_v26 = vpack.c.bf16 %v4641_v6, %v4637_v31  ;;  %v4643_v2 = vmul.f32 %v4627_v63, %v4515_v4 }
0x10a8   : > { %4950 = vmatmul.mubr.bf16.gmra.mxu0 %v4649_v26  ;;  %v4651_v59 = vpack.c.bf16 %v4643_v2, %v4639_v49 }
0x10aa   : > { %4999 = vmatmul.mubr.bf16.gmra.mxu1 %v4651_v59 }
0x115f   : > { %v5549_v35 = vpop.f32.mrf.mxu0 }
0x1161   : > { %v5550_v61 = vpop.f32.mrf.mxu0 }
0x1162   : > { %v5577_v62 = vpop.f32.mrf.mxu1  ;;  %v5551_v37 = vadd.f32 %v5550_v61, %v5549_v35 }
0x1163   : > { %v5552_v18 = vpop.f32.mrf.mxu0 }
0x1164   : > { %v5578_v56 = vpop.f32.mrf.mxu1 }
0x1165   : > { %v5579_v52 = vadd.f32 %v5578_v56, %v5577_v62  ;;  %v5553_v57 = vpop.f32.mrf.mxu0 }
0x1166   : > { %v5580_v34 = vpop.f32.mrf.mxu1  ;;  %v5554_v9 = vadd.f32 %v5553_v57, %v5552_v18 }
0x1167   : > { %v4993_v15 = vadd.f32 %v5579_v52, %v5551_v37 }
0x1168   : > { %v5581_v36 = vpop.f32.mrf.mxu1  ;;  %v5555_v28 = vpop.f32.mrf.mxu0 }
0x1169   : > { %v5007_v30 = vadd.f32 %v4993_v15, %v8251_v11  ;;  %v5582_v19 = vadd.f32 %v5581_v36, %v5580_v34 }
0x116a   : > { %v5556_v7 = vpop.f32.mrf.mxu0  ;;  %v5583_v32 = vpop.f32.mrf.mxu1 }
0x116b   : > { %v5018_v22 = vadd.f32 %v5400_v38, %v5007_v30  ;;  %v4996_v55 = vadd.f32 %v5582_v19, %v5554_v9  ;;  %v5557_v44 = vadd.f32 %v5556_v7, %v5555_v28 }
0x116c   : > { %v5558_v50 = vpop.f32.mrf.mxu0  ;;  %v5584_v27 = vpop.f32.mrf.mxu1 }
0x116d   : > { %5022 = vst [vmem:[%s763_s10] sm:$0xff] %v5018_v22  ;;  %v5008_v48 = vadd.f32 %v4996_v55, %v8258_v54  ;;  %v5585_v0 = vadd.f32 %v5584_v27, %v5583_v32 }
0x116e   : > { %v5559_v5 = vpop.f32.mrf.mxu0  ;;  %v5586_v58 = vpop.f32.mrf.mxu1 }
0x116f   : > { %v5019_v21 = vadd.f32 %v5400_v38, %v5008_v48  ;;  %v5001_v11 = vadd.f32 %v5585_v0, %v5557_v44  ;;  %v5560_v10 = vadd.f32 %v5559_v5, %v5558_v50 }
0x1170   : > { %v5587_v42 = vpop.f32.mrf.mxu1 }
0x1171   : > { %5023 = vst [vmem:[%s763_s10 + $0x8] sm:$0xff] %v5019_v21  ;;  %v5009_v29 = vadd.f32 %v5001_v11, %v8255_v46  ;;  %v5588_v45 = vadd.f32 %v5587_v42, %v5586_v58 }
0x1173   : > { %v5020_v51 = vadd.f32 %v5400_v38, %v5009_v29  ;;  %v5004_v41 = vadd.f32 %v5588_v45, %v5560_v10 }
0x1175   : > { %5024 = vst [vmem:[%s763_s10 + $0x10] sm:$0xff] %v5020_v51  ;;  %v5010_v54 = vadd.f32 %v5004_v41, %v8262_v53 }
0x1177   : > { %v5021_v1 = vadd.f32 %v5400_v38, %v5010_v54 }
0x1179   : > { %5025 = vst [vmem:[%s763_s10 + $0x18] sm:$0xff] %v5021_v1 }
0x117a   : > { %6930 = shalt.err (!%p6927_p9)
}
0x117b   : > { %s6931_s25 = scalar_lea.hbm %s8451_s4, 512  ;;  %s6935_s26 = scalar_lea.hbm %s8586_s28, 1024 }
0x117c   : > { %p6932_p6 = scmp.ne.s32.totalorder %s8451_s4, %s6931_s25  ;;  %p6936_p2 = scmp.lt.s32.totalorder %s8451_s4, %s8586_s28 }
0x117d   : > { %p6937_p5 = scmp.lt.s32.totalorder %s6935_s26, %s6931_s25 }
0x117e   : > { %p6933_p11 = pnand %p6932_p6, %p8587_p13 }
0x117f   : > { %p6938_p7 = por %p6937_p5, %p6936_p2 }
0x1180   : > { %p6934_p0 = pneg %p6933_p11 }
0x1182   : > { %p6939_p12 = pnand %p6938_p7, %p6934_p0 }
0x1184   : > { %6942 = shalt.err (!%p6939_p12)
}
0x1185   : > { %s7027_s3 = smov 128   ;;  %s7028_s10 = smov 8  }
0x1186   : > { %5925 = dma.vmem_to_hbm [thread:$0]  (%p8587_p13), %s8445_s11, 512, %s8451_s4, %s5027_s1, %s7027_s3, %s7027_s3, %s7028_s10  }
0x1187 PF: > { %s8588_s5 = sld [smem:[#allocation28_spill]]  ;;  %s5056_s9 = sand.u32 1, %s6989_s0  }
0x1188   : > { %p8590_p4 = scmp.ge.s32.totalorder %s7001_s21, 2  ;;  %s5057_s23 = scalar_lea.sflag [#allocation4], %s5056_s9 }
0x118d   : > { %p8589_p1 = scmp.ne.s32.totalorder %s8588_s5, 0 }
0x118f   : > { %p5957_p8 = pnand %p8590_p4, %p8589_p1 }
0x1191   : > { %p5958_p10 = pneg %p5957_p8 }
0x1193   : > { %6984 = dma.done.wait (%p5958_p10), %s5057_s23, 512  }
0x1194   : > { %6986 = vsyncadd (%p5958_p10), %s5057_s23, 4294966784  ;;  %s8591_s21 = sld [smem:[#allocation26_spill]]  ;;  %s8594_s0 = smov %s6993_s30 }
0x1195   : > { %s8592_s29 = sld [smem:[#allocation25_spill]] }
0x1196   : > { %s8593_s20 = sld [smem:[#allocation27_spill]] }
0x119a   : > { %p38_p3 = scmp.ge.s32.totalorder %s8591_s21, 4  }
0x119b   : > { %s8595_s30 = smov %s8592_s29 }
0x119c   :  { %40 = sbr.rel (!%p38_p3) target bundleno = 25 (0x19), region = 182 }
0x11a1   :  { %5062 = vsyncpa [#allocation3], 1 }
0x11a2   :  { %5064 = vsyncpa [#allocation3 + $0x1], 1 }
0x11a3   :  { %5065 = vsyncpa [#allocation6], 1 }
0x11a4   :  { %5067 = vsyncpa [#allocation6 + $0x1], 1 }
0x11a5   :  { %5068 = vsyncpa [#allocation9], 1 }
0x11a6   :  { %5069 = vsyncpa [#allocation12], 1 }
0x11a7   :  { %5070 = vsyncpa [#allocation15], 1 }
0x11a8   :  { %5071 = vsyncpa [#allocation4], 1 }
0x11a9   :  { %5073 = vsyncpa [#allocation4 + $0x1], 1 }

</bundles_post_ra>
